<compile_context>
chip_gen: v6e
topology: v6e:2x2x1
jax: 0.10.0
libtpu: 0.0.40
codegen_flags: <defaults>
</compile_context>

<pallas_src>
import jax
import jax.numpy as jnp
from jax.experimental import pallas as pl
from jax.experimental.pallas import tpu as pltpu

BN_EPS = 1e-5
OUT_FEATURES = 2
OUT_PAD = 128  # lane-dense output width


def _projection10_kernel(
    x_ref,
    w1_ref, vecs1_ref,
    w2_hbm_ref, vecs2_ref,
    w3_ref,
    w4_ref, vecs3_ref,
    o_ref,
    w2_vmem, w2_sem,
):
    # Kick off the dominant weight DMA immediately so it overlaps layer-1 work.
    w2_copy = pltpu.make_async_copy(w2_hbm_ref, w2_vmem, w2_sem)
    w2_copy.start()

    inv_b = 1.0 / x_ref.shape[0]  # static batch size

    def fused_bn(h, g, be):
        # One pass: sum and sum-of-squares together, var = E[h^2] - mean^2
        # (clamped against f32 cancellation), single folded scale/shift.
        # All elementwise math in f32 (v5e has no bf16 VPU).
        mean = jnp.sum(h, axis=0, keepdims=True) * inv_b
        ex2 = jnp.sum(h * h, axis=0, keepdims=True) * inv_b
        var = jnp.maximum(ex2 - mean * mean, 0.0)
        scale = g * jax.lax.rsqrt(var + BN_EPS)
        shift = be - mean * scale
        return h * scale + shift

    # --- Linear(in_len, 1024) + ReLU + BatchNorm1d(1024) ---
    v1 = vecs1_ref[...]                 # [3, 1024]: b1, gamma1, beta1
    x = x_ref[...].astype(jnp.bfloat16)
    h = jnp.dot(x, w1_ref[...], preferred_element_type=jnp.float32) + v1[0:1]
    h = jnp.maximum(h, 0.0)
    h = fused_bn(h, v1[1:2], v1[2:3])

    # --- Linear(1024, 256) + ReLU + BatchNorm1d(256) ---
    w2_copy.wait()                      # w2 is now resident in VMEM scratch
    v2 = vecs2_ref[...]                 # [3, 256]: b2, gamma2, beta2
    h = jnp.dot(h.astype(jnp.bfloat16), w2_vmem[...],
                preferred_element_type=jnp.float32) + v2[0:1]
    h = jnp.maximum(h, 0.0)
    h = fused_bn(h, v2[1:2], v2[2:3])

    # --- Linear(256, 64) + ReLU ---
    v3 = vecs3_ref[...]                 # [2, 128]: b3 (padded), b4 (padded)
    h = jnp.dot(h.astype(jnp.bfloat16), w3_ref[...],
                preferred_element_type=jnp.float32) + v3[0:1, :64]
    h = jnp.maximum(h, 0.0)

    # --- Linear(64, 2) (padded to 128 lanes for a dense, unmasked store) ---
    out = jnp.dot(h.astype(jnp.bfloat16), w4_ref[...],
                  preferred_element_type=jnp.float32) + v3[1:2]
    o_ref[...] = out.astype(o_ref.dtype)


def projection10_padded(x, params):
    """Returns the lane-dense padded [batch, 128] slab (columns >=2 are zero)."""
    batch, in_len = x.shape
    args = (
        x,
        params["w1"], params["vecs1"],
        params["w2"], params["vecs2"],
        params["w3"],
        params["w4p"], params["vecs3"],
    )
    vmem = pl.BlockSpec(memory_space=pltpu.MemorySpace.VMEM)
    hbm = pl.BlockSpec(memory_space=pl.ANY)   # w2: raw HBM ref, manual DMA
    in_specs = [vmem, vmem, vmem, hbm, vmem, vmem, vmem, vmem]

    flops = 2 * batch * (in_len * 1024 + 1024 * 256 + 256 * 64 + 64 * OUT_PAD)
    bytes_accessed = (
        sum(int(a.size) * a.dtype.itemsize for a in args) + batch * OUT_PAD * 4
    )
    transcendentals = 1024 + 256  # one rsqrt per BN feature

    return pl.pallas_call(
        _projection10_kernel,
        out_shape=jax.ShapeDtypeStruct((batch, OUT_PAD), jnp.float32),
        in_specs=in_specs,
        out_specs=vmem,
        scratch_shapes=[
            pltpu.VMEM((1024, 256), jnp.bfloat16),   # w2 landing buffer
            pltpu.SemaphoreType.DMA(()),
        ],
        cost_estimate=pl.CostEstimate(
            flops=flops,
            transcendentals=transcendentals,
            bytes_accessed=bytes_accessed,
        ),
        compiler_params=pltpu.CompilerParams(dimension_semantics=()),
    )(*args)


@jax.jit
def projection10_forward(x, params):
    """PyTorch semantics: [batch, in_len] -> [batch, 2].

    The unpad slice is inside the same jit as the kernel (no standalone XLA
    op); consumers that can work on the padded slab should use
    projection10_padded directly.
    """
    out = projection10_padded(x, params)
    return out[:, :OUT_FEATURES].reshape(-1, OUT_FEATURES)


def init_params(key, in_len):
    """Deterministic parameter init (PyTorch-style uniform fan-in bounds).

    Weight matrices stored as [in, out] (transposed vs torch) in bfloat16;
    biases / BN affine params stay float32, packed into small 2-D slabs.
    """
    dims = [(in_len, 1024), (1024, 256), (256, 64), (64, OUT_FEATURES)]
    raw = {}
    keys = jax.random.split(key, 2 * len(dims))
    for idx, (fan_in, fan_out) in enumerate(dims):
        bound = 1.0 / (fan_in ** 0.5)
        w = jax.random.uniform(
            keys[2 * idx], (fan_in, fan_out), jnp.float32, -bound, bound
        ).astype(jnp.bfloat16)
        b = jax.random.uniform(
            keys[2 * idx + 1], (fan_out,), jnp.float32, -bound, bound
        )
        raw[f"w{idx + 1}"] = w
        raw[f"b{idx + 1}"] = b

    # BatchNorm affine params (fresh init: gamma=1, beta=0), f32.
    g1, be1 = jnp.ones((1024,), jnp.float32), jnp.zeros((1024,), jnp.float32)
    g2, be2 = jnp.ones((256,), jnp.float32), jnp.zeros((256,), jnp.float32)

    params = {
        "w1": raw["w1"],
        "vecs1": jnp.stack([raw["b1"], g1, be1]),            # [3, 1024]
        "w2": raw["w2"],
        "vecs2": jnp.stack([raw["b2"], g2, be2]),            # [3, 256]
        "w3": raw["w3"],
        # Lane-dense padded final layer (zero columns beyond the 2 outputs).
        "w4p": jnp.zeros((64, OUT_PAD), jnp.bfloat16)
               .at[:, :OUT_FEATURES].set(raw["w4"]),
        "vecs3": jnp.zeros((2, OUT_PAD), jnp.float32)
                 .at[0, :64].set(raw["b3"])
                 .at[1, :OUT_FEATURES].set(raw["b4"]),
    }
    return params


def reference_forward(x, params):
    """Pure-JAX reference with the same bf16 matmul operands / f32 accumulation."""
    b1, g1, be1 = (params["vecs1"][0:1], params["vecs1"][1:2], params["vecs1"][2:3])
    b2, g2, be2 = (params["vecs2"][0:1], params["vecs2"][1:2], params["vecs2"][2:3])
    b3 = params["vecs3"][0:1, :64]
    w4 = params["w4p"][:, :OUT_FEATURES]
    b4 = params["vecs3"][1:2, :OUT_FEATURES]

    def bn(h, g, be):
        m = h.mean(0, keepdims=True)
        v = ((h - m) ** 2).mean(0, keepdims=True)
        return (h - m) / jnp.sqrt(v + BN_EPS) * g + be

    h = jnp.dot(x.astype(jnp.bfloat16), params["w1"],
                preferred_element_type=jnp.float32) + b1
    h = bn(jnp.maximum(h, 0.0), g1, be1)

    h = jnp.dot(h.astype(jnp.bfloat16), params["w2"],
                preferred_element_type=jnp.float32) + b2
    h = bn(jnp.maximum(h, 0.0), g2, be2)

    h = jnp.maximum(
        jnp.dot(h.astype(jnp.bfloat16), params["w3"],
                preferred_element_type=jnp.float32) + b3, 0.0)

    out = jnp.dot(h.astype(jnp.bfloat16), w4,
                  preferred_element_type=jnp.float32) + b4
    return out.reshape(-1, OUT_FEATURES)


if __name__ == "__main__":
    key = jax.random.PRNGKey(0)
    k_x, k_p = jax.random.split(key)

    batch, in_len = 128, 64  # in_len = pretrained output_len * 2
    x = jax.random.normal(k_x, (batch, in_len), jnp.float32)
    params = init_params(k_p, in_len)

    out = projection10_forward(x, params)
    jax.block_until_ready(out)

    ref = reference_forward(x, params)
    assert out.shape == (batch, OUT_FEATURES)
    assert jnp.allclose(out, ref, atol=2e-3, rtol=2e-3), "mismatch vs reference"

    print("KERNEL_OK")
</pallas_src>

<mosaic_0001>
module attributes {stable_mosaic.version = 11 : i64} {
  func.func @_projection10_kernel(%arg0: memref<128x64xf32, #tpu.memory_space<vmem>>, %arg1: memref<64x1024xbf16, #tpu.memory_space<vmem>>, %arg2: memref<3x1024xf32, #tpu.memory_space<vmem>>, %arg3: memref<1024x256xbf16, #tpu.memory_space<any>>, %arg4: memref<3x256xf32, #tpu.memory_space<vmem>>, %arg5: memref<256x64xbf16, #tpu.memory_space<vmem>>, %arg6: memref<64x128xbf16, #tpu.memory_space<vmem>>, %arg7: memref<2x128xf32, #tpu.memory_space<vmem>>, %arg8: memref<128x128xf32, #tpu.memory_space<vmem>>, %arg9: memref<1024x256xbf16, #tpu.memory_space<vmem>>, %arg10: memref<!tpu.dma_semaphore, #tpu.memory_space<semaphore_mem>>) attributes {dimension_semantics = [], scalar_prefetch = 0 : i64, scratch_operands = 2 : i64, tpu.core_type = #tpu.core_type<tc>} {
    tpu.enqueue_dma source(%arg3 : memref<1024x256xbf16, #tpu.memory_space<any>>) target(%arg9 : memref<1024x256xbf16, #tpu.memory_space<vmem>>) target_semaphore(%arg10 : memref<!tpu.dma_semaphore, #tpu.memory_space<semaphore_mem>>)
    %c0 = arith.constant 0 : index
    %c0_0 = arith.constant 0 : index
    %0 = vector.load %arg2[%c0, %c0_0] : memref<3x1024xf32, #tpu.memory_space<vmem>>, vector<3x1024xf32>
    %c0_1 = arith.constant 0 : index
    %c0_2 = arith.constant 0 : index
    %1 = vector.load %arg0[%c0_1, %c0_2] : memref<128x64xf32, #tpu.memory_space<vmem>>, vector<128x64xf32>
    %2 = arith.truncf %1 : vector<128x64xf32> to vector<128x64xbf16>
    %c0_3 = arith.constant 0 : index
    %c0_4 = arith.constant 0 : index
    %3 = vector.load %arg1[%c0_3, %c0_4] : memref<64x1024xbf16, #tpu.memory_space<vmem>>, vector<64x1024xbf16>
    %cst = arith.constant dense<0.000000e+00> : vector<128x1024xf32>
    %4 = tpu.matmul %2, %3, %cst {dimension_numbers = #tpu.dot_dimension_numbers<[1], [0], [0], [1], [0, 0, 1, 1], [], []>} : vector<128x64xbf16>, vector<64x1024xbf16>, vector<128x1024xf32> -> vector<128x1024xf32>
    %5 = vector.extract_strided_slice %0 {offsets = [0, 0], sizes = [1, 1024], strides = [1, 1]} : vector<3x1024xf32> to vector<1x1024xf32>
    %6 = vector.broadcast %5 : vector<1x1024xf32> to vector<128x1024xf32>
    %7 = arith.addf %4, %6 : vector<128x1024xf32>
    %cst_5 = arith.constant 0.000000e+00 : f32
    %8 = vector.broadcast %cst_5 : f32 to vector<128x1024xf32>
    %9 = arith.maximumf %7, %8 : vector<128x1024xf32>
    %10 = vector.extract_strided_slice %0 {offsets = [1, 0], sizes = [1, 1024], strides = [1, 1]} : vector<3x1024xf32> to vector<1x1024xf32>
    %11 = vector.extract_strided_slice %0 {offsets = [2, 0], sizes = [1, 1024], strides = [1, 1]} : vector<3x1024xf32> to vector<1x1024xf32>
    %cst_6 = arith.constant dense<0.000000e+00> : vector<1024xf32>
    %12 = vector.multi_reduction <add>, %9, %cst_6 [0] : vector<128x1024xf32> to vector<1024xf32>
    %13 = vector.shape_cast %12 : vector<1024xf32> to vector<1x1024xf32>
    %cst_7 = arith.constant 7.812500e-03 : f32
    %14 = vector.broadcast %cst_7 : f32 to vector<1x1024xf32>
    %15 = arith.mulf %13, %14 : vector<1x1024xf32>
    %16 = arith.mulf %9, %9 : vector<128x1024xf32>
    %cst_8 = arith.constant dense<0.000000e+00> : vector<1024xf32>
    %17 = vector.multi_reduction <add>, %16, %cst_8 [0] : vector<128x1024xf32> to vector<1024xf32>
    %18 = vector.shape_cast %17 : vector<1024xf32> to vector<1x1024xf32>
    %cst_9 = arith.constant 7.812500e-03 : f32
    %19 = vector.broadcast %cst_9 : f32 to vector<1x1024xf32>
    %20 = arith.mulf %18, %19 : vector<1x1024xf32>
    %21 = arith.mulf %15, %15 : vector<1x1024xf32>
    %22 = arith.subf %20, %21 : vector<1x1024xf32>
    %cst_10 = arith.constant 0.000000e+00 : f32
    %23 = vector.broadcast %cst_10 : f32 to vector<1x1024xf32>
    %24 = arith.maximumf %22, %23 : vector<1x1024xf32>
    %cst_11 = arith.constant 9.99999974E-6 : f32
    %25 = vector.broadcast %cst_11 : f32 to vector<1x1024xf32>
    %26 = arith.addf %24, %25 : vector<1x1024xf32>
    %27 = math.rsqrt %26 : vector<1x1024xf32>
    %28 = arith.mulf %10, %27 : vector<1x1024xf32>
    %29 = arith.mulf %15, %28 : vector<1x1024xf32>
    %30 = arith.subf %11, %29 : vector<1x1024xf32>
    %31 = vector.broadcast %28 : vector<1x1024xf32> to vector<128x1024xf32>
    %32 = arith.mulf %9, %31 : vector<128x1024xf32>
    %33 = vector.broadcast %30 : vector<1x1024xf32> to vector<128x1024xf32>
    %34 = arith.addf %32, %33 : vector<128x1024xf32>
    tpu.wait_dma2 semaphore(%arg10 : memref<!tpu.dma_semaphore, #tpu.memory_space<semaphore_mem>>) src(%arg3 : memref<1024x256xbf16, #tpu.memory_space<any>>) dst(%arg9 : memref<1024x256xbf16, #tpu.memory_space<vmem>>)
    %c0_12 = arith.constant 0 : index
    %c0_13 = arith.constant 0 : index
    %35 = vector.load %arg4[%c0_12, %c0_13] : memref<3x256xf32, #tpu.memory_space<vmem>>, vector<3x256xf32>
    %36 = arith.truncf %34 : vector<128x1024xf32> to vector<128x1024xbf16>
    %c0_14 = arith.constant 0 : index
    %c0_15 = arith.constant 0 : index
    %37 = vector.load %arg9[%c0_14, %c0_15] : memref<1024x256xbf16, #tpu.memory_space<vmem>>, vector<1024x256xbf16>
    %cst_16 = arith.constant dense<0.000000e+00> : vector<128x256xf32>
    %38 = tpu.matmul %36, %37, %cst_16 {dimension_numbers = #tpu.dot_dimension_numbers<[1], [0], [0], [1], [0, 0, 1, 1], [], []>} : vector<128x1024xbf16>, vector<1024x256xbf16>, vector<128x256xf32> -> vector<128x256xf32>
    %39 = vector.extract_strided_slice %35 {offsets = [0, 0], sizes = [1, 256], strides = [1, 1]} : vector<3x256xf32> to vector<1x256xf32>
    %40 = vector.broadcast %39 : vector<1x256xf32> to vector<128x256xf32>
    %41 = arith.addf %38, %40 : vector<128x256xf32>
    %cst_17 = arith.constant 0.000000e+00 : f32
    %42 = vector.broadcast %cst_17 : f32 to vector<128x256xf32>
    %43 = arith.maximumf %41, %42 : vector<128x256xf32>
    %44 = vector.extract_strided_slice %35 {offsets = [1, 0], sizes = [1, 256], strides = [1, 1]} : vector<3x256xf32> to vector<1x256xf32>
    %45 = vector.extract_strided_slice %35 {offsets = [2, 0], sizes = [1, 256], strides = [1, 1]} : vector<3x256xf32> to vector<1x256xf32>
    %cst_18 = arith.constant dense<0.000000e+00> : vector<256xf32>
    %46 = vector.multi_reduction <add>, %43, %cst_18 [0] : vector<128x256xf32> to vector<256xf32>
    %47 = vector.shape_cast %46 : vector<256xf32> to vector<1x256xf32>
    %cst_19 = arith.constant 7.812500e-03 : f32
    %48 = vector.broadcast %cst_19 : f32 to vector<1x256xf32>
    %49 = arith.mulf %47, %48 : vector<1x256xf32>
    %50 = arith.mulf %43, %43 : vector<128x256xf32>
    %cst_20 = arith.constant dense<0.000000e+00> : vector<256xf32>
    %51 = vector.multi_reduction <add>, %50, %cst_20 [0] : vector<128x256xf32> to vector<256xf32>
    %52 = vector.shape_cast %51 : vector<256xf32> to vector<1x256xf32>
    %cst_21 = arith.constant 7.812500e-03 : f32
    %53 = vector.broadcast %cst_21 : f32 to vector<1x256xf32>
    %54 = arith.mulf %52, %53 : vector<1x256xf32>
    %55 = arith.mulf %49, %49 : vector<1x256xf32>
    %56 = arith.subf %54, %55 : vector<1x256xf32>
    %cst_22 = arith.constant 0.000000e+00 : f32
    %57 = vector.broadcast %cst_22 : f32 to vector<1x256xf32>
    %58 = arith.maximumf %56, %57 : vector<1x256xf32>
    %cst_23 = arith.constant 9.99999974E-6 : f32
    %59 = vector.broadcast %cst_23 : f32 to vector<1x256xf32>
    %60 = arith.addf %58, %59 : vector<1x256xf32>
    %61 = math.rsqrt %60 : vector<1x256xf32>
    %62 = arith.mulf %44, %61 : vector<1x256xf32>
    %63 = arith.mulf %49, %62 : vector<1x256xf32>
    %64 = arith.subf %45, %63 : vector<1x256xf32>
    %65 = vector.broadcast %62 : vector<1x256xf32> to vector<128x256xf32>
    %66 = arith.mulf %43, %65 : vector<128x256xf32>
    %67 = vector.broadcast %64 : vector<1x256xf32> to vector<128x256xf32>
    %68 = arith.addf %66, %67 : vector<128x256xf32>
    %c0_24 = arith.constant 0 : index
    %c0_25 = arith.constant 0 : index
    %69 = vector.load %arg7[%c0_24, %c0_25] : memref<2x128xf32, #tpu.memory_space<vmem>>, vector<2x128xf32>
    %70 = arith.truncf %68 : vector<128x256xf32> to vector<128x256xbf16>
    %c0_26 = arith.constant 0 : index
    %c0_27 = arith.constant 0 : index
    %71 = vector.load %arg5[%c0_26, %c0_27] : memref<256x64xbf16, #tpu.memory_space<vmem>>, vector<256x64xbf16>
    %cst_28 = arith.constant dense<0.000000e+00> : vector<128x64xf32>
    %72 = tpu.matmul %70, %71, %cst_28 {dimension_numbers = #tpu.dot_dimension_numbers<[1], [0], [0], [1], [0, 0, 1, 1], [], []>} : vector<128x256xbf16>, vector<256x64xbf16>, vector<128x64xf32> -> vector<128x64xf32>
    %73 = vector.extract_strided_slice %69 {offsets = [0, 0], sizes = [1, 64], strides = [1, 1]} : vector<2x128xf32> to vector<1x64xf32>
    %74 = vector.broadcast %73 : vector<1x64xf32> to vector<128x64xf32>
    %75 = arith.addf %72, %74 : vector<128x64xf32>
    %cst_29 = arith.constant 0.000000e+00 : f32
    %76 = vector.broadcast %cst_29 : f32 to vector<128x64xf32>
    %77 = arith.maximumf %75, %76 : vector<128x64xf32>
    %78 = arith.truncf %77 : vector<128x64xf32> to vector<128x64xbf16>
    %c0_30 = arith.constant 0 : index
    %c0_31 = arith.constant 0 : index
    %79 = vector.load %arg6[%c0_30, %c0_31] : memref<64x128xbf16, #tpu.memory_space<vmem>>, vector<64x128xbf16>
    %cst_32 = arith.constant dense<0.000000e+00> : vector<128x128xf32>
    %80 = tpu.matmul %78, %79, %cst_32 {dimension_numbers = #tpu.dot_dimension_numbers<[1], [0], [0], [1], [0, 0, 1, 1], [], []>} : vector<128x64xbf16>, vector<64x128xbf16>, vector<128x128xf32> -> vector<128x128xf32>
    %81 = vector.extract_strided_slice %69 {offsets = [1, 0], sizes = [1, 128], strides = [1, 1]} : vector<2x128xf32> to vector<1x128xf32>
    %82 = vector.broadcast %81 : vector<1x128xf32> to vector<128x128xf32>
    %83 = arith.addf %80, %82 : vector<128x128xf32>
    %c0_33 = arith.constant 0 : index
    %c0_34 = arith.constant 0 : index
    %84 = vector.load %arg8[%c0_33, %c0_34] : memref<128x128xf32, #tpu.memory_space<vmem>>, vector<128x128xf32>
    tpu.vector_store %arg8[%c0_33, %c0_34], %83 {strides = array<i32>} : memref<128x128xf32, #tpu.memory_space<vmem>>, vector<128x128xf32>,
    return
  }
}

</mosaic_0001>

<bundles_post_ra>
// kernel: projection10_forward.1
= control target key start
LH: loop header
LB: loop body
LE: loop exit
PB: predicated region body
PF: predicated region fallthrough
CT: control target
= control target key end

     0   :  { %v4552_v3 = vmov 0   ;;  %vm335_vm0 = vcmask 523264   ;;  %s4553_s23 = smov [#allocation2]   ;;  %s7061_s1 = inlined_call_operand.vmem [shape: bf16[64,1024], index: 1, kind: input, shape index: {}]   ;;  %s7062_s0 = inlined_call_operand.vmem [shape: f32[128,64], index: 0, kind: input, shape index: {}]   ;;  %s7063_s2 = inlined_call_operand.vmem [shape: f32[3,1024], index: 2, kind: input, shape index: {}]   ;;  %s7064_s3 = inlined_call_operand.hbm [shape: bf16[1024,256], index: 3, kind: input, shape index: {}]   ;;  %s7065_s4 = inlined_call_operand.vmem [shape: f32[3,256], index: 4, kind: input, shape index: {}]   ;;  %s7066_s5 = inlined_call_operand.vmem [shape: bf16[256,64], index: 5, kind: input, shape index: {}]   ;;  %s7067_s6 = inlined_call_operand.vmem [shape: bf16[64,128], index: 6, kind: input, shape index: {}]   ;;  %s7068_s7 = inlined_call_operand.vmem [shape: f32[2,128], index: 7, kind: input, shape index: {}]   ;;  %s7069_s8 = inlined_call_operand.vmem [shape: f32[128,128], index: 8, kind: output, shape index: {}]  }
   0x1   :  { %v91_v0 = vld [vmem:[%s7061_s1 + $0xc0] sm:$0xff]  ;;  %392 = vmatprep.mubr.bf16.mxu0 %v4552_v3  ;;  %452 = vmatprep.mubr.bf16.mxu1 %v4552_v3  ;;  %v92_v16 = vld [vmem:[%s7061_s1 + $0xc8] sm:$0xff]  ;;  %v93_v18 = vld [vmem:[%s7061_s1 + $0xd0] sm:$0xff]  ;;  %s35_s24 = sshll.u32 %s4553_s23, 4  ;;  %s36_s24 = int_to_ptr.vmem [resolvable:$true] %s35_s24 }
   0x2   :  { %v95_v1 = vld [vmem:[%s7061_s1 + $0xe0] sm:$0xff]  ;;  %v96_v17 = vld [vmem:[%s7061_s1 + $0xe8] sm:$0xff]  ;;  %v97_v20 = vld [vmem:[%s7061_s1 + $0xf0] sm:$0xff]  ;;  %s4538_s25 = scalar_lea.vmem %s36_s24, 16384  ;;  %p4543_p1 = scmp.lt.s32.totalorder %s36_s24, %s36_s24 }
   0x3   :  { %v83_v2 = vld [vmem:[%s7061_s1 + $0x80] sm:$0xff]  ;;  %v3988_v4 = vcombine.high %v91_v0, %v95_v1  ;;  %v3987_v5 = vcombine.low %v91_v0, %v95_v1  ;;  %v44_v22 = vld [vmem:[%s7062_s0 + $0x8] sm:$0xff]  ;;  %v3990_v25 = vcombine.high %v92_v16, %v96_v17  ;;  %v3992_v26 = vcombine.high %v93_v18, %v97_v20  ;;  %v85_v32 = vld [vmem:[%s7061_s1 + $0x90] sm:$0xff]  ;;  %p4539_p0 = scmp.ne.s32.totalorder %s36_s24, %s4538_s25  ;;  %p4544_p2 = scmp.lt.s32.totalorder %s4538_s25, %s4538_s25 }
   0x4   :  { %v87_v6 = vld [vmem:[%s7061_s1 + $0xa0] sm:$0xff]  ;;  %v56_v24 = vld [vmem:[%s7062_s0 + $0x68] sm:$0xff]  ;;  %v3989_v31 = vcombine.low %v92_v16, %v96_v17  ;;  %v89_v33 = vld [vmem:[%s7061_s1 + $0xb0] sm:$0xff]  ;;  %v3991_v37 = vcombine.low %v93_v18, %v97_v20 }
   0x5   :  { %v3980_v7 = vcombine.high %v83_v2, %v87_v6  ;;  %v75_v8 = vld [vmem:[%s7061_s1 + $0x40] sm:$0xff]  ;;  %368 = vmatprep.subr.bf16.mxu0 %v3988_v4  ;;  %4284 = vmatprep.subr.bf16.mxu1 %v3988_v4  ;;  %v3979_v10 = vcombine.low %v83_v2, %v87_v6  ;;  %v84_v27 = vld [vmem:[%s7061_s1 + $0x88] sm:$0xff]  ;;  %v45_v38 = vld [vmem:[%s7062_s0 + $0x10] sm:$0xff]  ;;  %v3984_v39 = vcombine.high %v85_v32, %v89_v33  ;;  %p4545_p3 = por %p4544_p2, %p4543_p1 }
   0x6   :  { %v79_v9 = vld [vmem:[%s7061_s1 + $0x60] sm:$0xff]  ;;  %369 = vmatpush1.bf16.msra.mxu0 %v3987_v5  ;;  %4288 = vmatpush1.bf16.msra.mxu1 %v3987_v5  ;;  %v88_v28 = vld [vmem:[%s7061_s1 + $0xa8] sm:$0xff]  ;;  %v46_v41 = vld [vmem:[%s7062_s0 + $0x18] sm:$0xff]  ;;  %v3983_v47 = vcombine.low %v85_v32, %v89_v33 }
   0x7   :  { %370 = vmatprep.subr.bf16.mxu0 %v3980_v7  ;;  %4285 = vmatprep.subr.bf16.mxu1 %v3980_v7  ;;  %v3972_v11 = vcombine.high %v75_v8, %v79_v9  ;;  %v67_v12 = vld [vmem:[%s7061_s1] sm:$0xff]  ;;  %v3971_v14 = vcombine.low %v75_v8, %v79_v9  ;;  %v3982_v34 = vcombine.high %v84_v27, %v88_v28  ;;  %v76_v35 = vld [vmem:[%s7061_s1 + $0x48] sm:$0xff]  ;;  %v57_v42 = vld [vmem:[%s7062_s0 + $0x70] sm:$0xff]  ;;  %p4546_p4 = pnand %p4545_p3, %p4539_p0 }
   0x8   :  { %v71_v13 = vld [vmem:[%s7061_s1 + $0x20] sm:$0xff]  ;;  %v80_v36 = vld [vmem:[%s7061_s1 + $0x68] sm:$0xff]  ;;  %v3981_v40 = vcombine.low %v84_v27, %v88_v28  ;;  %v58_v43 = vld [vmem:[%s7062_s0 + $0x78] sm:$0xff]  ;;  %v4695_v48 = vpack.c.bf16 %v46_v41, %v45_v38 }
   0x9   :  { %v3964_v15 = vcombine.high %v67_v12, %v71_v13  ;;  %v43_v19 = vld [vmem:[%s7062_s0] sm:$0xff]  ;;  %v3963_v21 = vcombine.low %v67_v12, %v71_v13  ;;  %v3974_v44 = vcombine.high %v76_v35, %v80_v36  ;;  %v68_v45 = vld [vmem:[%s7061_s1 + $0x8] sm:$0xff]  ;;  %v4697_v49 = vpack.c.bf16 %v58_v43, %v57_v42  ;;  %v77_v50 = vld [vmem:[%s7061_s1 + $0x50] sm:$0xff] }
   0xa   :  { %371 = vmatpush1.bf16.msra.mxu0 %v3979_v10  ;;  %4289 = vmatpush1.bf16.msra.mxu1 %v3979_v10  ;;  %v55_v23 = vld [vmem:[%s7062_s0 + $0x60] sm:$0xff]  ;;  %v4655_v29 = vpack.c.bf16 %v44_v22, %v43_v19  ;;  %v72_v46 = vld [vmem:[%s7061_s1 + $0x28] sm:$0xff]  ;;  %v81_v51 = vld [vmem:[%s7061_s1 + $0x70] sm:$0xff]  ;;  %v3973_v52 = vcombine.low %v76_v35, %v80_v36 }
   0xb   :  { %372 = vmatprep.subr.bf16.mxu0 %v3972_v11  ;;  %4286 = vmatprep.subr.bf16.mxu1 %v3972_v11  ;;  %v4657_v30 = vpack.c.bf16 %v56_v24, %v55_v23  ;;  %v3966_v53 = vcombine.high %v68_v45, %v72_v46  ;;  %v69_v54 = vld [vmem:[%s7061_s1 + $0x10] sm:$0xff]  ;;  %v94_v56 = vld [vmem:[%s7061_s1 + $0xd8] sm:$0xff]  ;;  %v3976_v58 = vcombine.high %v77_v50, %v81_v51  ;;  %v47_v61 = vld [vmem:[%s7062_s0 + $0x20] sm:$0xff] }
   0xc   :  { %v73_v55 = vld [vmem:[%s7061_s1 + $0x30] sm:$0xff]  ;;  %v98_v57 = vld [vmem:[%s7061_s1 + $0xf8] sm:$0xff]  ;;  %v3975_v59 = vcombine.low %v77_v50, %v81_v51  ;;  %v3965_v60 = vcombine.low %v68_v45, %v72_v46  ;;  %v48_v62 = vld [vmem:[%s7062_s0 + $0x28] sm:$0xff] }
   0xd   :  { %v3968_v63 = vcombine.high %v69_v54, %v73_v55  ;;  %v3994_v0 = vcombine.high %v94_v56, %v98_v57  ;;  %v86_v1 = vld [vmem:[%s7061_s1 + $0x98] sm:$0xff]  ;;  %v4735_v4 = vpack.c.bf16 %v48_v62, %v47_v61  ;;  %v3993_v5 = vcombine.low %v94_v56, %v98_v57  ;;  %v49_v10 = vld [vmem:[%s7062_s0 + $0x30] sm:$0xff]  ;;  %v51_v19 = vld [vmem:[%s7062_s0 + $0x40] sm:$0xff] }
   0xe   :  { %373 = vmatpush1.bf16.msra.mxu0 %v3971_v14  ;;  %4290 = vmatpush1.bf16.msra.mxu1 %v3971_v14  ;;  %v90_v2 = vld [vmem:[%s7061_s1 + $0xb8] sm:$0xff]  ;;  %v3967_v7 = vcombine.low %v69_v54, %v73_v55  ;;  %v52_v20 = vld [vmem:[%s7062_s0 + $0x48] sm:$0xff]  ;;  %v53_v23 = vld [vmem:[%s7062_s0 + $0x50] sm:$0xff] }
   0xf   :  { %374 = vmatprep.subr.bf16.mxu0 %v3964_v15  ;;  %4287 = vmatprep.subr.bf16.mxu1 %v3964_v15  ;;  %v3986_v6 = vcombine.high %v86_v1, %v90_v2  ;;  %v78_v8 = vld [vmem:[%s7061_s1 + $0x58] sm:$0xff]  ;;  %v3985_v12 = vcombine.low %v86_v1, %v90_v2  ;;  %v63_v22 = vpack.c.bf16 %v52_v20, %v51_v19 }
  0x10   :  { %v82_v9 = vld [vmem:[%s7061_s1 + $0x78] sm:$0xff] }
  0x11   :  { %v50_v11 = vld [vmem:[%s7062_s0 + $0x38] sm:$0xff]  ;;  %v3978_v13 = vcombine.high %v78_v8, %v82_v9  ;;  %v3977_v17 = vcombine.low %v78_v8, %v82_v9 }
  0x12   :  { %375 = vmatpush1.bf16.msra.mxu0 %v3963_v21  ;;  %4291 = vmatpush1.bf16.msra.mxu1 %v3963_v21  ;;  %v62_v14 = vpack.c.bf16 %v50_v11, %v49_v10  ;;  %v70_v15 = vld [vmem:[%s7061_s1 + $0x18] sm:$0xff] }
  0x13   :  { %481 = vmatprep.subr.bf16.mxu1 %v3990_v25  ;;  %594 = vmatprep.subr.bf16.mxu0 %v3992_v26  ;;  %v74_v16 = vld [vmem:[%s7061_s1 + $0x38] sm:$0xff]  ;;  %v103_v26 = vlaneseq }
  0x14   :  { %v3970_v18 = vcombine.high %v70_v15, %v74_v16  ;;  %v3969_v21 = vcombine.low %v70_v15, %v74_v16  ;;  %v54_v24 = vld [vmem:[%s7062_s0 + $0x58] sm:$0xff] }
  0x15   :  { %3995 = vmatmul.mubr.msk.bf16.vlgmr.msra.gmra.mxu0 %vm335_vm0, %v4655_v29  ;;  %4001 = vmatmul.mubr.msk.bf16.vlgmr.msra.gmra.mxu1 %vm335_vm0, %v4657_v30  ;;  %v64_v25 = vpack.c.bf16 %v54_v24, %v53_v23  ;;  %v104_v27 = vshrl.u32 %v103_v26, 7  ;;  %v42_v46 = vld [vmem:[%s7063_s2 + $0x18] sm:$0x77] }
  0x16   :  { %482 = vmatpush1.bf16.msra.mxu1 %v3989_v31  ;;  %402 = vmatprep.mubr.bf16.mxu0 %v4552_v3 }
  0x17   :  { %483 = vmatprep.subr.bf16.mxu1 %v3982_v34  ;;  %462 = vmatprep.mubr.bf16.mxu1 %v4552_v3  ;;  %v4837_v28 = vsub.s32 0, %v104_v27  ;;  %v4842_v31 = vsub.s32 4, %v104_v27  ;;  %v41_v34 = vld [vmem:[%s7063_s2 + $0x10] sm:$0x77]  ;;  %v4879_v55 = vsub.s32 1, %v104_v27 }
  0x18   :  { %595 = vmatpush1.bf16.msra.mxu0 %v3991_v37 }
  0x19   :  { %596 = vmatprep.subr.bf16.mxu0 %v3984_v39  ;;  %7198 = vst [vmem:[#allocation9_spill] sm:$0xff] %v4837_v28  ;;  %7199 = vst [vmem:[#allocation10_spill] sm:$0xff] %v4842_v31  ;;  %v122_v42 = vrot.slane %v41_v34, %v4837_v28  ;;  %v126_v43 = vrot.slane %v41_v34, %v4842_v31  ;;  %v134_v15 = vrot.slane %v42_v46, %v4842_v31 }
  0x1a   :  { %484 = vmatpush1.bf16.msra.mxu1 %v3981_v40  ;;  %7200 = vst [vmem:[#allocation11_spill] sm:$0xff] %v4879_v55 }
  0x1b   :  { %485 = vmatprep.subr.bf16.mxu1 %v3974_v44  ;;  %v4882_v56 = vrot.slane %v122_v42, %v4837_v28  ;;  %v4885_v57 = vrot.slane %v126_v43, %v4837_v28 }
  0x1c   :  { %597 = vmatpush1.bf16.msra.mxu0 %v3983_v47 }
  0x1d   :  { %3996 = vmatmul.mubr.msk.bf16.gmra.mxu0 %vm335_vm0, %v4695_v48  ;;  %4002 = vmatmul.mubr.msk.bf16.gmra.mxu1 %vm335_vm0, %v4697_v49 }
  0x1e   :  { %486 = vmatpush1.bf16.msra.mxu1 %v3973_v52  ;;  %412 = vmatprep.mubr.bf16.mxu0 %v4552_v3 }
  0x1f   :  { %487 = vmatprep.subr.bf16.mxu1 %v3966_v53  ;;  %505 = vmatprep.mubr.bf16.mxu1 %v4552_v3 }
  0x20   :  { %598 = vmatprep.subr.bf16.mxu0 %v3976_v58  ;;  %v130_v58 = vrot.slane %v42_v46, %v4837_v28 }
  0x21   :  { %599 = vmatpush1.bf16.msra.mxu0 %v3975_v59 }
  0x22   :  { %488 = vmatpush1.bf16.msra.mxu1 %v3965_v60  ;;  %600 = vmatprep.subr.bf16.mxu0 %v3968_v63  ;;  %v4891_v63 = vsub.s32 5, %v104_v27 }
  0x23   :  { %707 = vmatprep.subr.bf16.mxu1 %v3994_v0  ;;  %v4893_v0 = vsub.s32 2, %v104_v27 }
  0x24   :  { %7201 = vst [vmem:[#allocation12_spill] sm:$0xff] %v4891_v63 }
  0x25   :  { %3997 = vmatmul.mubr.msk.bf16.gmra.mxu0 %vm335_vm0, %v4735_v4  ;;  %4003 = vmatmul.mubr.msk.bf16.vlgmr.msra.gmra.mxu1 %vm335_vm0, %v4655_v29  ;;  %7202 = vst [vmem:[#allocation13_spill] sm:$0xff] %v4893_v0 }
  0x26   :  { %708 = vmatpush1.bf16.msra.mxu1 %v3993_v5  ;;  %422 = vmatprep.mubr.bf16.mxu0 %v4552_v3  ;;  %v4899_v5 = vsub.s32 6, %v104_v27 }
  0x27   :  { %515 = vmatprep.mubr.bf16.mxu1 %v4552_v3  ;;  %709 = vmatprep.subr.bf16.mxu1 %v3986_v6 }
  0x28   :  { %601 = vmatpush1.bf16.msra.mxu0 %v3967_v7  ;;  %7203 = vst [vmem:[#allocation14_spill] sm:$0xff] %v4899_v5 }
  0x2a   :  { %710 = vmatpush1.bf16.msra.mxu1 %v3985_v12 }
  0x2b   :  { %711 = vmatprep.subr.bf16.mxu1 %v3978_v13 }
  0x2d   :  { %3998 = vmatmul.mubr.msk.bf16.gmra.mxu0 %vm335_vm0, %v62_v14  ;;  %4004 = vmatmul.mubr.msk.bf16.gmra.mxu1 %vm335_vm0, %v4695_v48 }
  0x2e   :  { %432 = vmatprep.mubr.bf16.mxu0 %v4552_v3  ;;  %525 = vmatprep.mubr.bf16.mxu1 %v4552_v3 }
  0x2f   :  { %712 = vmatpush1.bf16.msra.mxu1 %v3977_v17 }
  0x30   :  { %713 = vmatprep.subr.bf16.mxu1 %v3970_v18 }
  0x33   :  { %714 = vmatpush1.bf16.msra.mxu1 %v3969_v21 }
  0x35   :  { %3999 = vmatmul.mubr.msk.bf16.gmra.mxu0 %vm335_vm0, %v63_v22  ;;  %4005 = vmatmul.mubr.msk.bf16.gmra.mxu1 %vm335_vm0, %v4735_v4 }
  0x36   :  { %442 = vmatprep.mubr.bf16.mxu0 %v4552_v3  ;;  %535 = vmatprep.mubr.bf16.mxu1 %v4552_v3 }
  0x3d   :  { %4000 = vmatmul.mubr.msk.bf16.gmra.mxu0 %vm335_vm0, %v64_v25  ;;  %4006 = vmatmul.mubr.msk.bf16.gmra.mxu1 %vm335_vm0, %v62_v14 }
  0x3e   :  { %545 = vmatprep.mubr.bf16.mxu1 %v4552_v3  ;;  %618 = vmatprep.mubr.bf16.mxu0 %v4552_v3 }
  0x45   :  { %4007 = vmatmul.mubr.msk.bf16.gmra.mxu1 %vm335_vm0, %v63_v22  ;;  %4011 = vmatmul.mubr.msk.bf16.vlgmr.msra.gmra.mxu0 %vm335_vm0, %v4655_v29 }
  0x46   :  { %555 = vmatprep.mubr.bf16.mxu1 %v4552_v3  ;;  %628 = vmatprep.mubr.bf16.mxu0 %v4552_v3 }
  0x4d   :  { %4008 = vmatmul.mubr.msk.bf16.gmra.mxu1 %vm335_vm0, %v64_v25  ;;  %4012 = vmatmul.mubr.msk.bf16.gmra.mxu0 %vm335_vm0, %v4695_v48 }
  0x4e   :  { %565 = vmatprep.mubr.bf16.mxu1 %v4552_v3  ;;  %638 = vmatprep.mubr.bf16.mxu0 %v4552_v3 }
  0x55   :  { %4009 = vmatmul.mubr.msk.bf16.gmra.mxu1 %vm335_vm0, %v4657_v30  ;;  %4013 = vmatmul.mubr.msk.bf16.gmra.mxu0 %vm335_vm0, %v4735_v4 }
  0x56   :  { %575 = vmatprep.mubr.bf16.mxu1 %v4552_v3  ;;  %648 = vmatprep.mubr.bf16.mxu0 %v4552_v3 }
  0x5d   :  { %4010 = vmatmul.mubr.msk.bf16.gmra.mxu1 %vm335_vm0, %v4697_v49  ;;  %4014 = vmatmul.mubr.msk.bf16.gmra.mxu0 %vm335_vm0, %v62_v14 }
  0x5e   :  { %658 = vmatprep.mubr.bf16.mxu0 %v4552_v3  ;;  %731 = vmatprep.mubr.bf16.mxu1 %v4552_v3 }
  0x65   :  { %4015 = vmatmul.mubr.msk.bf16.gmra.mxu0 %vm335_vm0, %v63_v22  ;;  %4019 = vmatmul.mubr.msk.bf16.vlgmr.msra.gmra.mxu1 %vm335_vm0, %v4655_v29  ;;  %v39_v29 = vld [vmem:[%s7063_s2] sm:$0x77] }
  0x66   :  { %668 = vmatprep.mubr.bf16.mxu0 %v4552_v3  ;;  %741 = vmatprep.mubr.bf16.mxu1 %v4552_v3  ;;  %v106_v32 = vrot.slane %v39_v29, %v4837_v28  ;;  %v110_v33 = vrot.slane %v39_v29, %v4842_v31 }
  0x68   :  { %v4856_v35 = vrot.slane %v110_v33, %v4837_v28 }
  0x6d   :  { %4016 = vmatmul.mubr.msk.bf16.gmra.mxu0 %vm335_vm0, %v64_v25  ;;  %4020 = vmatmul.mubr.msk.bf16.gmra.mxu1 %vm335_vm0, %v4695_v48 }
  0x6e   :  { %678 = vmatprep.mubr.bf16.mxu0 %v4552_v3  ;;  %751 = vmatprep.mubr.bf16.mxu1 %v4552_v3 }
  0x75   :  { %4017 = vmatmul.mubr.msk.bf16.gmra.mxu0 %vm335_vm0, %v4657_v30  ;;  %4021 = vmatmul.mubr.msk.bf16.gmra.mxu1 %vm335_vm0, %v4735_v4 }
  0x76   :  { %688 = vmatprep.mubr.bf16.mxu0 %v4552_v3  ;;  %761 = vmatprep.mubr.bf16.mxu1 %v4552_v3 }
  0x7d   :  { %4018 = vmatmul.mubr.msk.bf16.gmra.mxu0 %vm335_vm0, %v4697_v49  ;;  %4022 = vmatmul.mubr.msk.bf16.gmra.mxu1 %vm335_vm0, %v62_v14  ;;  %v4914_v14 = vrot.slane %v130_v58, %v4837_v28 }
  0x7e   :  { %771 = vmatprep.mubr.bf16.mxu1 %v4552_v3 }
  0x7f   :  { %7204 = vst [vmem:[#allocation15_spill] sm:$0xff] %v4914_v14 }
  0x85   :  { %4023 = vmatmul.mubr.msk.bf16.gmra.mxu1 %vm335_vm0, %v63_v22 }
  0x86   :  { %781 = vmatprep.mubr.bf16.mxu1 %v4552_v3 }
  0x8d   :  { %4024 = vmatmul.mubr.msk.bf16.gmra.mxu1 %vm335_vm0, %v64_v25 }
  0x8e   :  { %791 = vmatprep.mubr.bf16.mxu1 %v4552_v3 }
  0x95   :  { %4025 = vmatmul.mubr.msk.bf16.gmra.mxu1 %vm335_vm0, %v4657_v30  ;;  %v4847_v30 = vrot.slane %v106_v32, %v4837_v28 }
  0x96   :  { %801 = vmatprep.mubr.bf16.mxu1 %v4552_v3  ;;  %v40_v3 = vld [vmem:[%s7063_s2 + $0x8] sm:$0x77] }
  0x97   :  { %v114_v38 = vrot.slane %v40_v3, %v4837_v28  ;;  %v118_v39 = vrot.slane %v40_v3, %v4842_v31 }
  0x99   :  { %v4874_v53 = vrot.slane %v114_v38, %v4837_v28  ;;  %v4877_v54 = vrot.slane %v118_v39, %v4837_v28  ;;  %v4944_v38 = vrot.slane %v134_v15, %v4837_v28 }
  0x9b   :  { %7206 = vst [vmem:[#allocation17_spill] sm:$0xff] %v4944_v38 }
  0x9d   :  { %4026 = vmatmul.mubr.msk.bf16.gmra.mxu1 %vm335_vm0, %v4697_v49 }
  0xd5   :  { %v394_v36 = vpop.f32.mrf.mxu0  ;;  %v454_v37 = vpop.f32.mrf.mxu1 }
  0xd6   :  { %v395_v40 = vadd.f32 %v394_v36, %v4847_v30  ;;  %v455_v41 = vadd.f32 %v454_v37, %v4847_v30 }
  0xd7   :  { %v396_v44 = vpop.f32.mrf.mxu0  ;;  %v456_v45 = vpop.f32.mrf.mxu1 }
  0xd8   :  { %v397_v47 = vadd.f32 %v396_v44, %v4856_v35  ;;  %v457_v48 = vadd.f32 %v456_v45, %v4856_v35  ;;  %v4869_v49 = vmax.f32 %v395_v40, 0.0  ;;  %v4871_v50 = vmax.f32 %v455_v41, 0.0 }
  0xd9   :  { %v398_v51 = vpop.f32.mrf.mxu0  ;;  %v458_v52 = vpop.f32.mrf.mxu1 }
  0xda   :  { %v4888_v59 = vmax.f32 %v397_v47, 0.0  ;;  %v399_v60 = vadd.f32 %v398_v51, %v4847_v30  ;;  %v4895_v1 = vmax.f32 %v457_v48, 0.0  ;;  %v459_v2 = vadd.f32 %v458_v52, %v4847_v30 }
  0xdb   :  { %v400_v61 = vpop.f32.mrf.mxu0  ;;  %v460_v62 = vpop.f32.mrf.mxu1  ;;  %v1116_v6 = vmul.f32 %v4869_v49, %v4869_v49  ;;  %v4905_v7 = vmul.f32 %v4871_v50, %v4871_v50 }
  0xdc   :  { %v401_v4 = vadd.f32 %v400_v61, %v4856_v35  ;;  %v4907_v8 = vmax.f32 %v399_v60, 0.0  ;;  %v461_v9 = vadd.f32 %v460_v62, %v4856_v35  ;;  %v1117_v16 = vmul.f32 %v4888_v59, %v4888_v59 }
  0xdd   :  { %v404_v10 = vpop.f32.mrf.mxu0  ;;  %v464_v11 = vpop.f32.mrf.mxu1  ;;  %v4926_v22 = vmul.f32 %v4895_v1, %v4895_v1  ;;  %v4928_v23 = vmax.f32 %v459_v2, 0.0 }
  0xde   :  { %v4910_v12 = vmax.f32 %v401_v4, 0.0  ;;  %v405_v13 = vadd.f32 %v404_v10, %v4847_v30  ;;  %v940_v17 = vadd.f32 %v4907_v8, %v4869_v49  ;;  %v1124_v18 = vmul.f32 %v4907_v8, %v4907_v8 }
  0xdf   :  { %v465_v19 = vadd.f32 %v464_v11, %v4847_v30  ;;  %v406_v20 = vpop.f32.mrf.mxu0  ;;  %v466_v21 = vpop.f32.mrf.mxu1  ;;  %v4934_v27 = vmax.f32 %v461_v9, 0.0  ;;  %v4959_v51 = vmul.f32 %v4928_v23, %v4928_v23 }
  0xe0   :  { %v1125_v24 = vmul.f32 %v4910_v12, %v4910_v12  ;;  %v4932_v25 = vmax.f32 %v405_v13, 0.0  ;;  %v1244_v26 = vadd.f32 %v1124_v18, %v1116_v6  ;;  %v407_v29 = vadd.f32 %v406_v20, %v4856_v35 }
  0xe1   :  { %v467_v32 = vadd.f32 %v466_v21, %v4856_v35  ;;  %v408_v33 = vpop.f32.mrf.mxu0  ;;  %v468_v3 = vpop.f32.mrf.mxu1  ;;  %v961_v34 = vadd.f32 %v4910_v12, %v4888_v59  ;;  %v4947_v41 = vmax.f32 %v465_v19, 0.0  ;;  %v4963_v52 = vmul.f32 %v4934_v27, %v4934_v27 }
  0xe2   :  { %7205 = vst [vmem:[#allocation16_spill] sm:$0xff] %v4932_v25  ;;  %v1132_v36 = vmul.f32 %v4932_v25, %v4932_v25  ;;  %v409_v37 = vadd.f32 %v408_v33, %v4847_v30  ;;  %v1265_v39 = vadd.f32 %v1125_v24, %v1117_v16  ;;  %v941_v40 = vadd.f32 %v940_v17, %v4932_v25 }
  0xe3   :  { %v4949_v42 = vmax.f32 %v407_v29, 0.0  ;;  %v410_v43 = vpop.f32.mrf.mxu0  ;;  %v470_v44 = vpop.f32.mrf.mxu1  ;;  %v4951_v45 = vmax.f32 %v467_v32, 0.0  ;;  %v469_v47 = vadd.f32 %v468_v3, %v4847_v30  ;;  %v4975_v10 = vmul.f32 %v4947_v41, %v4947_v41 }
  0xe4   :  { %v4953_v46 = vmax.f32 %v409_v37, 0.0  ;;  %v411_v48 = vadd.f32 %v410_v43, %v4856_v35  ;;  %v1245_v58 = vadd.f32 %v1244_v26, %v1132_v36  ;;  %v471_v9 = vadd.f32 %v470_v44, %v4856_v35 }
  0xe5   :  { %7207 = vst [vmem:[#allocation18_spill] sm:$0xff] %v4949_v42  ;;  %v1133_v60 = vmul.f32 %v4949_v42, %v4949_v42  ;;  %v414_v61 = vpop.f32.mrf.mxu0  ;;  %v507_v62 = vpop.f32.mrf.mxu1  ;;  %v962_v2 = vadd.f32 %v961_v34, %v4949_v42  ;;  %v4981_v18 = vmul.f32 %v4951_v45, %v4951_v45  ;;  %v4984_v20 = vmax.f32 %v469_v47, 0.0 }
  0xe6   :  { %7208 = vst [vmem:[#allocation19_spill] sm:$0xff] %v4953_v46  ;;  %v1140_v4 = vmul.f32 %v4953_v46, %v4953_v46  ;;  %v4970_v6 = vmax.f32 %v411_v48, 0.0  ;;  %v415_v13 = vadd.f32 %v414_v61, %v4847_v30  ;;  %v508_v15 = vadd.f32 %v507_v62, %v4874_v53 }
  0xe7   :  { %v1266_v11 = vadd.f32 %v1265_v39, %v1133_v60  ;;  %v416_v16 = vpop.f32.mrf.mxu0  ;;  %v509_v17 = vpop.f32.mrf.mxu1  ;;  %v942_v19 = vadd.f32 %v941_v40, %v4953_v46  ;;  %7210 = vst [vmem:[#allocation21_spill] sm:$0xff] %v4984_v20  ;;  %v4993_v36 = vmax.f32 %v471_v9, 0.0 }
  0xe8   :  { %7209 = vst [vmem:[#allocation20_spill] sm:$0xff] %v4970_v6  ;;  %v1141_v21 = vmul.f32 %v4970_v6, %v4970_v6  ;;  %v1246_v24 = vadd.f32 %v1245_v58, %v1140_v4  ;;  %v4988_v26 = vmax.f32 %v415_v13, 0.0  ;;  %v417_v29 = vadd.f32 %v416_v16, %v4856_v35 }
  0xe9   :  { %v510_v32 = vadd.f32 %v509_v17, %v4877_v54  ;;  %v418_v33 = vpop.f32.mrf.mxu0  ;;  %v511_v3 = vpop.f32.mrf.mxu1  ;;  %v963_v34 = vadd.f32 %v962_v2, %v4970_v6  ;;  %7212 = vst [vmem:[#allocation23_spill] sm:$0xff] %v4993_v36  ;;  %v4999_v44 = vmax.f32 %v508_v15, 0.0  ;;  %v5016_v17 = vmul.f32 %v4984_v20, %v4984_v20 }
  0xea   :  { %7211 = vst [vmem:[#allocation22_spill] sm:$0xff] %v4988_v26  ;;  %v419_v37 = vadd.f32 %v418_v33, %v4847_v30  ;;  %v512_v39 = vadd.f32 %v511_v3, %v4874_v53  ;;  %v1267_v40 = vadd.f32 %v1266_v11, %v1141_v21  ;;  %v1148_v43 = vmul.f32 %v4988_v26, %v4988_v26 }
  0xeb   :  { %7213 = vst [vmem:[#allocation24_spill] sm:$0xff] %v4999_v44  ;;  %v5001_v47 = vmax.f32 %v417_v29, 0.0  ;;  %v420_v48 = vpop.f32.mrf.mxu0  ;;  %v513_v58 = vpop.f32.mrf.mxu1  ;;  %v943_v60 = vadd.f32 %v942_v19, %v4988_v26  ;;  %v5011_v11 = vmax.f32 %v510_v32, 0.0  ;;  %v5020_v19 = vmul.f32 %v4993_v36, %v4993_v36 }
  0xec   :  { %v5004_v61 = vmax.f32 %v419_v37, 0.0  ;;  %v5006_v62 = vmax.f32 %v512_v39, 0.0  ;;  %v421_v2 = vadd.f32 %v420_v48, %v4856_v35  ;;  %v1247_v4 = vadd.f32 %v1246_v24, %v1148_v43 }
  0xed   :  { %7214 = vst [vmem:[#allocation25_spill] sm:$0xff] %v5001_v47  ;;  %v1149_v9 = vmul.f32 %v5001_v47, %v5001_v47  ;;  %7217 = vst [vmem:[#allocation28_spill] sm:$0xff] %v5011_v11  ;;  %v514_v13 = vadd.f32 %v513_v58, %v4877_v54  ;;  %v424_v15 = vpop.f32.mrf.mxu0  ;;  %v517_v16 = vpop.f32.mrf.mxu1  ;;  %v964_v21 = vadd.f32 %v963_v34, %v5001_v47 }
  0xee   :  { %7215 = vst [vmem:[#allocation26_spill] sm:$0xff] %v5004_v61  ;;  %7216 = vst [vmem:[#allocation27_spill] sm:$0xff] %v5006_v62  ;;  %v1156_v24 = vmul.f32 %v5004_v61, %v5004_v61  ;;  %v1118_v29 = vmul.f32 %v4999_v44, %v4999_v44  ;;  %v5027_v33 = vmax.f32 %v421_v2, 0.0  ;;  %v1126_v43 = vmul.f32 %v5006_v62, %v5006_v62 }
  0xef   :  { %v1268_v32 = vadd.f32 %v1267_v40, %v1149_v9  ;;  %v5029_v3 = vmax.f32 %v514_v13, 0.0  ;;  %v426_v37 = vpop.f32.mrf.mxu0  ;;  %v519_v39 = vpop.f32.mrf.mxu1  ;;  %v425_v48 = vadd.f32 %v424_v15, %v4847_v30  ;;  %v518_v34 = vadd.f32 %v517_v16, %v4874_v53 }
  0xf0   :  { %7218 = vst [vmem:[#allocation29_spill] sm:$0xff] %v5027_v33  ;;  %v427_v58 = vadd.f32 %v426_v37, %v4856_v35  ;;  %v1119_v31 = vmul.f32 %v5011_v11, %v5011_v11  ;;  %v944_v40 = vadd.f32 %v943_v60, %v5004_v61  ;;  %v1248_v2 = vadd.f32 %v1247_v4, %v1156_v24 }
  0xf1   :  { %7219 = vst [vmem:[#allocation30_spill] sm:$0xff] %v5029_v3  ;;  %v1157_v9 = vmul.f32 %v5027_v33, %v5027_v33  ;;  %v428_v13 = vpop.f32.mrf.mxu0  ;;  %v521_v28 = vpop.f32.mrf.mxu1  ;;  %v965_v38 = vadd.f32 %v964_v21, %v5027_v33  ;;  %v5042_v14 = vmax.f32 %v425_v48, 0.0  ;;  %v5044_v15 = vmax.f32 %v518_v34, 0.0 }
  0xf2   :  { %v5046_v16 = vmax.f32 %v427_v58, 0.0  ;;  %v1127_v37 = vmul.f32 %v5029_v3, %v5029_v3  ;;  %v520_v5 = vadd.f32 %v519_v39, %v4877_v54  ;;  %v429_v60 = vadd.f32 %v428_v13, %v4847_v30 }
  0xf3   :  { %7220 = vst [vmem:[#allocation31_spill] sm:$0xff] %v5042_v14  ;;  %7221 = vst [vmem:[#allocation32_spill] sm:$0xff] %v5044_v15  ;;  %v522_v4 = vadd.f32 %v521_v28, %v4874_v53  ;;  %v430_v24 = vpop.f32.mrf.mxu0  ;;  %v523_v0 = vpop.f32.mrf.mxu1  ;;  %v982_v21 = vadd.f32 %v5006_v62, %v4999_v44  ;;  %v1286_v48 = vadd.f32 %v1126_v43, %v1118_v29 }
  0xf4   :  { %7222 = vst [vmem:[#allocation33_spill] sm:$0xff] %v5046_v16  ;;  %v1269_v33 = vadd.f32 %v1268_v32, %v1157_v9  ;;  %v1164_v34 = vmul.f32 %v5042_v14, %v5042_v14  ;;  %v1003_v58 = vadd.f32 %v5029_v3, %v5011_v11  ;;  %v1134_v39 = vmul.f32 %v5044_v15, %v5044_v15 }
  0xf5   :  { %v1165_v13 = vmul.f32 %v5046_v16, %v5046_v16  ;;  %v5063_v28 = vmax.f32 %v520_v5, 0.0  ;;  %v434_v61 = vpop.f32.mrf.mxu0  ;;  %v527_v47 = vpop.f32.mrf.mxu1  ;;  %v945_v62 = vadd.f32 %v944_v40, %v5042_v14  ;;  %v5066_v29 = vmax.f32 %v429_v60, 0.0 }
  0xf6   :  { %v5068_v32 = vmax.f32 %v522_v4, 0.0  ;;  %v431_v43 = vadd.f32 %v430_v24, %v4856_v35  ;;  %v1307_v9 = vadd.f32 %v1127_v37, %v1119_v31  ;;  %v1249_v3 = vadd.f32 %v1248_v2, %v1164_v34 }
  0xf7   :  { %7223 = vst [vmem:[#allocation34_spill] sm:$0xff] %v5063_v28  ;;  %7224 = vst [vmem:[#allocation35_spill] sm:$0xff] %v5066_v29  ;;  %v983_v11 = vadd.f32 %v982_v21, %v5044_v15  ;;  %v966_v44 = vadd.f32 %v965_v38, %v5046_v16  ;;  %v436_v26 = vpop.f32.mrf.mxu0  ;;  %v529_v6 = vpop.f32.mrf.mxu1  ;;  %v1287_v5 = vadd.f32 %v1286_v48, %v1134_v39 }
  0xf8   :  { %7225 = vst [vmem:[#allocation36_spill] sm:$0xff] %v5068_v32  ;;  %v1270_v46 = vadd.f32 %v1269_v33, %v1165_v13  ;;  %v1004_v42 = vadd.f32 %v1003_v58, %v5063_v28  ;;  %v1135_v40 = vmul.f32 %v5063_v28, %v5063_v28  ;;  %v1172_v60 = vmul.f32 %v5066_v29, %v5066_v29 }
  0xf9   :  { %v5078_v4 = vmax.f32 %v431_v43, 0.0  ;;  %v524_v31 = vadd.f32 %v523_v0, %v4877_v54  ;;  %v435_v2 = vadd.f32 %v434_v61, %v4847_v30  ;;  %v438_v37 = vpop.f32.mrf.mxu0  ;;  %v531_v38 = vpop.f32.mrf.mxu1  ;;  %v946_v24 = vadd.f32 %v945_v62, %v5066_v29 }
  0xfa   :  { %v1142_v33 = vmul.f32 %v5068_v32, %v5068_v32  ;;  %v528_v21 = vadd.f32 %v527_v47, %v4874_v53  ;;  %v437_v48 = vadd.f32 %v436_v26, %v4856_v35  ;;  %v984_v34 = vadd.f32 %v983_v11, %v5068_v32 }
  0xfb   :  { %7226 = vst [vmem:[#allocation37_spill] sm:$0xff] %v5078_v4  ;;  %v1173_v58 = vmul.f32 %v5078_v4, %v5078_v4  ;;  %v5090_v39 = vmax.f32 %v524_v31, 0.0  ;;  %v5092_v0 = vmax.f32 %v435_v2, 0.0  ;;  %v440_v61 = vpop.f32.mrf.mxu0  ;;  %v533_v13 = vpop.f32.mrf.mxu1  ;;  %v530_v28 = vadd.f32 %v529_v6, %v4877_v54 }
  0xfc   :  { %v5094_v43 = vmax.f32 %v528_v21, 0.0  ;;  %v5096_v62 = vmax.f32 %v437_v48, 0.0  ;;  %v439_v47 = vadd.f32 %v438_v37, %v4847_v30  ;;  %v1308_v26 = vadd.f32 %v1307_v9, %v1135_v40 }
  0xfd   :  { %7227 = vst [vmem:[#allocation38_spill] sm:$0xff] %v5090_v39  ;;  %7228 = vst [vmem:[#allocation39_spill] sm:$0xff] %v5092_v0  ;;  %v1250_v15 = vadd.f32 %v1249_v3, %v1172_v60  ;;  %v967_v11 = vadd.f32 %v966_v44, %v5078_v4  ;;  %v1143_v31 = vmul.f32 %v5090_v39, %v5090_v39  ;;  %v444_v32 = vpop.f32.mrf.mxu0  ;;  %v537_v2 = vpop.f32.mrf.mxu1  ;;  %v5108_v9 = vmax.f32 %v530_v28, 0.0 }
  0xfe   :  { %7229 = vst [vmem:[#allocation40_spill] sm:$0xff] %v5094_v43  ;;  %7230 = vst [vmem:[#allocation41_spill] sm:$0xff] %v5096_v62  ;;  %v1288_v29 = vadd.f32 %v1287_v5, %v1142_v33  ;;  %v1271_v16 = vadd.f32 %v1270_v46, %v1173_v58  ;;  %v1005_v21 = vadd.f32 %v1004_v42, %v5090_v39  ;;  %v5110_v3 = vmax.f32 %v439_v47, 0.0 }
  0xff   :  { %v1180_v48 = vmul.f32 %v5092_v0, %v5092_v0  ;;  %v947_v6 = vadd.f32 %v946_v24, %v5092_v0  ;;  %v985_v37 = vadd.f32 %v984_v34, %v5094_v43  ;;  %7231 = vst [vmem:[#allocation42_spill] sm:$0xff] %v5108_v9  ;;  %v446_v44 = vpop.f32.mrf.mxu0  ;;  %v539_v40 = vpop.f32.mrf.mxu1  ;;  %v1150_v60 = vmul.f32 %v5094_v43, %v5094_v43 }
 0x100   :  { %7232 = vst [vmem:[#allocation43_spill] sm:$0xff] %v5110_v3  ;;  %v1181_v46 = vmul.f32 %v5096_v62, %v5096_v62  ;;  %v532_v42 = vadd.f32 %v531_v38, %v4874_v53  ;;  %v441_v5 = vadd.f32 %v440_v61, %v4856_v35  ;;  %v1309_v33 = vadd.f32 %v1308_v26, %v1143_v31 }
 0x101   :  { %v1251_v24 = vadd.f32 %v1250_v15, %v1180_v48  ;;  %v968_v34 = vadd.f32 %v967_v11, %v5096_v62  ;;  %v1151_v28 = vmul.f32 %v5108_v9, %v5108_v9  ;;  %v448_v58 = vpop.f32.mrf.mxu0  ;;  %v541_v47 = vpop.f32.mrf.mxu1  ;;  %v1188_v39 = vmul.f32 %v5110_v3, %v5110_v3 }
 0x102   :  { %v5123_v43 = vmax.f32 %v532_v42, 0.0  ;;  %v5125_v0 = vmax.f32 %v441_v5, 0.0  ;;  %v534_v38 = vadd.f32 %v533_v13, %v4877_v54  ;;  %v948_v61 = vadd.f32 %v947_v6, %v5110_v3 }
 0x103   :  { %v445_v15 = vadd.f32 %v444_v32, %v4847_v30  ;;  %v538_v26 = vadd.f32 %v537_v2, %v4874_v53  ;;  %v447_v11 = vadd.f32 %v446_v44, %v4856_v35  ;;  %v450_v31 = vpop.f32.mrf.mxu0  ;;  %v543_v48 = vpop.f32.mrf.mxu1  ;;  %v1289_v62 = vadd.f32 %v1288_v29, %v1150_v60 }
 0x104   :  { %7233 = vst [vmem:[#allocation44_spill] sm:$0xff] %v5123_v43  ;;  %v1272_v4 = vadd.f32 %v1271_v16, %v1181_v46  ;;  %v1006_v14 = vadd.f32 %v1005_v21, %v5108_v9  ;;  %v1158_v42 = vmul.f32 %v5123_v43, %v5123_v43  ;;  %v1252_v5 = vadd.f32 %v1251_v24, %v1188_v39 }
 0x105   :  { %v1189_v13 = vmul.f32 %v5125_v0, %v5125_v0  ;;  %v5137_v6 = vmax.f32 %v534_v38, 0.0  ;;  %v5139_v32 = vmax.f32 %v445_v15, 0.0  ;;  %v547_v2 = vpop.f32.mrf.mxu1  ;;  %v620_v3 = vpop.f32.mrf.mxu0  ;;  %v969_v44 = vadd.f32 %v968_v34, %v5125_v0 }
 0x106   :  { %v5142_v25 = vmax.f32 %v447_v11, 0.0  ;;  %v540_v16 = vadd.f32 %v539_v40, %v4877_v54  ;;  %v449_v29 = vadd.f32 %v448_v58, %v4847_v30  ;;  %v1310_v21 = vadd.f32 %v1309_v33, %v1151_v28 }
 0x107   :  { %7234 = vst [vmem:[#allocation45_spill] sm:$0xff] %v5137_v6  ;;  %7235 = vst [vmem:[#allocation46_spill] sm:$0xff] %v5139_v32  ;;  %v1159_v39 = vmul.f32 %v5137_v6, %v5137_v6  ;;  %v949_v60 = vadd.f32 %v948_v61, %v5139_v32  ;;  %v5149_v46 = vmax.f32 %v538_v26, 0.0  ;;  %v549_v24 = vpop.f32.mrf.mxu1  ;;  %v986_v38 = vadd.f32 %v985_v37, %v5123_v43  ;;  %v622_v11 = vpop.f32.mrf.mxu0 }
 0x108   :  { %7236 = vst [vmem:[#allocation47_spill] sm:$0xff] %v5142_v25  ;;  %v1290_v15 = vadd.f32 %v1289_v62, %v1158_v42  ;;  %v1273_v9 = vadd.f32 %v1272_v4, %v1189_v13  ;;  %v1196_v34 = vmul.f32 %v5139_v32, %v5139_v32  ;;  %v1007_v40 = vadd.f32 %v1006_v14, %v5137_v6 }
 0x109   :  { %7237 = vst [vmem:[#allocation48_spill] sm:$0xff] %v5149_v46  ;;  %v1197_v30 = vmul.f32 %v5142_v25, %v5142_v25  ;;  %v5157_v33 = vmax.f32 %v540_v16, 0.0  ;;  %v5159_v28 = vmax.f32 %v449_v29, 0.0  ;;  %v551_v58 = vpop.f32.mrf.mxu1  ;;  %v970_v26 = vadd.f32 %v969_v44, %v5142_v25 }
 0x10a   :  { %v1253_v61 = vadd.f32 %v1252_v5, %v1196_v34  ;;  %v542_v62 = vadd.f32 %v541_v47, %v4874_v53  ;;  %v451_v4 = vadd.f32 %v450_v31, %v4856_v35  ;;  %v1311_v37 = vadd.f32 %v1310_v21, %v1159_v39  ;;  %v624_v35 = vpop.f32.mrf.mxu0 }
 0x10b   :  { %7238 = vst [vmem:[#allocation49_spill] sm:$0xff] %v5157_v33  ;;  %v987_v42 = vadd.f32 %v986_v38, %v5149_v46  ;;  %v1166_v14 = vmul.f32 %v5149_v46, %v5149_v46  ;;  %v950_v13 = vadd.f32 %v949_v60, %v5159_v28  ;;  %v5168_v16 = vpop.f32.mrf.mxu1  ;;  %v1204_v29 = vmul.f32 %v5159_v28, %v5159_v28 }
 0x10c   :  { %v5172_v5 = vmax.f32 %v542_v62, 0.0  ;;  %v5174_v44 = vmax.f32 %v451_v4, 0.0  ;;  %v544_v47 = vadd.f32 %v543_v48, %v4877_v54  ;;  %v1274_v31 = vadd.f32 %v1273_v9, %v1197_v30 }
 0x10d   :  { %v1167_v21 = vmul.f32 %v5157_v33, %v5157_v33  ;;  %v951_v39 = vadd.f32 %v950_v13, %v4871_v50  ;;  %v548_v60 = vadd.f32 %v547_v2, %v4874_v53  ;;  %v5181_v38 = vpop.f32.mrf.mxu1  ;;  %v1254_v34 = vadd.f32 %v1253_v61, %v1204_v29 }
 0x10e   :  { %7239 = vst [vmem:[#allocation50_spill] sm:$0xff] %v5172_v5  ;;  %v1174_v62 = vmul.f32 %v5172_v5, %v5172_v5  ;;  %v971_v4 = vadd.f32 %v970_v26, %v5174_v44  ;;  %v621_v46 = vadd.f32 %v620_v3, %v4882_v56  ;;  %v1291_v48 = vadd.f32 %v1290_v15, %v1166_v14  ;;  %v626_v26 = vpop.f32.mrf.mxu0 }
 0x10f   :  { %v952_v9 = vadd.f32 %v951_v39, %v4928_v23  ;;  %v1205_v30 = vmul.f32 %v5174_v44, %v5174_v44  ;;  %v5190_v6 = vmax.f32 %v544_v47, 0.0  ;;  %v5192_v13 = vpop.f32.mrf.mxu1  ;;  %v1008_v2 = vadd.f32 %v1007_v40, %v5157_v33 }
 0x110   :  { %v1255_v61 = vadd.f32 %v1254_v34, %v4905_v7  ;;  %v972_v29 = vadd.f32 %v971_v4, %v4895_v1  ;;  %v5197_v43 = vmax.f32 %v548_v60, 0.0  ;;  %v1312_v3 = vadd.f32 %v1311_v37, %v1167_v21 }
 0x111   :  { %7240 = vst [vmem:[#allocation51_spill] sm:$0xff] %v5190_v6  ;;  %v953_v15 = vadd.f32 %v952_v9, %v4947_v41  ;;  %v988_v14 = vadd.f32 %v987_v42, %v5172_v5  ;;  %v1275_v39 = vadd.f32 %v1274_v31, %v1205_v30  ;;  %v5201_v25 = vpop.f32.mrf.mxu1  ;;  %v1292_v32 = vadd.f32 %v1291_v48, %v1174_v62  ;;  %v5219_v62 = vpop.f32.mrf.mxu0 }
 0x112   :  { %7241 = vst [vmem:[#allocation52_spill] sm:$0xff] %v5197_v43  ;;  %v1256_v47 = vadd.f32 %v1255_v61, %v4959_v51  ;;  %v973_v40 = vadd.f32 %v972_v29, %v4934_v27  ;;  %v5205_v33 = vmax.f32 %v621_v46, 0.0  ;;  %v1009_v37 = vadd.f32 %v1008_v2, %v5190_v6 }
 0x113   :  { %v954_v7 = vadd.f32 %v953_v15, %v4984_v20  ;;  %v1276_v60 = vadd.f32 %v1275_v39, %v4926_v22  ;;  %v1175_v21 = vmul.f32 %v5190_v6, %v5190_v6  ;;  %v5212_v42 = vpop.f32.mrf.mxu1  ;;  %v1182_v34 = vmul.f32 %v5197_v43, %v5197_v43 }
 0x114   :  { %7242 = vst [vmem:[#allocation53_spill] sm:$0xff] %v5205_v33  ;;  %v1257_v31 = vadd.f32 %v1256_v47, %v4975_v10  ;;  %v974_v51 = vadd.f32 %v973_v40, %v4951_v45  ;;  %v550_v46 = vadd.f32 %v549_v24, %v4877_v54  ;;  %v623_v48 = vadd.f32 %v622_v11, %v4885_v57  ;;  %v632_v40 = vpop.f32.mrf.mxu0 }
 0x115   :  { %v955_v4 = vrot.slane %v954_v7, 4  ;;  %v1277_v22 = vadd.f32 %v1276_v60, %v4963_v52  ;;  %v552_v9 = vadd.f32 %v551_v58, %v4874_v53  ;;  %v989_v2 = vadd.f32 %v988_v14, %v5197_v43  ;;  %v5231_v47 = vpop.f32.mrf.mxu1 }
 0x116   :  { %v1258_v30 = vadd.f32 %v1257_v31, %v5016_v17  ;;  %v975_v10 = vadd.f32 %v974_v51, %v4993_v36  ;;  %v5227_v61 = vmax.f32 %v550_v46, 0.0  ;;  %v1313_v15 = vadd.f32 %v1312_v3, %v1175_v21 }
 0x117   :  { %v956_v29 = vadd.f32 %v955_v4, %v954_v7  ;;  %v1278_v24 = vadd.f32 %v1277_v22, %v4981_v18  ;;  %v625_v39 = vadd.f32 %v624_v35, %v4882_v56  ;;  %v1120_v58 = vmul.f32 %v5205_v33, %v5205_v33 }
 0x118   :  { %7243 = vst [vmem:[#allocation54_spill] sm:$0xff] %v5227_v61  ;;  %v1259_v52 = vrot.slane %v1258_v30, 4  ;;  %v976_v11 = vrot.slane %v975_v10, 4  ;;  %v5235_v17 = vmax.f32 %v552_v9, 0.0  ;;  %v1293_v31 = vadd.f32 %v1292_v32, %v1182_v34  ;;  %v5247_v9 = vpop.f32.mrf.mxu1 }
 0x119   :  { %v957_v60 = vrot.slane %v956_v29, 2  ;;  %v1279_v14 = vadd.f32 %v1278_v24, %v5020_v19  ;;  %v5238_v7 = vmax.f32 %v623_v48, 0.0  ;;  %v1010_v35 = vadd.f32 %v1009_v37, %v5227_v61  ;;  %v634_v37 = vpop.f32.mrf.mxu0 }
 0x11a   :  { %7244 = vst [vmem:[#allocation55_spill] sm:$0xff] %v5235_v17  ;;  %v1260_v18 = vadd.f32 %v1259_v52, %v1258_v30  ;;  %v977_v3 = vadd.f32 %v976_v11, %v975_v10  ;;  %v1183_v21 = vmul.f32 %v5227_v61, %v5227_v61  ;;  %v5243_v4 = vmax.f32 %v625_v39, 0.0  ;;  %v5261_v6 = vpop.f32.mrf.mxu1 }
 0x11b   :  { %7245 = vst [vmem:[#allocation56_spill] sm:$0xff] %v5238_v7  ;;  %v958_v51 = vadd.f32 %v957_v60, %v956_v29  ;;  %v1280_v46 = vrot.slane %v1279_v14, 4  ;;  %v554_v22 = vadd.f32 %v5168_v16, %v4877_v54  ;;  %v1190_v34 = vmul.f32 %v5235_v17, %v5235_v17  ;;  %v636_v20 = vpop.f32.mrf.mxu0 }
 0x11c   :  { %7246 = vst [vmem:[#allocation57_spill] sm:$0xff] %v5243_v4  ;;  %v1261_v19 = vrot.slane %v1260_v18, 2  ;;  %v978_v32 = vrot.slane %v977_v3, 2  ;;  %v627_v48 = vadd.f32 %v626_v26, %v4885_v57  ;;  %v1121_v29 = vmul.f32 %v5238_v7, %v5238_v7 }
 0x11d   :  { %v959_v30 = vrot.slane %v958_v51, 1  ;;  %v1281_v10 = vadd.f32 %v1280_v46, %v1279_v14  ;;  %v1128_v24 = vmul.f32 %v5243_v4, %v5243_v4  ;;  %v990_v52 = vadd.f32 %v989_v2, %v5235_v17 }
 0x11e   :  { %v1262_v39 = vadd.f32 %v1261_v19, %v1260_v18  ;;  %v979_v16 = vadd.f32 %v978_v32, %v977_v3  ;;  %v5257_v11 = vmax.f32 %v554_v22, 0.0  ;;  %v1314_v43 = vadd.f32 %v1313_v15, %v1183_v21 }
 0x11f   :  { %v960_v60 = vadd.f32 %v959_v30, %v958_v51  ;;  %v1282_v61 = vrot.slane %v1281_v10, 2  ;;  %v558_v26 = vadd.f32 %v5181_v38, %v4874_v53  ;;  %v1294_v5 = vadd.f32 %v1293_v31, %v1190_v34  ;;  %v5278_v34 = vpop.f32.mrf.mxu1 }
 0x120   :  { %7247 = vst [vmem:[#allocation58_spill] sm:$0xff] %v5257_v11  ;;  %v1263_v14 = vrot.slane %v1262_v39, 1  ;;  %v980_v46 = vrot.slane %v979_v16, 1  ;;  %v5263_v36 = vmax.f32 %v627_v48, 0.0  ;;  %v1024_v2 = vadd.f32 %v5243_v4, %v5205_v33 }
 0x121   :  { %v5265_v18 = vmul.f32 0.0078125, %v960_v60  ;;  %v1283_v3 = vadd.f32 %v1282_v61, %v1281_v10  ;;  %v1328_v51 = vadd.f32 %v1128_v24, %v1120_v58  ;;  %v1011_v21 = vadd.f32 %v1010_v35, %v5257_v11  ;;  %v640_v10 = vpop.f32.mrf.mxu0 }
 0x122   :  { %7248 = vst [vmem:[#allocation59_spill] sm:$0xff] %v5263_v36  ;;  %v1264_v22 = vadd.f32 %v1263_v14, %v1262_v39  ;;  %v981_v15 = vadd.f32 %v980_v46, %v979_v16  ;;  %v5270_v38 = vmax.f32 %v558_v26, 0.0  ;;  %v1191_v32 = vmul.f32 %v5257_v11, %v5257_v11 }
 0x123   :  { %v1420_v19 = vmul.f32 %v5265_v18, %v5265_v18  ;;  %v1284_v31 = vrot.slane %v1283_v3, 1  ;;  %v631_v61 = vadd.f32 %v5219_v62, %v4882_v56  ;;  %v1045_v35 = vadd.f32 %v5263_v36, %v5238_v7 }
 0x124   :  { %7249 = vst [vmem:[#allocation60_spill] sm:$0xff] %v5270_v38  ;;  %v1412_v48 = vmul.f32 0.0078125, %v1264_v22  ;;  %v5280_v58 = vmul.f32 0.0078125, %v981_v15  ;;  %v1129_v30 = vmul.f32 %v5263_v36, %v5263_v36  ;;  %v560_v16 = vadd.f32 %v5192_v13, %v4877_v54  ;;  %v5301_v13 = vpop.f32.mrf.mxu1  ;;  %v642_v36 = vpop.f32.mrf.mxu0 }
 0x125   :  { %v1285_v24 = vadd.f32 %v1284_v31, %v1283_v3  ;;  %v5286_v39 = vmax.f32 %v631_v61, 0.0  ;;  %v633_v62 = vadd.f32 %v632_v40, %v4885_v57  ;;  %v1198_v14 = vmul.f32 %v5270_v38, %v5270_v38 }
 0x126   :  { %v1428_v60 = vsub.f32 %v1412_v48, %v1420_v19  ;;  %v1421_v26 = vmul.f32 %v5280_v58, %v5280_v58  ;;  %v562_v46 = vadd.f32 %v5201_v25, %v4874_v53  ;;  %v1315_v15 = vadd.f32 %v1314_v43, %v1191_v32 }
 0x127   :  { %7250 = vst [vmem:[#allocation61_spill] sm:$0xff] %v5286_v39  ;;  %v1413_v22 = vmul.f32 0.0078125, %v1285_v24  ;;  %v1136_v3 = vmul.f32 %v5286_v39, %v5286_v39  ;;  %v5299_v31 = vmax.f32 %v560_v16, 0.0  ;;  %v5303_v19 = vmax.f32 %v633_v62, 0.0 }
 0x128   :  { %v1436_v40 = vmax.f32 %v1428_v60, 0.0  ;;  %v5305_v61 = vmax.f32 %v562_v46, 0.0  ;;  %v635_v48 = vadd.f32 %v634_v37, %v4882_v56  ;;  %v1349_v7 = vadd.f32 %v1129_v30, %v1121_v29  ;;  %v579_v37 = vpop.f32.mrf.mxu1 }
 0x129   :  { %7251 = vst [vmem:[#allocation62_spill] sm:$0xff] %v5299_v31  ;;  %7252 = vst [vmem:[#allocation63_spill] sm:$0xff] %v5303_v19  ;;  %v1429_v4 = vsub.f32 %v1413_v22, %v1421_v26  ;;  %v991_v25 = vadd.f32 %v990_v52, %v5270_v38  ;;  %v1199_v43 = vmul.f32 %v5299_v31, %v5299_v31  ;;  %v7286_v38 = vld [vmem:[#allocation22_spill] sm:$0xff] }
 0x12a   :  { %7253 = vst [vmem:[#allocation64_spill] sm:$0xff] %v5305_v61  ;;  %v1444_v32 = vadd.f32 1e-05, %v1436_v40  ;;  %v1295_v24 = vadd.f32 %v1294_v5, %v1198_v14  ;;  %v1025_v16 = vadd.f32 %v1024_v2, %v5286_v39  ;;  %v1329_v33 = vadd.f32 %v1328_v51, %v1136_v3  ;;  %v644_v51 = vpop.f32.mrf.mxu0  ;;  %v581_v3 = vpop.f32.mrf.mxu1 }
 0x12b   :  { %v1437_v60 = vmax.f32 %v1429_v4, 0.0  ;;  %v1012_v62 = vadd.f32 %v1011_v21, %v5299_v31  ;;  %v1046_v46 = vadd.f32 %v1045_v35, %v5303_v19  ;;  %v5314_v11 = vmax.f32 %v635_v48, 0.0 }
 0x12c   :  { %v1137_v29 = vmul.f32 %v5303_v19, %v5303_v19  ;;  %v1206_v52 = vmul.f32 %v5305_v61, %v5305_v61  ;;  %v564_v5 = vadd.f32 %v5212_v42, %v4877_v54  ;;  %v637_v2 = vadd.f32 %v636_v20, %v4885_v57 }
 0x12d   :  { %7254 = vst [vmem:[#allocation65_spill] sm:$0xff] %v5314_v11  ;;  %4294 = vrsqrt.f32 %v1444_v32  ;;  %v1445_v4 = vadd.f32 1e-05, %v1437_v60  ;;  %v1316_v21 = vadd.f32 %v1315_v15, %v1199_v43  ;;  %v992_v35 = vadd.f32 %v991_v25, %v5305_v61 }
 0x12e   :  { %v5324_v30 = vmax.f32 %v564_v5, 0.0  ;;  %v5326_v26 = vmax.f32 %v637_v2, 0.0  ;;  %v568_v14 = vadd.f32 %v5231_v47, %v4874_v53  ;;  %v641_v22 = vadd.f32 %v640_v10, %v4882_v56  ;;  %v646_v47 = vpop.f32.mrf.mxu0 }
 0x12f   :  { %4296 = vrsqrt.f32 %v1445_v4  ;;  %v1144_v42 = vmul.f32 %v5314_v11, %v5314_v11  ;;  %v570_v20 = vadd.f32 %v5247_v9, %v4877_v54  ;;  %v643_v15 = vadd.f32 %v642_v36, %v4885_v57  ;;  %v583_v4 = vpop.f32.mrf.mxu1 }
 0x130   :  { %7255 = vst [vmem:[#allocation66_spill] sm:$0xff] %v5324_v30  ;;  %7256 = vst [vmem:[#allocation67_spill] sm:$0xff] %v5326_v26  ;;  %v1350_v40 = vadd.f32 %v1349_v7, %v1137_v29  ;;  %v1296_v48 = vadd.f32 %v1295_v24, %v1206_v52  ;;  %v1026_v25 = vadd.f32 %v1025_v16, %v5314_v11  ;;  %v5341_v32 = vmax.f32 %v568_v14, 0.0 }
 0x131   :  { %v1207_v43 = vmul.f32 %v5324_v30, %v5324_v30  ;;  %v1145_v10 = vmul.f32 %v5326_v26, %v5326_v26  ;;  %v5343_v60 = vmax.f32 %v641_v22, 0.0  ;;  %v5345_v5 = vmax.f32 %v570_v20, 0.0  ;;  %v650_v20 = vpop.f32.mrf.mxu0 }
 0x132   :  { %7257 = vst [vmem:[#allocation68_spill] sm:$0xff] %v5341_v32  ;;  %v1013_v36 = vadd.f32 %v1012_v62, %v5324_v30  ;;  %v5348_v9 = vmax.f32 %v643_v15, 0.0  ;;  %v572_v7 = vadd.f32 %v5261_v6, %v4874_v53  ;;  %v645_v24 = vadd.f32 %v644_v51, %v4882_v56 }
 0x133   :  { %7258 = vst [vmem:[#allocation69_spill] sm:$0xff] %v5343_v60  ;;  %7259 = vst [vmem:[#allocation70_spill] sm:$0xff] %v5345_v5  ;;  %v1330_v16 = vadd.f32 %v1329_v33, %v1144_v42  ;;  %v993_v29 = vadd.f32 %v992_v35, %v5341_v32  ;;  %v1214_v52 = vmul.f32 %v5341_v32, %v5341_v32 }
 0x134   :  { %7260 = vst [vmem:[#allocation71_spill] sm:$0xff] %v5348_v9  ;;  %v1152_v2 = vmul.f32 %v5343_v60, %v5343_v60  ;;  %v1317_v14 = vadd.f32 %v1316_v21, %v1207_v43  ;;  %v1047_v62 = vadd.f32 %v1046_v46, %v5326_v26  ;;  %v1014_v22 = vadd.f32 %v1013_v36, %v5345_v5 }
 0x135   :  { %v1215_v6 = vmul.f32 %v5345_v5, %v5345_v5  ;;  %v1351_v51 = vadd.f32 %v1350_v40, %v1145_v10  ;;  %v1297_v33 = vadd.f32 %v1296_v48, %v1214_v52  ;;  %v5362_v42 = vmax.f32 %v572_v7, 0.0  ;;  %v5375_v48 = vpop.f32.mrf.mxu1  ;;  %v7291_v5 = vld [vmem:[#allocation33_spill] sm:$0xff] }
 0x136   :  { %v5364_v35 = vmax.f32 %v645_v24, 0.0  ;;  %v1153_v11 = vmul.f32 %v5348_v9, %v5348_v9  ;;  %v574_v21 = vadd.f32 %v5278_v34, %v4877_v54  ;;  %v647_v46 = vadd.f32 %v646_v47, %v4885_v57  ;;  %7263 = vst [vmem:[#allocation74_spill] sm:$0xff] %v5375_v48  ;;  %v652_v47 = vpop.f32.mrf.mxu0 }
 0x137   :  { %7261 = vst [vmem:[#allocation72_spill] sm:$0xff] %v5362_v42  ;;  %v1318_v15 = vadd.f32 %v1317_v14, %v1215_v6  ;;  %v1027_v43 = vadd.f32 %v1026_v25, %v5343_v60  ;;  %v1331_v36 = vadd.f32 %v1330_v16, %v1152_v2  ;;  %v994_v26 = vadd.f32 %v993_v29, %v5362_v42 }
 0x138   :  { %7262 = vst [vmem:[#allocation73_spill] sm:$0xff] %v5364_v35  ;;  %v1222_v40 = vmul.f32 %v5362_v42, %v5362_v42  ;;  %v5377_v10 = vmax.f32 %v574_v21, 0.0  ;;  %v5379_v7 = vmax.f32 %v647_v46, 0.0  ;;  %v578_v24 = vadd.f32 %v5301_v13, %v4874_v53  ;;  %v7290_v42 = vld [vmem:[#allocation31_spill] sm:$0xff] }
 0x139   :  { %v651_v34 = vadd.f32 %v650_v20, %v4882_v56  ;;  %v1160_v25 = vmul.f32 %v5364_v35, %v5364_v35  ;;  %v580_v16 = vadd.f32 %v579_v37, %v4877_v54  ;;  %v653_v29 = vadd.f32 %v652_v47, %v4885_v57  ;;  %v5399_v37 = vpop.f32.mrf.mxu1 }
 0x13a   :  { %7264 = vst [vmem:[#allocation75_spill] sm:$0xff] %v5377_v10  ;;  %7265 = vst [vmem:[#allocation76_spill] sm:$0xff] %v5379_v7  ;;  %v1298_v52 = vadd.f32 %v1297_v33, %v1222_v40  ;;  %v4295_v2 = vpop.eup %4294  ;;  %v1048_v14 = vadd.f32 %v1047_v62, %v5348_v9  ;;  %v1352_v6 = vadd.f32 %v1351_v51, %v1153_v11  ;;  %v5395_v46 = vmax.f32 %v578_v24, 0.0 }
 0x13b   :  { %v1015_v21 = vadd.f32 %v1014_v22, %v5377_v10  ;;  %v1223_v13 = vmul.f32 %v5377_v10, %v5377_v10  ;;  %v1028_v20 = vadd.f32 %v1027_v43, %v5364_v35  ;;  %v1161_v33 = vmul.f32 %v5379_v7, %v5379_v7  ;;  %7268 = vst [vmem:[#allocation79_spill] sm:$0xff] %v5399_v37  ;;  %v654_v35 = vpop.f32.mrf.mxu0 }
 0x13c   :  { %7266 = vst [vmem:[#allocation77_spill] sm:$0xff] %v5395_v46  ;;  %v5397_v40 = vmax.f32 %v580_v16, 0.0  ;;  %v4297_v47 = vpop.eup %4296  ;;  %v5401_v62 = vmax.f32 %v651_v34, 0.0  ;;  %v5403_v11 = vmax.f32 %v653_v29, 0.0  ;;  %v582_v22 = vadd.f32 %v581_v3, %v4874_v53 }
 0x13d   :  { %v1319_v60 = vadd.f32 %v1318_v15, %v1223_v13  ;;  %v1468_v51 = vcombine.low %v4295_v2, %v4297_v47  ;;  %v1332_v9 = vadd.f32 %v1331_v36, %v1160_v25  ;;  %v995_v43 = vadd.f32 %v994_v26, %v5395_v46  ;;  %v5416_v36 = vpop.f32.mrf.mxu1  ;;  %v656_v47 = vpop.f32.mrf.mxu0 }
 0x13e   :  { %7267 = vst [vmem:[#allocation78_spill] sm:$0xff] %v5397_v40  ;;  %7269 = vst [vmem:[#allocation80_spill] sm:$0xff] %v5401_v62  ;;  %v1230_v24 = vmul.f32 %v5395_v46, %v5395_v46  ;;  %v1049_v16 = vadd.f32 %v1048_v14, %v5379_v7  ;;  %v1016_v19 = vadd.f32 %v1015_v21, %v5397_v40  ;;  %v5414_v3 = vmax.f32 %v582_v22, 0.0 }
 0x13f   :  { %7270 = vst [vmem:[#allocation81_spill] sm:$0xff] %v5403_v11  ;;  %v1231_v15 = vmul.f32 %v5397_v40, %v5397_v40  ;;  %v655_v34 = vadd.f32 %v654_v35, %v4882_v56  ;;  %v1472_v29 = vrot.slane %v1468_v51, 7  ;;  %v1353_v13 = vadd.f32 %v1352_v6, %v1161_v33  ;;  %7272 = vst [vmem:[#allocation83_spill] sm:$0xff] %v5416_v36  ;;  %v4310_v35 = vld [vmem:[%s7063_s2] sm:$0x77]  ;;  %v5470_v39 = vpop.f32.mrf.mxu0 }
 0x140   :  { %v1299_v53 = vadd.f32 %v1298_v52, %v1230_v24  ;;  %7271 = vst [vmem:[#allocation82_spill] sm:$0xff] %v5414_v3  ;;  %v1168_v26 = vmul.f32 %v5401_v62, %v5401_v62  ;;  %v1169_v2 = vmul.f32 %v5403_v11, %v5403_v11  ;;  %v584_v14 = vadd.f32 %v583_v4, %v4877_v54 }
 0x141   :  { %v1320_v25 = vadd.f32 %v1319_v60, %v1231_v15  ;;  %v1480_v21 = vmul.f32 %v4310_v35, %v1472_v29  ;;  %v5427_v52 = vadd.f32 %v1028_v20, %v5401_v62  ;;  %v996_v6 = vadd.f32 %v995_v43, %v5414_v3  ;;  %v5442_v43 = vpop.f32.mrf.mxu1 }
 0x142   :  { %v1238_v33 = vmul.f32 %v5414_v3, %v5414_v3  ;;  %v5433_v60 = vadd.f32 %v1049_v16, %v5403_v11  ;;  %v5435_v22 = vmax.f32 %v655_v34, 0.0  ;;  %v5437_v54 = vmax.f32 %v584_v14, 0.0  ;;  %7276 = vst [vmem:[#allocation87_spill] sm:$0xff] %v5442_v43  ;;  %v7287_v3 = vld [vmem:[#allocation25_spill] sm:$0xff] }
 0x143   :  { %v657_v4 = vadd.f32 %v656_v47, %v4885_v57  ;;  %v1491_v51 = vrot.slane %v1480_v21, %v4879_v55  ;;  %v1495_v20 = vrot.slane %v1480_v21, %v4891_v63  ;;  %v997_v24 = vrot.slane %v996_v6, 4  ;;  %v5464_v7 = vpop.f32.mrf.mxu1  ;;  %v7301_v43 = vld [vmem:[#allocation13_spill] sm:$0xff] }
 0x144   :  { %7273 = vst [vmem:[#allocation84_spill] sm:$0xff] %v5433_v60  ;;  %7274 = vst [vmem:[#allocation85_spill] sm:$0xff] %v5435_v22  ;;  %v1300_v15 = vadd.f32 %v1299_v53, %v1238_v33  ;;  %v5444_v29 = vadd.f32 %v1332_v9, %v1168_v26  ;;  %v5446_v62 = vadd.f32 %v1353_v13, %v1169_v2 }
 0x145   :  { %7275 = vst [vmem:[#allocation86_spill] sm:$0xff] %v5437_v54  ;;  %v1017_v16 = vadd.f32 %v1016_v19, %v5437_v54  ;;  %v1239_v34 = vmul.f32 %v5437_v54, %v5437_v54  ;;  %v1528_v14 = vmul.f32 %v1491_v51, %v5265_v18  ;;  %v1529_v47 = vmul.f32 %v1495_v20, %v5280_v58 }
 0x146   :  { %7277 = vst [vmem:[#allocation88_spill] sm:$0xff] %v5444_v29  ;;  %7278 = vst [vmem:[#allocation89_spill] sm:$0xff] %v5446_v62  ;;  %v1563_v11 = vrot.slane %v1491_v51, %v4879_v55  ;;  %v1567_v21 = vrot.slane %v1495_v20, %v4879_v55  ;;  %v998_v53 = vadd.f32 %v997_v24, %v996_v6  ;;  %v5461_v26 = vmax.f32 %v657_v4, 0.0  ;;  %v7282_v20 = vld [vmem:[#allocation16_spill] sm:$0xff]  ;;  %v7283_v4 = vld [vmem:[#allocation18_spill] sm:$0xff] }
 0x147   :  { %v5457_v9 = vmul.f32 %v5435_v22, %v5435_v22  ;;  %v5459_v13 = vadd.f32 %v1320_v25, %v1239_v34  ;;  %v1544_v19 = vcombine.low %v1528_v14, %v1529_v47  ;;  %v1301_v33 = vrot.slane %v1300_v15, 4  ;;  %7281 = vst [vmem:[#allocation92_spill] sm:$0xff] %v5464_v7  ;;  %v7284_v14 = vld [vmem:[#allocation19_spill] sm:$0xff] }
 0x148   :  { %7280 = vst [vmem:[#allocation91_spill] sm:$0xff] %v5461_v26  ;;  %v1592_v2 = vmul.f32 %v1563_v11, %v4869_v49  ;;  %v1018_v18 = vrot.slane %v1017_v16, 4  ;;  %v1593_v58 = vmul.f32 %v1567_v21, %v4888_v59  ;;  %v1600_v51 = vmul.f32 %v1563_v11, %v4907_v8  ;;  %v7285_v49 = vld [vmem:[#allocation20_spill] sm:$0xff]  ;;  %v7288_v59 = vld [vmem:[#allocation26_spill] sm:$0xff]  ;;  %v7289_v8 = vld [vmem:[#allocation29_spill] sm:$0xff] }
 0x149   :  { %7279 = vst [vmem:[#allocation90_spill] sm:$0xff] %v5457_v9  ;;  %v1601_v6 = vmul.f32 %v1567_v21, %v4910_v12  ;;  %v1608_v24 = vmul.f32 %v1563_v11, %v7282_v20  ;;  %v1548_v25 = vrot.slane %v1544_v19, 6  ;;  %v1609_v34 = vmul.f32 %v1567_v21, %v7283_v4  ;;  %v7292_v19 = vld [vmem:[#allocation35_spill] sm:$0xff]  ;;  %v5482_v4 = vpop.f32.mrf.mxu1 }
 0x14a   :  { %v1616_v47 = vmul.f32 %v1563_v11, %v7284_v14  ;;  %v1617_v31 = vmul.f32 %v1567_v21, %v7285_v49  ;;  %v1624_v54 = vmul.f32 %v1563_v11, %v7286_v38  ;;  %v1625_v40 = vmul.f32 %v1567_v21, %v7287_v3  ;;  %7293 = vst [vmem:[#allocation16_spill] sm:$0xff] %v5482_v4  ;;  %v7294_v14 = vld [vmem:[#allocation37_spill] sm:$0xff]  ;;  %v7295_v49 = vld [vmem:[#allocation39_spill] sm:$0xff] }
 0x14b   :  { %v1632_v46 = vmul.f32 %v1563_v11, %v7288_v59  ;;  %v1633_v10 = vmul.f32 %v1567_v21, %v7289_v8  ;;  %v1556_v12 = vsub.f32 %v4310_v35, %v1548_v25  ;;  %v1640_v20 = vmul.f32 %v1563_v11, %v7290_v42  ;;  %v7296_v38 = vld [vmem:[#allocation41_spill] sm:$0xff]  ;;  %v7297_v3 = vld [vmem:[#allocation43_spill] sm:$0xff]  ;;  %v5488_v59 = vpop.f32.mrf.mxu0  ;;  %v5502_v36 = vpop.f32.mrf.mxu1 }
 0x14c   :  { %v1641_v32 = vmul.f32 %v1567_v21, %v7291_v5  ;;  %v1648_v30 = vmul.f32 %v1563_v11, %v7292_v19  ;;  %v1649_v61 = vmul.f32 %v1567_v21, %v7294_v14  ;;  %v1656_v17 = vmul.f32 %v1563_v11, %v7295_v49  ;;  %7298 = vst [vmem:[#allocation18_spill] sm:$0xff] %v5488_v59  ;;  %v7300_v7 = vld [vmem:[#allocation23_spill] sm:$0xff] }
 0x14d   :  { %v1657_v63 = vmul.f32 %v1567_v21, %v7296_v38  ;;  %v1664_v55 = vmul.f32 %v1563_v11, %v7297_v3  ;;  %v1665_v35 = vmul.f32 %v1567_v21, %v5125_v0  ;;  %v1680_v42 = vmul.f32 %v1563_v11, %v5159_v28  ;;  %v7299_v3 = vld [vmem:[#allocation21_spill] sm:$0xff]  ;;  %7302 = vst [vmem:[#allocation19_spill] sm:$0xff] %v5502_v36 }
 0x14e   :  { %v1681_v5 = vmul.f32 %v1567_v21, %v5174_v44  ;;  %v1688_v25 = vmul.f32 %v1563_v11, %v4871_v50  ;;  %v1689_v8 = vmul.f32 %v1567_v21, %v4895_v1  ;;  %v1696_v19 = vmul.f32 %v1563_v11, %v4928_v23  ;;  %v7303_v44 = vld [vmem:[#allocation14_spill] sm:$0xff]  ;;  %v5505_v23 = vpop.f32.mrf.mxu0 }
 0x14f   :  { %v1697_v14 = vmul.f32 %v1567_v21, %v4934_v27  ;;  %v1704_v49 = vmul.f32 %v1563_v11, %v4947_v41  ;;  %v1705_v38 = vmul.f32 %v1567_v21, %v4951_v45  ;;  %v1712_v4 = vmul.f32 %v1563_v11, %v7299_v3  ;;  %v7304_v27 = vld [vmem:[#allocation46_spill] sm:$0xff]  ;;  %v7305_v41 = vld [vmem:[#allocation47_spill] sm:$0xff] }
 0x150   :  { %v1713_v0 = vmul.f32 %v1567_v21, %v7300_v7  ;;  %v1727_v28 = vrot.slane %v1556_v12, %v7301_v43  ;;  %v1731_v50 = vrot.slane %v1556_v12, %v7303_v44  ;;  %v999_v37 = vrot.slane %v998_v53, 2 }
 0x151   :  { %v1302_v1 = vadd.f32 %v1301_v33, %v1300_v15  ;;  %v1019_v62 = vadd.f32 %v1018_v18, %v1017_v16  ;;  %v1672_v48 = vmul.f32 %v1563_v11, %v7304_v27  ;;  %v1673_v60 = vmul.f32 %v1567_v21, %v7305_v41  ;;  %v5520_v11 = vpop.f32.mrf.mxu1 }
 0x152   :  { %v1767_v45 = vrot.slane %v1727_v28, %v7301_v43  ;;  %v1322_v3 = vrot.slane %v5459_v13, 4  ;;  %v1771_v7 = vrot.slane %v1731_v50, %v7301_v43  ;;  %v1000_v29 = vadd.f32 %v999_v37, %v998_v53  ;;  %v5530_v37 = vpop.f32.mrf.mxu0 }
 0x153   :  { %v1303_v9 = vrot.slane %v1302_v1, 2  ;;  %v1020_v36 = vrot.slane %v1019_v62, 2 }
 0x154   :  { %v5512_v59 = vadd.f32 %v1767_v45, %v1592_v2  ;;  %v5514_v12 = vadd.f32 %v1767_v45, %v1600_v51  ;;  %v5516_v15 = vadd.f32 %v1767_v45, %v1608_v24  ;;  %v5518_v16 = vadd.f32 %v1767_v45, %v1616_v47 }
 0x155   :  { %v5522_v21 = vadd.f32 %v1771_v7, %v1593_v58  ;;  %v5524_v33 = vadd.f32 %v1771_v7, %v1601_v6  ;;  %v5526_v18 = vadd.f32 %v1771_v7, %v1609_v34  ;;  %v5528_v28 = vadd.f32 %v1771_v7, %v1617_v31 }
 0x156   :  { %7306 = vst [vmem:[#allocation20_spill] sm:$0xff] %v5512_v59  ;;  %7307 = vst [vmem:[#allocation22_spill] sm:$0xff] %v5514_v12  ;;  %v5532_v53 = vadd.f32 %v1767_v45, %v1624_v54  ;;  %v5534_v2 = vadd.f32 %v1771_v7, %v1625_v40  ;;  %v5536_v51 = vadd.f32 %v1767_v45, %v1632_v46  ;;  %v5556_v46 = vpop.f32.mrf.mxu1 }
 0x157   :  { %7308 = vst [vmem:[#allocation25_spill] sm:$0xff] %v5516_v15  ;;  %7309 = vst [vmem:[#allocation26_spill] sm:$0xff] %v5518_v16  ;;  %v5538_v24 = vadd.f32 %v1771_v7, %v1633_v10  ;;  %v5540_v47 = vadd.f32 %v1767_v45, %v1640_v20  ;;  %v5542_v58 = vadd.f32 %v1771_v7, %v1641_v32 }
 0x158   :  { %7310 = vst [vmem:[#allocation29_spill] sm:$0xff] %v5522_v21  ;;  %7311 = vst [vmem:[#allocation31_spill] sm:$0xff] %v5524_v33  ;;  %v5544_v6 = vadd.f32 %v1767_v45, %v1648_v30  ;;  %v5546_v34 = vadd.f32 %v1771_v7, %v1649_v61  ;;  %v5548_v31 = vadd.f32 %v1767_v45, %v1656_v17  ;;  %v670_v61 = vpop.f32.mrf.mxu0 }
 0x159   :  { %7312 = vst [vmem:[#allocation33_spill] sm:$0xff] %v5526_v18  ;;  %7313 = vst [vmem:[#allocation35_spill] sm:$0xff] %v5528_v28  ;;  %v5550_v50 = vadd.f32 %v1771_v7, %v1657_v63  ;;  %v5552_v54 = vadd.f32 %v1767_v45, %v1664_v55  ;;  %v5554_v40 = vadd.f32 %v1771_v7, %v1665_v35 }
 0x15a   :  { %7314 = vst [vmem:[#allocation37_spill] sm:$0xff] %v5532_v53  ;;  %7315 = vst [vmem:[#allocation39_spill] sm:$0xff] %v5534_v2  ;;  %v5558_v10 = vadd.f32 %v1767_v45, %v1672_v48  ;;  %v5560_v20 = vadd.f32 %v1771_v7, %v1673_v60  ;;  %v5562_v32 = vadd.f32 %v1767_v45, %v1680_v42  ;;  %v1001_v42 = vrot.slane %v1000_v29, 1 }
 0x15b   :  { %7316 = vst [vmem:[#allocation41_spill] sm:$0xff] %v5536_v51  ;;  %7317 = vst [vmem:[#allocation43_spill] sm:$0xff] %v5538_v24  ;;  %v5564_v30 = vadd.f32 %v1771_v7, %v1681_v5  ;;  %v5566_v27 = vadd.f32 %v1767_v45, %v1688_v25  ;;  %v5568_v17 = vadd.f32 %v1771_v7, %v1689_v8 }
 0x15c   :  { %7318 = vst [vmem:[#allocation21_spill] sm:$0xff] %v5540_v47  ;;  %7319 = vst [vmem:[#allocation23_spill] sm:$0xff] %v5542_v58  ;;  %v5570_v63 = vadd.f32 %v1767_v45, %v1696_v19  ;;  %v5572_v55 = vadd.f32 %v1771_v7, %v1697_v14  ;;  %v5574_v35 = vadd.f32 %v1767_v45, %v1704_v49 }
 0x15d   :  { %7320 = vst [vmem:[#allocation46_spill] sm:$0xff] %v5544_v6  ;;  %7321 = vst [vmem:[#allocation47_spill] sm:$0xff] %v5546_v34  ;;  %v5576_v41 = vadd.f32 %v1771_v7, %v1705_v38  ;;  %v5578_v48 = vadd.f32 %v1767_v45, %v1712_v4  ;;  %v5580_v60 = vadd.f32 %v1771_v7, %v1713_v0  ;;  %v7338_v4 = vld [vmem:[#allocation18_spill] sm:$0xff]  ;;  %v5593_v38 = vpop.f32.mrf.mxu0 }
 0x15e   :  { %7322 = vst [vmem:[#allocation93_spill] sm:$0xff] %v5548_v31  ;;  %7323 = vst [vmem:[#allocation94_spill] sm:$0xff] %v5550_v50  ;;  %v1304_v5 = vadd.f32 %v1303_v9, %v1302_v1  ;;  %v1323_v25 = vadd.f32 %v1322_v3, %v5459_v13  ;;  %v1030_v8 = vadd.f32 %v5427_v52, %v5435_v22  ;;  %v7339_v0 = vld [vmem:[#allocation90_spill] sm:$0xff]  ;;  %v7340_v1 = vld [vmem:[#allocation88_spill] sm:$0xff] }
 0x15f   :  { %7324 = vst [vmem:[#allocation95_spill] sm:$0xff] %v5552_v54  ;;  %7325 = vst [vmem:[#allocation96_spill] sm:$0xff] %v5554_v40  ;;  %v1177_v19 = vmul.f32 %v5461_v26, %v5461_v26  ;;  %v661_v14 = vadd.f32 %v5470_v39, %v4882_v56  ;;  %v663_v49 = vadd.f32 %v7338_v4, %v4885_v57  ;;  %v7341_v52 = vld [vmem:[#allocation84_spill] sm:$0xff]  ;;  %v7413_v22 = vld [vmem:[#allocation82_spill] sm:$0xff] }
 0x160   :  { %7326 = vst [vmem:[#allocation97_spill] sm:$0xff] %v5558_v10  ;;  %7327 = vst [vmem:[#allocation98_spill] sm:$0xff] %v5560_v20  ;;  %v1002_v9 = vadd.f32 %v1001_v42, %v1000_v29  ;;  %v1324_v13 = vrot.slane %v1323_v25, 2  ;;  %v1334_v45 = vadd.f32 %v7340_v1, %v7339_v0  ;;  %v1051_v3 = vadd.f32 %v7341_v52, %v5461_v26  ;;  %v7345_v42 = vld [vmem:[#allocation89_spill] sm:$0xff]  ;;  %v674_v10 = vpop.f32.mrf.mxu0 }
 0x161   :  { %7328 = vst [vmem:[#allocation99_spill] sm:$0xff] %v5562_v32  ;;  %7329 = vst [vmem:[#allocation100_spill] sm:$0xff] %v5564_v30  ;;  %v1021_v32 = vadd.f32 %v1020_v36, %v1019_v62  ;;  %v1305_v62 = vrot.slane %v1304_v5, 1  ;;  %v5599_v7 = vmax.f32 %v661_v14, 0.0  ;;  %v5610_v1 = vmax.f32 %v663_v49, 0.0  ;;  %v7347_v52 = vld [vmem:[#allocation17_spill] sm:$0xff] }
 0x162   :  { %7330 = vst [vmem:[#allocation101_spill] sm:$0xff] %v5566_v27  ;;  %7331 = vst [vmem:[#allocation102_spill] sm:$0xff] %v5568_v17  ;;  %v5583_v27 = vpop.f32.mrf.mxu1  ;;  %v7348_v14 = vld [vmem:[#allocation79_spill] sm:$0xff]  ;;  %v665_v49 = vadd.f32 %v5505_v23, %v4882_v56  ;;  %v667_v23 = vadd.f32 %v5530_v37, %v4885_v57 }
 0x163   :  { %7332 = vst [vmem:[#allocation103_spill] sm:$0xff] %v5570_v63  ;;  %7333 = vst [vmem:[#allocation104_spill] sm:$0xff] %v5572_v55  ;;  %v1022_v36 = vrot.slane %v1021_v32, 1  ;;  %v1306_v4 = vadd.f32 %v1305_v62, %v1304_v5  ;;  %v1325_v63 = vadd.f32 %v1324_v13, %v1323_v25  ;;  %v1355_v55 = vadd.f32 %v7345_v42, %v1177_v19 }
 0x164   :  { %7334 = vst [vmem:[#allocation105_spill] sm:$0xff] %v5574_v35  ;;  %7335 = vst [vmem:[#allocation106_spill] sm:$0xff] %v5576_v41  ;;  %v7344_v35 = vld [vmem:[#allocation74_spill] sm:$0xff]  ;;  %v5605_v29 = vpop.f32.mrf.mxu1  ;;  %v1184_v0 = vmul.f32 %v5599_v7, %v5599_v7  ;;  %v736_v17 = vadd.f32 %v7348_v14, %v7347_v52  ;;  %v1031_v25 = vadd.f32 %v1030_v8, %v5599_v7 }
 0x165   :  { %7336 = vst [vmem:[#allocation107_spill] sm:$0xff] %v5578_v48  ;;  %7337 = vst [vmem:[#allocation108_spill] sm:$0xff] %v5580_v60  ;;  %v7343_v48 = vld [vmem:[#allocation15_spill] sm:$0xff]  ;;  %v5603_v60 = vmul.f32 0.0078125, %v1002_v9  ;;  %v1023_v41 = vadd.f32 %v1022_v36, %v1021_v32  ;;  %v1414_v30 = vmul.f32 0.0078125, %v1306_v4  ;;  %v1326_v32 = vrot.slane %v1325_v63, 1 }
 0x166   :  { %7342 = vst [vmem:[#allocation18_spill] sm:$0xff] %v5599_v7  ;;  %v734_v39 = vadd.f32 %v7344_v35, %v7343_v48  ;;  %7346 = vst [vmem:[#allocation90_spill] sm:$0xff] %v5610_v1  ;;  %v1335_v9 = vadd.f32 %v1334_v45, %v1184_v0  ;;  %v7350_v4 = vld [vmem:[#allocation83_spill] sm:$0xff]  ;;  %v5627_v14 = vpop.f32.mrf.mxu1  ;;  %v5631_v8 = vmax.f32 %v736_v17, 0.0  ;;  %v5633_v45 = vmax.f32 %v665_v49, 0.0  ;;  %v7411_v7 = vld [vmem:[#allocation77_spill] sm:$0xff] }
 0x167   :  { %v1422_v35 = vmul.f32 %v5603_v60, %v5603_v60  ;;  %v5616_v5 = vmul.f32 0.0078125, %v1023_v41  ;;  %v1327_v36 = vadd.f32 %v1326_v32, %v1325_v63  ;;  %v738_v42 = vadd.f32 %v7350_v4, %v7343_v48 }
 0x168   :  { %v5619_v19 = vmax.f32 %v734_v39, 0.0  ;;  %v1185_v41 = vmul.f32 %v5610_v1, %v5610_v1  ;;  %7351 = vst [vmem:[#allocation84_spill] sm:$0xff] %v5631_v8  ;;  %7352 = vst [vmem:[#allocation15_spill] sm:$0xff] %v5633_v45  ;;  %v1052_v4 = vadd.f32 %v1051_v3, %v5610_v1  ;;  %v1192_v20 = vmul.f32 %v5633_v45, %v5633_v45 }
 0x169   :  { %v1430_v62 = vsub.f32 %v1414_v30, %v1422_v35  ;;  %v1423_v13 = vmul.f32 %v5616_v5, %v5616_v5  ;;  %v676_v30 = vpop.f32.mrf.mxu0  ;;  %v1415_v39 = vmul.f32 0.0078125, %v1327_v36  ;;  %v5637_v0 = vmax.f32 %v738_v42, 0.0  ;;  %v7354_v35 = vld [vmem:[#allocation87_spill] sm:$0xff]  ;;  %v5651_v36 = vpop.f32.mrf.mxu1 }
 0x16a   :  { %7349 = vst [vmem:[#allocation88_spill] sm:$0xff] %v5619_v19  ;;  %v740_v32 = vadd.f32 %v7354_v35, %v7347_v52  ;;  %v5644_v17 = vmax.f32 %v667_v23, 0.0  ;;  %v671_v49 = vadd.f32 %v670_v61, %v4882_v56  ;;  %v1122_v37 = vmul.f32 %v5619_v19, %v5619_v19 }
 0x16b   :  { %v1438_v63 = vmax.f32 %v1430_v62, 0.0  ;;  %7353 = vst [vmem:[#allocation74_spill] sm:$0xff] %v5637_v0  ;;  %v1431_v31 = vsub.f32 %v1415_v39, %v1423_v13  ;;  %v1130_v62 = vmul.f32 %v5637_v0, %v5637_v0  ;;  %v1356_v42 = vadd.f32 %v1355_v55, %v1185_v41  ;;  %v680_v40 = vpop.f32.mrf.mxu0  ;;  %v7358_v41 = vld [vmem:[#allocation92_spill] sm:$0xff] }
 0x16c   :  { %7355 = vst [vmem:[#allocation89_spill] sm:$0xff] %v5644_v17  ;;  %v1123_v3 = vmul.f32 %v5631_v8, %v5631_v8  ;;  %v1032_v35 = vadd.f32 %v1031_v25, %v5633_v45  ;;  %v5656_v23 = vmax.f32 %v740_v32, 0.0  ;;  %v1066_v13 = vadd.f32 %v5637_v0, %v5619_v19  ;;  %v7396_v19 = vld [vmem:[#allocation45_spill] sm:$0xff] }
 0x16d   :  { %v1446_v54 = vadd.f32 1e-05, %v1438_v63  ;;  %v1439_v61 = vmax.f32 %v1431_v31, 0.0  ;;  %v1336_v63 = vadd.f32 %v1335_v9, %v1192_v20  ;;  %v5660_v39 = vmax.f32 %v671_v49, 0.0  ;;  %v5671_v9 = vpop.f32.mrf.mxu1  ;;  %v7360_v49 = vld [vmem:[#allocation16_spill] sm:$0xff] }
 0x16e   :  { %7356 = vst [vmem:[#allocation17_spill] sm:$0xff] %v5656_v23  ;;  %v1053_v50 = vadd.f32 %v1052_v4, %v5644_v17  ;;  %v1193_v55 = vmul.f32 %v5644_v17, %v5644_v17  ;;  %v744_v6 = vadd.f32 %v7358_v41, %v7343_v48  ;;  %v1370_v32 = vadd.f32 %v1130_v62, %v1122_v37 }
 0x16f   :  { %7357 = vst [vmem:[#allocation79_spill] sm:$0xff] %v5660_v39  ;;  %4298 = vrsqrt.f32 %v1446_v54  ;;  %v1447_v25 = vadd.f32 1e-05, %v1439_v61  ;;  %v1131_v31 = vmul.f32 %v5656_v23, %v5656_v23  ;;  %v673_v20 = vadd.f32 %v5593_v38, %v4885_v57  ;;  %v682_v61 = vpop.f32.mrf.mxu0  ;;  %v7362_v38 = vld [vmem:[#allocation19_spill] sm:$0xff] }
 0x170   :  { %v1200_v54 = vmul.f32 %v5660_v39, %v5660_v39  ;;  %v5675_v4 = vmax.f32 %v744_v6, 0.0  ;;  %v746_v47 = vadd.f32 %v7360_v49, %v7347_v52  ;;  %v675_v41 = vadd.f32 %v674_v10, %v4882_v56  ;;  %v5698_v49 = vpop.f32.mrf.mxu1 }
 0x171   :  { %4300 = vrsqrt.f32 %v1447_v25  ;;  %v1033_v37 = vadd.f32 %v1032_v35, %v5660_v39  ;;  %v5681_v62 = vmax.f32 %v673_v20, 0.0  ;;  %v748_v34 = vadd.f32 %v7362_v38, %v7343_v48  ;;  %v7406_v39 = vld [vmem:[#allocation68_spill] sm:$0xff] }
 0x172   :  { %7359 = vst [vmem:[#allocation83_spill] sm:$0xff] %v5675_v4  ;;  %v1357_v58 = vadd.f32 %v1356_v42, %v1193_v55  ;;  %v1138_v51 = vmul.f32 %v5675_v4, %v5675_v4  ;;  %v5687_v6 = vmax.f32 %v746_v47, 0.0  ;;  %v5689_v53 = vmax.f32 %v675_v41, 0.0  ;;  %v684_v41 = vpop.f32.mrf.mxu0 }
 0x173   :  { %7361 = vst [vmem:[#allocation87_spill] sm:$0xff] %v5681_v62  ;;  %v1087_v10 = vadd.f32 %v5656_v23, %v5631_v8  ;;  %v1201_v25 = vmul.f32 %v5681_v62, %v5681_v62  ;;  %v5695_v35 = vmax.f32 %v748_v34, 0.0  ;;  %v677_v20 = vadd.f32 %v676_v30, %v4885_v57  ;;  %v7393_v23 = vld [vmem:[#allocation40_spill] sm:$0xff] }
 0x174   :  { %7363 = vst [vmem:[#allocation92_spill] sm:$0xff] %v5687_v6  ;;  %7364 = vst [vmem:[#allocation16_spill] sm:$0xff] %v5689_v53  ;;  %v1391_v42 = vadd.f32 %v1131_v31, %v1123_v3  ;;  %v1337_v55 = vadd.f32 %v1336_v63, %v1200_v54  ;;  %v1067_v38 = vadd.f32 %v1066_v13, %v5675_v4  ;;  %v5718_v31 = vpop.f32.mrf.mxu1 }
 0x175   :  { %7365 = vst [vmem:[#allocation19_spill] sm:$0xff] %v5695_v35  ;;  %v1054_v47 = vadd.f32 %v1053_v50, %v5681_v62  ;;  %v1371_v24 = vadd.f32 %v1370_v32, %v1138_v51  ;;  %v1088_v2 = vadd.f32 %v1087_v10, %v5687_v6  ;;  %v1139_v16 = vmul.f32 %v5687_v6, %v5687_v6  ;;  %v7405_v62 = vld [vmem:[#allocation66_spill] sm:$0xff] }
 0x176   :  { %v1034_v34 = vadd.f32 %v1033_v37, %v5689_v53  ;;  %v1208_v30 = vmul.f32 %v5689_v53, %v5689_v53  ;;  %v5708_v15 = vmax.f32 %v677_v20, 0.0  ;;  %v750_v3 = vadd.f32 %v5520_v11, %v7347_v52  ;;  %v5740_v59 = vpop.f32.mrf.mxu1 }
 0x177   :  { %v681_v63 = vadd.f32 %v680_v40, %v4882_v56  ;;  %v1358_v50 = vadd.f32 %v1357_v58, %v1201_v25  ;;  %v1146_v51 = vmul.f32 %v5695_v35, %v5695_v35  ;;  %v754_v13 = vadd.f32 %v5556_v46, %v7343_v48  ;;  %v686_v58 = vpop.f32.mrf.mxu0 }
 0x178   :  { %7366 = vst [vmem:[#allocation109_spill] sm:$0xff] %v5708_v15  ;;  %v683_v32 = vadd.f32 %v682_v61, %v4885_v57  ;;  %v1068_v54 = vadd.f32 %v1067_v38, %v5695_v35  ;;  %v1209_v37 = vmul.f32 %v5708_v15, %v5708_v15  ;;  %v5723_v10 = vmax.f32 %v750_v3, 0.0  ;;  %v7380_v35 = vld [vmem:[#allocation12_spill] sm:$0xff] }
 0x179   :  { %v5725_v11 = vmax.f32 %v681_v63, 0.0  ;;  %v5727_v40 = vmax.f32 %v754_v13, 0.0  ;;  %v756_v46 = vadd.f32 %v5583_v27, %v7347_v52  ;;  %v685_v61 = vadd.f32 %v684_v41, %v4882_v56 }
 0x17a   :  { %7367 = vst [vmem:[#allocation110_spill] sm:$0xff] %v5723_v10  ;;  %v5729_v25 = vmax.f32 %v683_v32, 0.0  ;;  %v1392_v20 = vadd.f32 %v1391_v42, %v1139_v16  ;;  %v1338_v28 = vadd.f32 %v1337_v55, %v1208_v30  ;;  %v1055_v38 = vadd.f32 %v1054_v47, %v5708_v15  ;;  %v690_v47 = vpop.f32.mrf.mxu0 }
 0x17b   :  { %7368 = vst [vmem:[#allocation111_spill] sm:$0xff] %v5725_v11  ;;  %7369 = vst [vmem:[#allocation112_spill] sm:$0xff] %v5727_v40  ;;  %v1147_v3 = vmul.f32 %v5723_v10, %v5723_v10  ;;  %v1372_v63 = vadd.f32 %v1371_v24, %v1146_v51  ;;  %v1359_v12 = vadd.f32 %v1358_v50, %v1209_v37  ;;  %v5745_v42 = vmax.f32 %v756_v46, 0.0 }
 0x17c   :  { %7370 = vst [vmem:[#allocation113_spill] sm:$0xff] %v5729_v25  ;;  %v4299_v18 = vpop.eup %4298  ;;  %v1089_v13 = vadd.f32 %v1088_v2, %v5723_v10  ;;  %v1216_v32 = vmul.f32 %v5725_v11, %v5725_v11  ;;  %v1035_v27 = vadd.f32 %v1034_v34, %v5725_v11  ;;  %v1154_v16 = vmul.f32 %v5727_v40, %v5727_v40 }
 0x17d   :  { %7371 = vst [vmem:[#allocation114_spill] sm:$0xff] %v5745_v42  ;;  %v5747_v55 = vmax.f32 %v685_v61, 0.0  ;;  %v1069_v24 = vadd.f32 %v1068_v54, %v5727_v40  ;;  %v1217_v2 = vmul.f32 %v5729_v25, %v5729_v25  ;;  %v758_v41 = vadd.f32 %v5605_v29, %v7343_v48  ;;  %v5764_v40 = vpop.f32.mrf.mxu1 }
 0x17e   :  { %v687_v30 = vadd.f32 %v686_v58, %v4885_v57  ;;  %v4301_v50 = vpop.eup %4300  ;;  %v1393_v34 = vadd.f32 %v1392_v20, %v1147_v3  ;;  %v1339_v51 = vadd.f32 %v1338_v28, %v1216_v32  ;;  %v1056_v37 = vadd.f32 %v1055_v38, %v5729_v25  ;;  %v692_v38 = vpop.f32.mrf.mxu0 }
 0x17f   :  { %7372 = vst [vmem:[#allocation115_spill] sm:$0xff] %v5747_v55  ;;  %v1155_v46 = vmul.f32 %v5745_v42, %v5745_v42  ;;  %v1469_v61 = vcombine.low %v4299_v18, %v4301_v50  ;;  %v1224_v54 = vmul.f32 %v5747_v55, %v5747_v55  ;;  %v5760_v33 = vmax.f32 %v758_v41, 0.0  ;;  %v5785_v50 = vpop.f32.mrf.mxu1 }
 0x180   :  { %v5762_v21 = vmax.f32 %v687_v30, 0.0  ;;  %v1373_v29 = vadd.f32 %v1372_v63, %v1154_v16  ;;  %v760_v58 = vadd.f32 %v5627_v14, %v7347_v52  ;;  %v691_v28 = vadd.f32 %v690_v47, %v4882_v56  ;;  %7377 = vst [vmem:[#allocation120_spill] sm:$0xff] %v5785_v50 }
 0x181   :  { %7373 = vst [vmem:[#allocation116_spill] sm:$0xff] %v5760_v33  ;;  %v764_v20 = vadd.f32 %v5651_v36, %v7343_v48  ;;  %v1473_v18 = vrot.slane %v1469_v61, 7  ;;  %v1360_v3 = vadd.f32 %v1359_v12, %v1217_v2  ;;  %v1090_v32 = vadd.f32 %v1089_v13, %v5745_v42  ;;  %v4311_v36 = vld [vmem:[%s7063_s2 + $0x8] sm:$0x77]  ;;  %v7379_v42 = vld [vmem:[#allocation11_spill] sm:$0xff] }
 0x182   :  { %7374 = vst [vmem:[#allocation117_spill] sm:$0xff] %v5762_v21  ;;  %v1162_v41 = vmul.f32 %v5760_v33, %v5760_v33  ;;  %v1036_v30 = vadd.f32 %v1035_v27, %v5747_v55  ;;  %v1225_v63 = vmul.f32 %v5762_v21, %v5762_v21  ;;  %v5777_v16 = vmax.f32 %v760_v58, 0.0  ;;  %v7399_v55 = vld [vmem:[#allocation50_spill] sm:$0xff] }
 0x183   :  { %v5779_v14 = vmax.f32 %v691_v28, 0.0  ;;  %v1481_v47 = vmul.f32 %v4311_v36, %v1473_v18  ;;  %v1394_v12 = vadd.f32 %v1393_v34, %v1155_v46  ;;  %v1340_v2 = vadd.f32 %v1339_v51, %v1224_v54 }
 0x184   :  { %7375 = vst [vmem:[#allocation118_spill] sm:$0xff] %v5777_v16  ;;  %v693_v13 = vadd.f32 %v692_v38, %v4885_v57  ;;  %v1070_v27 = vadd.f32 %v1069_v24, %v5760_v33  ;;  %v1057_v61 = vadd.f32 %v1056_v37, %v5762_v21  ;;  %v1163_v58 = vmul.f32 %v5777_v16, %v5777_v16 }
 0x185   :  { %7376 = vst [vmem:[#allocation119_spill] sm:$0xff] %v5779_v14  ;;  %v5791_v28 = vmax.f32 %v764_v20, 0.0  ;;  %v1499_v10 = vrot.slane %v1481_v47, %v7379_v42  ;;  %v1503_v6 = vrot.slane %v1481_v47, %v7380_v35  ;;  %v5795_v18 = vadd.f32 %v1373_v29, %v1162_v41  ;;  %v5815_v41 = vpop.f32.mrf.mxu1  ;;  %v7384_v47 = vld [vmem:[#allocation24_spill] sm:$0xff] }
 0x186   :  { %v1232_v34 = vmul.f32 %v5779_v14, %v5779_v14  ;;  %v5799_v51 = vadd.f32 %v1360_v3, %v1225_v63  ;;  %v5802_v24 = vadd.f32 %v1090_v32, %v5777_v16  ;;  %v5805_v37 = vadd.f32 %v1036_v30, %v5779_v14  ;;  %7382 = vst [vmem:[#allocation123_spill] sm:$0xff] %v5815_v41 }
 0x187   :  { %7378 = vst [vmem:[#allocation121_spill] sm:$0xff] %v5791_v28  ;;  %v5807_v46 = vmax.f32 %v693_v13, 0.0  ;;  %v1530_v54 = vmul.f32 %v1499_v10, %v5603_v60  ;;  %v1531_v20 = vmul.f32 %v1503_v6, %v5616_v5  ;;  %v1571_v29 = vrot.slane %v1499_v10, %v7379_v42  ;;  %v7385_v13 = vld [vmem:[#allocation28_spill] sm:$0xff]  ;;  %v5861_v4 = vpop.f32.mrf.mxu1 }
 0x188   :  { %v5813_v38 = vrot.slane %v1503_v6, %v7379_v42  ;;  %v5817_v3 = vadd.f32 %v1394_v12, %v1163_v58  ;;  %v5820_v32 = vadd.f32 %v1070_v27, %v5791_v28  ;;  %v5824_v30 = vmul.f32 %v5791_v28, %v5791_v28  ;;  %v7386_v58 = vld [vmem:[#allocation27_spill] sm:$0xff]  ;;  %v7389_v28 = vld [vmem:[#allocation34_spill] sm:$0xff]  ;;  %7391 = vst [vmem:[#allocation24_spill] sm:$0xff] %v5861_v4  ;;  %v7416_v4 = vld [vmem:[#allocation60_spill] sm:$0xff] }
 0x189   :  { %7381 = vst [vmem:[#allocation122_spill] sm:$0xff] %v5807_v46  ;;  %v5828_v60 = vadd.f32 %v5671_v9, %v7347_v52  ;;  %v1545_v5 = vcombine.low %v1530_v54, %v1531_v20  ;;  %v5830_v10 = vadd.f32 %v1340_v2, %v1232_v34  ;;  %v5833_v6 = vadd.f32 %v1057_v61, %v5807_v46  ;;  %v7387_v54 = vld [vmem:[#allocation30_spill] sm:$0xff]  ;;  %v7388_v34 = vld [vmem:[#allocation32_spill] sm:$0xff]  ;;  %v5915_v17 = vpop.f32.mrf.mxu1 }
 0x18a   :  { %7383 = vst [vmem:[#allocation124_spill] sm:$0xff] %v5820_v32  ;;  %v5837_v63 = vmul.f32 %v5807_v46, %v5807_v46  ;;  %v5840_v12 = vmul.f32 %v1571_v29, %v7384_v47  ;;  %v5844_v27 = vmul.f32 %v5813_v38, %v7385_v13  ;;  %v5847_v9 = vmul.f32 %v1571_v29, %v7386_v58  ;;  %v7390_v47 = vld [vmem:[#allocation36_spill] sm:$0xff]  ;;  %v7392_v13 = vld [vmem:[#allocation38_spill] sm:$0xff] }
 0x18b   :  { %v5851_v2 = vmul.f32 %v5813_v38, %v7387_v54  ;;  %v1549_v61 = vrot.slane %v1545_v5, 6  ;;  %v5854_v20 = vmul.f32 %v1571_v29, %v7388_v34  ;;  %v5858_v16 = vmul.f32 %v5813_v38, %v7389_v28  ;;  %v7394_v54 = vld [vmem:[#allocation42_spill] sm:$0xff]  ;;  %v7395_v34 = vld [vmem:[#allocation44_spill] sm:$0xff]  ;;  %7407 = vst [vmem:[#allocation28_spill] sm:$0xff] %v5915_v17 }
 0x18c   :  { %v1618_v33 = vmul.f32 %v1571_v29, %v7390_v47  ;;  %v5865_v58 = vmul.f32 %v5813_v38, %v7392_v13  ;;  %v5868_v0 = vmul.f32 %v1571_v29, %v7393_v23  ;;  %v5872_v5 = vmul.f32 %v5813_v38, %v7394_v54  ;;  %v7397_v46 = vld [vmem:[#allocation48_spill] sm:$0xff]  ;;  %v7398_v13 = vld [vmem:[#allocation49_spill] sm:$0xff]  ;;  %v694_v23 = vpop.f32.mrf.mxu0  ;;  %v7400_v54 = vld [vmem:[#allocation51_spill] sm:$0xff] }
 0x18d   :  { %v5875_v8 = vmul.f32 %v1571_v29, %v7395_v34  ;;  %v1557_v28 = vsub.f32 %v4311_v36, %v1549_v61  ;;  %v5879_v47 = vmul.f32 %v5813_v38, %v7396_v19  ;;  %v5882_v14 = vmul.f32 %v1571_v29, %v7397_v46  ;;  %v7401_v36 = vld [vmem:[#allocation52_spill] sm:$0xff]  ;;  %v7402_v19 = vld [vmem:[#allocation54_spill] sm:$0xff]  ;;  %v7403_v46 = vld [vmem:[#allocation55_spill] sm:$0xff] }
 0x18e   :  { %v5886_v21 = vmul.f32 %v5813_v38, %v7398_v13  ;;  %v5889_v25 = vmul.f32 %v1571_v29, %v7399_v55  ;;  %v5893_v34 = vmul.f32 %v5813_v38, %v7400_v54  ;;  %v5896_v61 = vmul.f32 %v1571_v29, %v7401_v36  ;;  %v7404_v13 = vld [vmem:[#allocation64_spill] sm:$0xff]  ;;  %v7408_v36 = vld [vmem:[#allocation70_spill] sm:$0xff] }
 0x18f   :  { %v5900_v11 = vmul.f32 %v5813_v38, %v7402_v19  ;;  %v5903_v15 = vmul.f32 %v1571_v29, %v7403_v46  ;;  %v5906_v53 = vmul.f32 %v1571_v29, %v7404_v13  ;;  %v5910_v55 = vmul.f32 %v5813_v38, %v7405_v62  ;;  %v7409_v19 = vld [vmem:[#allocation72_spill] sm:$0xff]  ;;  %v7410_v46 = vld [vmem:[#allocation75_spill] sm:$0xff]  ;;  %v7415_v17 = vld [vmem:[#allocation58_spill] sm:$0xff] }
 0x190   :  { %v5913_v54 = vmul.f32 %v1571_v29, %v7406_v39  ;;  %v5919_v45 = vmul.f32 %v5813_v38, %v7408_v36  ;;  %v5922_v1 = vmul.f32 %v1571_v29, %v7409_v19  ;;  %v5926_v13 = vmul.f32 %v5813_v38, %v7410_v46  ;;  %v7412_v39 = vld [vmem:[#allocation78_spill] sm:$0xff]  ;;  %v696_v46 = vpop.f32.mrf.mxu0 }
 0x191   :  { %v5929_v26 = vmul.f32 %v1571_v29, %v7411_v7  ;;  %v5933_v62 = vmul.f32 %v5813_v38, %v7412_v39  ;;  %v5936_v35 = vmul.f32 %v1571_v29, %v7413_v22  ;;  %v7414_v36 = vld [vmem:[#allocation86_spill] sm:$0xff]  ;;  %v1735_v42 = vrot.slane %v1557_v28, %v7301_v43 }
 0x192   :  { %v5940_v19 = vmul.f32 %v5813_v38, %v7414_v36  ;;  %v1667_v7 = vmul.f32 %v5813_v38, %v7415_v17  ;;  %v1674_v41 = vmul.f32 %v1571_v29, %v7416_v4  ;;  %v1739_v50 = vrot.slane %v1557_v28, %v7303_v44 }
 0x193   :  { %v695_v39 = vadd.f32 %v694_v23, %v4882_v56 }
 0x194   :  { %4549 = shalt.err (!%p4546_p4)  }
 0x195   :  { %38 = dma.hbm_to_vmem [thread:$0]  %s7064_s3, 16384, %s36_s24, [#allocation3]  ;;  %v7417_v22 = vld [vmem:[#allocation62_spill] sm:$0xff]  ;;  %v1775_v4 = vrot.slane %v1735_v42, %v7301_v43  ;;  %v5955_v29 = vmax.f32 %v5828_v60, 0.0  ;;  %v768_v56 = vadd.f32 %v5698_v49, %v7343_v48  ;;  %v5959_v28 = vpop.f32.mrf.mxu1  ;;  %v1779_v23 = vrot.slane %v1739_v50, %v7301_v43 }
 0x196   :  { %v1675_v17 = vmul.f32 %v5813_v38, %v7417_v22  ;;  %v5962_v36 = vmax.f32 %v695_v39, 0.0  ;;  %v697_v44 = vadd.f32 %v696_v46, %v4885_v57  ;;  %v770_v32 = vadd.f32 %v5718_v31, %v7347_v52 }
 0x197   :  { %v5968_v38 = vadd.f32 %v1775_v4, %v5840_v12  ;;  %v5971_v42 = vadd.f32 %v1775_v4, %v5847_v9  ;;  %v5974_v60 = vadd.f32 %v1775_v4, %v5854_v20  ;;  %v5976_v49 = vadd.f32 %v1775_v4, %v1618_v33 }
 0x198   :  { %v5979_v50 = vadd.f32 %v1779_v23, %v5844_v27  ;;  %v5982_v39 = vadd.f32 %v1779_v23, %v5851_v2  ;;  %v5985_v57 = vadd.f32 %v1779_v23, %v5858_v16  ;;  %v5988_v31 = vadd.f32 %v1779_v23, %v5865_v58  ;;  %v6002_v2 = vpop.f32.mrf.mxu1 }
 0x199   :  { %7418 = vst [vmem:[#allocation27_spill] sm:$0xff] %v5968_v38  ;;  %7419 = vst [vmem:[#allocation30_spill] sm:$0xff] %v5971_v42  ;;  %v5991_v12 = vadd.f32 %v1775_v4, %v5868_v0  ;;  %v5994_v9 = vadd.f32 %v1779_v23, %v5872_v5  ;;  %v5997_v33 = vadd.f32 %v1775_v4, %v5875_v8 }
 0x19a   :  { %7420 = vst [vmem:[#allocation32_spill] sm:$0xff] %v5974_v60  ;;  %7421 = vst [vmem:[#allocation34_spill] sm:$0xff] %v5976_v49  ;;  %v6000_v27 = vadd.f32 %v1779_v23, %v5879_v47  ;;  %v6005_v16 = vadd.f32 %v1775_v4, %v5882_v14  ;;  %v6008_v20 = vadd.f32 %v1779_v23, %v5886_v21 }
 0x19b   :  { %7422 = vst [vmem:[#allocation36_spill] sm:$0xff] %v5979_v50  ;;  %7423 = vst [vmem:[#allocation38_spill] sm:$0xff] %v5982_v39  ;;  %v6011_v0 = vadd.f32 %v1775_v4, %v5889_v25  ;;  %v6014_v58 = vadd.f32 %v1779_v23, %v5893_v34  ;;  %v6017_v8 = vadd.f32 %v1775_v4, %v5896_v61  ;;  %v7491_v50 = vld [vmem:[#allocation79_spill] sm:$0xff] }
 0x19c   :  { %7424 = vst [vmem:[#allocation40_spill] sm:$0xff] %v5985_v57  ;;  %7425 = vst [vmem:[#allocation42_spill] sm:$0xff] %v5988_v31  ;;  %v6020_v5 = vadd.f32 %v1779_v23, %v5900_v11  ;;  %v6023_v47 = vadd.f32 %v1775_v4, %v5903_v15  ;;  %v6025_v14 = vadd.f32 %v1779_v23, %v1667_v7  ;;  %v6049_v7 = vpop.f32.mrf.mxu1 }
 0x19d   :  { %7426 = vst [vmem:[#allocation44_spill] sm:$0xff] %v5991_v12  ;;  %7427 = vst [vmem:[#allocation45_spill] sm:$0xff] %v5994_v9  ;;  %v6027_v46 = vadd.f32 %v1775_v4, %v1674_v41  ;;  %v6029_v21 = vadd.f32 %v1779_v23, %v1675_v17  ;;  %v6032_v25 = vadd.f32 %v1775_v4, %v5906_v53  ;;  %v6071_v17 = vmax.f32 %v697_v44, 0.0 }
 0x19e   :  { %7428 = vst [vmem:[#allocation48_spill] sm:$0xff] %v5997_v33  ;;  %7429 = vst [vmem:[#allocation49_spill] sm:$0xff] %v6000_v27  ;;  %v6035_v34 = vadd.f32 %v1779_v23, %v5910_v55  ;;  %v6038_v61 = vadd.f32 %v1775_v4, %v5913_v54  ;;  %v6041_v11 = vadd.f32 %v1779_v23, %v5919_v45  ;;  %v7481_v27 = vld [vmem:[#allocation73_spill] sm:$0xff] }
 0x19f   :  { %7430 = vst [vmem:[#allocation50_spill] sm:$0xff] %v6005_v16  ;;  %7431 = vst [vmem:[#allocation51_spill] sm:$0xff] %v6008_v20  ;;  %v6044_v15 = vadd.f32 %v1775_v4, %v5922_v1  ;;  %v6047_v41 = vadd.f32 %v1779_v23, %v5926_v13  ;;  %v6052_v53 = vadd.f32 %v1775_v4, %v5929_v26  ;;  %v6069_v26 = vmax.f32 %v768_v56, 0.0 }
 0x1a0   :  { %7432 = vst [vmem:[#allocation52_spill] sm:$0xff] %v6011_v0  ;;  %7433 = vst [vmem:[#allocation54_spill] sm:$0xff] %v6014_v58  ;;  %v6055_v55 = vadd.f32 %v1779_v23, %v5933_v62  ;;  %v6058_v54 = vadd.f32 %v1775_v4, %v5936_v35  ;;  %v6061_v45 = vadd.f32 %v1779_v23, %v5940_v19  ;;  %v6073_v62 = vmax.f32 %v770_v32, 0.0 }
 0x1a1   :  { %7434 = vst [vmem:[#allocation55_spill] sm:$0xff] %v6017_v8  ;;  %7435 = vst [vmem:[#allocation64_spill] sm:$0xff] %v6020_v5  ;;  %v1171_v1 = vmul.f32 %v5955_v29, %v5955_v29  ;;  %v1038_v13 = vadd.f32 %v5805_v37, %v5962_v36  ;;  %v1240_v22 = vmul.f32 %v5962_v36, %v5962_v36 }
 0x1a2   :  { %7436 = vst [vmem:[#allocation66_spill] sm:$0xff] %v6023_v47  ;;  %7437 = vst [vmem:[#allocation68_spill] sm:$0xff] %v6025_v14  ;;  %v774_v35 = vadd.f32 %v5740_v59, %v7343_v48  ;;  %v776_v19 = vadd.f32 %v5764_v40, %v7347_v52  ;;  %v1375_v4 = vadd.f32 %v5795_v18, %v5824_v30 }
 0x1a3   :  { %7438 = vst [vmem:[#allocation70_spill] sm:$0xff] %v6027_v46  ;;  %7439 = vst [vmem:[#allocation72_spill] sm:$0xff] %v6029_v21  ;;  %v1362_v37 = vadd.f32 %v5799_v51, %v5837_v63  ;;  %v1039_v23 = vrot.slane %v1038_v13, 4  ;;  %v1342_v56 = vadd.f32 %v5830_v10, %v1240_v22  ;;  %v1178_v44 = vmul.f32 %v6069_v26, %v6069_v26 }
 0x1a4   :  { %7440 = vst [vmem:[#allocation75_spill] sm:$0xff] %v6032_v25  ;;  %7441 = vst [vmem:[#allocation77_spill] sm:$0xff] %v6035_v34  ;;  %v1059_v59 = vadd.f32 %v5833_v6, %v6071_v17  ;;  %v1241_v40 = vmul.f32 %v6071_v17, %v6071_v17  ;;  %v1179_v18 = vmul.f32 %v6073_v62, %v6073_v62  ;;  %v6096_v10 = vmax.f32 %v774_v35, 0.0 }
 0x1a5   :  { %7442 = vst [vmem:[#allocation78_spill] sm:$0xff] %v6038_v61  ;;  %7443 = vst [vmem:[#allocation82_spill] sm:$0xff] %v6041_v11  ;;  %v1092_v51 = vadd.f32 %v5802_v24, %v5955_v29  ;;  %v1040_v32 = vadd.f32 %v1039_v23, %v1038_v13  ;;  %v1343_v30 = vrot.slane %v1342_v56, 4  ;;  %v1396_v63 = vadd.f32 %v5817_v3, %v1171_v1  ;;  %v7451_v1 = vld [vmem:[#allocation120_spill] sm:$0xff] }
 0x1a6   :  { %7444 = vst [vmem:[#allocation86_spill] sm:$0xff] %v6044_v15  ;;  %7445 = vst [vmem:[#allocation58_spill] sm:$0xff] %v6047_v41  ;;  %v1060_v22 = vrot.slane %v1059_v59, 4  ;;  %v7450_v15 = vld [vmem:[#allocation124_spill] sm:$0xff]  ;;  %v1376_v24 = vadd.f32 %v1375_v4, %v1178_v44  ;;  %v1186_v3 = vmul.f32 %v6096_v10, %v6096_v10 }
 0x1a7   :  { %7446 = vst [vmem:[#allocation60_spill] sm:$0xff] %v6052_v53  ;;  %7447 = vst [vmem:[#allocation62_spill] sm:$0xff] %v6055_v55  ;;  %v1363_v53 = vadd.f32 %v1362_v37, %v1241_v40  ;;  %v1041_v6 = vrot.slane %v1040_v32, 2  ;;  %v1344_v55 = vadd.f32 %v1343_v30, %v1342_v56  ;;  %v1072_v61 = vadd.f32 %v7450_v15, %v6069_v26  ;;  %v7452_v40 = vld [vmem:[#allocation123_spill] sm:$0xff] }
 0x1a8   :  { %7448 = vst [vmem:[#allocation125_spill] sm:$0xff] %v6058_v54  ;;  %7449 = vst [vmem:[#allocation126_spill] sm:$0xff] %v6061_v45  ;;  %v6084_v54 = vpop.f32.mrf.mxu1  ;;  %v6099_v45 = vmax.f32 %v776_v19, 0.0  ;;  %v1093_v41 = vadd.f32 %v1092_v51, %v6073_v62  ;;  %v1061_v13 = vadd.f32 %v1060_v22, %v1059_v59  ;;  %v1397_v35 = vadd.f32 %v1396_v63, %v1179_v18  ;;  %v7454_v18 = vld [vmem:[#allocation24_spill] sm:$0xff] }
 0x1a9   :  { %v1364_v23 = vrot.slane %v1363_v53, 4  ;;  %v1042_v25 = vadd.f32 %v1041_v6, %v1040_v32  ;;  %v1345_v46 = vrot.slane %v1344_v55, 2  ;;  %v778_v19 = vadd.f32 %v7451_v1, %v7343_v48 }
 0x1aa   :  { %v6104_v11 = vpop.f32.mrf.mxu1  ;;  %v1062_v37 = vrot.slane %v1061_v13, 2  ;;  %v1187_v15 = vmul.f32 %v6099_v45, %v6099_v45  ;;  %v780_v51 = vadd.f32 %v7452_v40, %v7347_v52  ;;  %v784_v32 = vadd.f32 %v7454_v18, %v7343_v48 }
 0x1ab   :  { %v1365_v56 = vadd.f32 %v1364_v23, %v1363_v53  ;;  %v1043_v4 = vrot.slane %v1042_v25, 1  ;;  %v1346_v44 = vadd.f32 %v1345_v46, %v1344_v55  ;;  %v6114_v59 = vmax.f32 %v778_v19, 0.0  ;;  %v7456_v53 = vld [vmem:[#allocation28_spill] sm:$0xff] }
 0x1ac   :  { %v799_v30 = vpop.f32.mrf.mxu1  ;;  %v1063_v63 = vadd.f32 %v1062_v37, %v1061_v13  ;;  %v6118_v6 = vmax.f32 %v780_v51, 0.0  ;;  %v786_v23 = vadd.f32 %v7456_v53, %v7347_v52  ;;  %v1073_v21 = vadd.f32 %v1072_v61, %v6096_v10 }
 0x1ad   :  { %7453 = vst [vmem:[#allocation124_spill] sm:$0xff] %v6114_v59  ;;  %v1366_v22 = vrot.slane %v1365_v56, 2  ;;  %v1044_v1 = vadd.f32 %v1043_v4, %v1042_v25  ;;  %v1347_v34 = vrot.slane %v1346_v44, 1  ;;  %v1094_v40 = vadd.f32 %v1093_v41, %v6099_v45 }
 0x1ae   :  { %7455 = vst [vmem:[#allocation120_spill] sm:$0xff] %v6118_v6  ;;  %v1064_v46 = vrot.slane %v1063_v63, 1  ;;  %v1194_v19 = vmul.f32 %v6114_v59, %v6114_v59  ;;  %v1195_v13 = vmul.f32 %v6118_v6, %v6118_v6  ;;  %v1377_v18 = vadd.f32 %v1376_v24, %v1186_v3  ;;  %v803_v25 = vpop.f32.mrf.mxu1 }
 0x1af   :  { %v1367_v55 = vadd.f32 %v1366_v22, %v1365_v56  ;;  %v6128_v37 = vmul.f32 0.0078125, %v1044_v1  ;;  %v1348_v51 = vadd.f32 %v1347_v34, %v1346_v44  ;;  %v6130_v47 = vmax.f32 %v784_v32, 0.0 }
 0x1b0   :  { %v1065_v4 = vadd.f32 %v1064_v46, %v1063_v63  ;;  %v1398_v61 = vadd.f32 %v1397_v35, %v1187_v15  ;;  %v6132_v8 = vmax.f32 %v786_v23, 0.0  ;;  %v1074_v22 = vadd.f32 %v1073_v21, %v6114_v59  ;;  %v805_v63 = vpop.f32.mrf.mxu1 }
 0x1b1   :  { %7457 = vst [vmem:[#allocation123_spill] sm:$0xff] %v6130_v47  ;;  %v1368_v53 = vrot.slane %v1367_v55, 1  ;;  %v1416_v41 = vmul.f32 0.0078125, %v1348_v51  ;;  %v1424_v56 = vmul.f32 %v6128_v37, %v6128_v37  ;;  %v1095_v14 = vadd.f32 %v1094_v40, %v6118_v6 }
 0x1b2   :  { %7458 = vst [vmem:[#allocation24_spill] sm:$0xff] %v6132_v8  ;;  %v6138_v1 = vmul.f32 0.0078125, %v1065_v4  ;;  %v1378_v24 = vadd.f32 %v1377_v18, %v1194_v19  ;;  %v1399_v3 = vadd.f32 %v1398_v61, %v1195_v13  ;;  %v1202_v32 = vmul.f32 %v6130_v47, %v6130_v47 }
 0x1b3   :  { %v1369_v34 = vadd.f32 %v1368_v53, %v1367_v55  ;;  %v1432_v44 = vsub.f32 %v1416_v41, %v1424_v56  ;;  %v788_v35 = vadd.f32 %v5959_v28, %v7343_v48  ;;  %v790_v15 = vadd.f32 %v6002_v2, %v7347_v52  ;;  %v807_v56 = vpop.f32.mrf.mxu1 }
 0x1b4   :  { %v1425_v21 = vmul.f32 %v6138_v1, %v6138_v1  ;;  %v1203_v40 = vmul.f32 %v6132_v8, %v6132_v8  ;;  %v794_v46 = vadd.f32 %v6049_v7, %v7343_v48  ;;  %v796_v28 = vadd.f32 %v6084_v54, %v7347_v52 }
 0x1b5   :  { %v1417_v23 = vmul.f32 0.0078125, %v1369_v34  ;;  %v1440_v55 = vmax.f32 %v1432_v44, 0.0  ;;  %v6152_v19 = vmax.f32 %v788_v35, 0.0  ;;  %v6154_v13 = vmax.f32 %v790_v15, 0.0 }
 0x1b6   :  { %v1075_v51 = vadd.f32 %v1074_v22, %v6130_v47  ;;  %v6159_v18 = vmax.f32 %v794_v46, 0.0  ;;  %v798_v4 = vadd.f32 %v6104_v11, %v7343_v48  ;;  %v1096_v61 = vadd.f32 %v1095_v14, %v6132_v8  ;;  %v7501_v8 = vld [vmem:[#allocation122_spill] sm:$0xff] }
 0x1b7   :  { %7459 = vst [vmem:[#allocation28_spill] sm:$0xff] %v6152_v19  ;;  %7460 = vst [vmem:[#allocation127_spill] sm:$0xff] %v6154_v13  ;;  %v1433_v2 = vsub.f32 %v1417_v23, %v1425_v21  ;;  %v1448_v53 = vadd.f32 1e-05, %v1440_v55  ;;  %v1210_v7 = vmul.f32 %v6152_v19, %v6152_v19  ;;  %v800_v41 = vadd.f32 %v799_v30, %v7347_v52 }
 0x1b8   :  { %7461 = vst [vmem:[#allocation128_spill] sm:$0xff] %v6159_v18  ;;  %v1379_v44 = vadd.f32 %v1378_v24, %v1202_v32  ;;  %v1211_v54 = vmul.f32 %v6154_v13, %v6154_v13  ;;  %v6169_v22 = vmax.f32 %v796_v28, 0.0  ;;  %v1400_v35 = vadd.f32 %v1399_v3, %v1203_v40  ;;  %v809_v3 = vpop.f32.mrf.mxu1 }
 0x1b9   :  { %v1441_v34 = vmax.f32 %v1433_v2, 0.0  ;;  %v1076_v15 = vadd.f32 %v1075_v51, %v6152_v19  ;;  %v1218_v11 = vmul.f32 %v6159_v18, %v6159_v18  ;;  %v6174_v14 = vmax.f32 %v798_v4, 0.0  ;;  %v7500_v19 = vld [vmem:[#allocation119_spill] sm:$0xff] }
 0x1ba   :  { %7462 = vst [vmem:[#allocation129_spill] sm:$0xff] %v6169_v22  ;;  %4302 = vrsqrt.f32 %v1448_v53  ;;  %v1380_v21 = vadd.f32 %v1379_v44, %v1210_v7  ;;  %v1097_v30 = vadd.f32 %v1096_v61, %v6154_v13  ;;  %v1401_v46 = vadd.f32 %v1400_v35, %v1211_v54 }
 0x1bb   :  { %7463 = vst [vmem:[#allocation130_spill] sm:$0xff] %v6174_v14  ;;  %v1449_v23 = vadd.f32 1e-05, %v1441_v34  ;;  %v1077_v24 = vadd.f32 %v1076_v15, %v6159_v18  ;;  %v1219_v32 = vmul.f32 %v6169_v22, %v6169_v22  ;;  %v6180_v55 = vmax.f32 %v800_v41, 0.0  ;;  %v7499_v18 = vld [vmem:[#allocation14_spill] sm:$0xff] }
 0x1bc   :  { %v1226_v40 = vmul.f32 %v6174_v14, %v6174_v14  ;;  %v804_v28 = vadd.f32 %v803_v25, %v7343_v48  ;;  %v806_v2 = vadd.f32 %v805_v63, %v7347_v52  ;;  %v1381_v51 = vadd.f32 %v1380_v21, %v1218_v11 }
 0x1bd   :  { %7464 = vst [vmem:[#allocation131_spill] sm:$0xff] %v6180_v55  ;;  %4304 = vrsqrt.f32 %v1449_v23  ;;  %v1098_v4 = vadd.f32 %v1097_v30, %v6169_v22  ;;  %v1227_v53 = vmul.f32 %v6180_v55, %v6180_v55  ;;  %v808_v61 = vadd.f32 %v807_v56, %v7343_v48  ;;  %v7498_v22 = vld [vmem:[#allocation117_spill] sm:$0xff] }
 0x1be   :  { %v1078_v7 = vadd.f32 %v1077_v24, %v6174_v14  ;;  %v6191_v41 = vmax.f32 %v804_v28, 0.0  ;;  %v6193_v34 = vmax.f32 %v806_v2, 0.0  ;;  %v810_v44 = vadd.f32 %v809_v3, %v7347_v52  ;;  %v7497_v14 = vld [vmem:[#allocation115_spill] sm:$0xff] }
 0x1bf   :  { %v1402_v54 = vadd.f32 %v1401_v46, %v1219_v32  ;;  %v1099_v25 = vadd.f32 %v1098_v4, %v6180_v55  ;;  %v6197_v63 = vmax.f32 %v808_v61, 0.0  ;;  %v1382_v35 = vadd.f32 %v1381_v51, %v1226_v40  ;;  %v7496_v55 = vld [vmem:[#allocation113_spill] sm:$0xff] }
 0x1c0   :  { %7465 = vst [vmem:[#allocation132_spill] sm:$0xff] %v6191_v41  ;;  %7466 = vst [vmem:[#allocation133_spill] sm:$0xff] %v6193_v34  ;;  %v1079_v15 = vadd.f32 %v1078_v7, %v6191_v41  ;;  %v1234_v11 = vmul.f32 %v6191_v41, %v6191_v41  ;;  %v1235_v48 = vmul.f32 %v6193_v34, %v6193_v34  ;;  %v6207_v21 = vmax.f32 %v810_v44, 0.0  ;;  %v7495_v41 = vld [vmem:[#allocation111_spill] sm:$0xff] }
 0x1c1   :  { %7467 = vst [vmem:[#allocation134_spill] sm:$0xff] %v6197_v63  ;;  %v1403_v56 = vadd.f32 %v1402_v54, %v1227_v53  ;;  %v1100_v23 = vadd.f32 %v1099_v25, %v6193_v34  ;;  %v1242_v52 = vmul.f32 %v6197_v63, %v6197_v63  ;;  %v7494_v34 = vld [vmem:[#allocation109_spill] sm:$0xff] }
 0x1c2   :  { %7468 = vst [vmem:[#allocation135_spill] sm:$0xff] %v6207_v21  ;;  %v1383_v30 = vadd.f32 %v1382_v35, %v1234_v11  ;;  %v1080_v46 = vadd.f32 %v1079_v15, %v6197_v63  ;;  %v1243_v3 = vmul.f32 %v6207_v21, %v6207_v21  ;;  %v7493_v63 = vld [vmem:[#allocation16_spill] sm:$0xff] }
 0x1c3   :  { %v1404_v24 = vadd.f32 %v1403_v56, %v1235_v48  ;;  %v1101_v32 = vadd.f32 %v1100_v23, %v6207_v21  ;;  %v7492_v21 = vld [vmem:[#allocation87_spill] sm:$0xff] }
 0x1c4   :  { %v1081_v40 = vrot.slane %v1080_v46, 4  ;;  %v1384_v28 = vadd.f32 %v1383_v30, %v1242_v52 }
 0x1c5   :  { %v1102_v2 = vrot.slane %v1101_v32, 4  ;;  %v1405_v51 = vadd.f32 %v1404_v24, %v1243_v3 }
 0x1c6   :  { %v1082_v4 = vadd.f32 %v1081_v40, %v1080_v46  ;;  %v1385_v53 = vrot.slane %v1384_v28, 4  ;;  %v4312_v46 = vld [vmem:[%s7063_s2 + $0x10] sm:$0x77] }
 0x1c7   :  { %v4303_v61 = vpop.eup %4302  ;;  %v1103_v7 = vadd.f32 %v1102_v2, %v1101_v32  ;;  %v1406_v54 = vrot.slane %v1405_v51, 4 }
 0x1c8   :  { %v1083_v44 = vrot.slane %v1082_v4, 2  ;;  %v1386_v25 = vadd.f32 %v1385_v53, %v1384_v28 }
 0x1c9   :  { %v1104_v11 = vrot.slane %v1103_v7, 2  ;;  %v1407_v15 = vadd.f32 %v1406_v54, %v1405_v51  ;;  %v7469_v51 = vld [vmem:[#allocation11_spill] sm:$0xff] }
 0x1ca   :  { %v4305_v35 = vpop.eup %4304  ;;  %v1084_v56 = vadd.f32 %v1083_v44, %v1082_v4  ;;  %v1387_v23 = vrot.slane %v1386_v25, 2  ;;  %v7470_v4 = vld [vmem:[#allocation12_spill] sm:$0xff] }
 0x1cb   :  { %v1470_v48 = vcombine.low %v4303_v61, %v4305_v35  ;;  %v1105_v5 = vadd.f32 %v1104_v11, %v1103_v7  ;;  %v1408_v0 = vrot.slane %v1407_v15, 2 }
 0x1cc   :  { %v1085_v58 = vrot.slane %v1084_v56, 1  ;;  %v1388_v52 = vadd.f32 %v1387_v23, %v1386_v25  ;;  %v7472_v23 = vld [vmem:[#allocation56_spill] sm:$0xff] }
 0x1cd   :  { %v1474_v16 = vrot.slane %v1470_v48, 7  ;;  %v1106_v30 = vrot.slane %v1105_v5, 1  ;;  %v1409_v24 = vadd.f32 %v1408_v0, %v1407_v15  ;;  %v7471_v48 = vld [vmem:[#allocation53_spill] sm:$0xff] }
 0x1ce   :  { %v1086_v3 = vadd.f32 %v1085_v58, %v1084_v56  ;;  %v1389_v40 = vrot.slane %v1388_v52, 1 }
 0x1cf   :  { %v1482_v32 = vmul.f32 %v4312_v46, %v1474_v16  ;;  %v1107_v28 = vadd.f32 %v1106_v30, %v1105_v5  ;;  %v1410_v2 = vrot.slane %v1409_v24, 1 }
 0x1d0   :  { %v6218_v7 = vmul.f32 0.0078125, %v1086_v3  ;;  %v1390_v54 = vadd.f32 %v1389_v40, %v1388_v52  ;;  %v7474_v3 = vld [vmem:[#allocation59_spill] sm:$0xff] }
 0x1d1   :  { %v1507_v53 = vrot.slane %v1482_v32, %v7469_v51  ;;  %v1511_v61 = vrot.slane %v1482_v32, %v7470_v4  ;;  %v6220_v44 = vmul.f32 0.0078125, %v1107_v28  ;;  %v1411_v25 = vadd.f32 %v1410_v2, %v1409_v24  ;;  %v7473_v32 = vld [vmem:[#allocation57_spill] sm:$0xff] }
 0x1d2   :  { %v1418_v11 = vmul.f32 0.0078125, %v1390_v54  ;;  %v1426_v15 = vmul.f32 %v6218_v7, %v6218_v7  ;;  %v7475_v28 = vld [vmem:[#allocation61_spill] sm:$0xff] }
 0x1d3   :  { %v1532_v0 = vmul.f32 %v1507_v53, %v6128_v37  ;;  %v1533_v35 = vmul.f32 %v1511_v61, %v6138_v1  ;;  %v1579_v16 = vrot.slane %v1507_v53, %v7469_v51  ;;  %v1583_v58 = vrot.slane %v1511_v61, %v7469_v51  ;;  %v7476_v53 = vld [vmem:[#allocation63_spill] sm:$0xff]  ;;  %v7477_v54 = vld [vmem:[#allocation65_spill] sm:$0xff] }
 0x1d4   :  { %v1419_v30 = vmul.f32 0.0078125, %v1411_v25  ;;  %v1427_v24 = vmul.f32 %v6220_v44, %v6220_v44  ;;  %v7480_v25 = vld [vmem:[#allocation71_spill] sm:$0xff]  ;;  %v1434_v13 = vsub.f32 %v1418_v11, %v1426_v15 }
 0x1d5   :  { %v1546_v5 = vcombine.low %v1532_v0, %v1533_v35  ;;  %v1596_v56 = vmul.f32 %v1579_v16, %v7471_v48  ;;  %v1597_v52 = vmul.f32 %v1583_v58, %v7472_v23  ;;  %v1604_v1 = vmul.f32 %v1579_v16, %v7473_v32  ;;  %v7478_v35 = vld [vmem:[#allocation67_spill] sm:$0xff]  ;;  %v7479_v48 = vld [vmem:[#allocation69_spill] sm:$0xff]  ;;  %v7483_v32 = vld [vmem:[#allocation80_spill] sm:$0xff] }
 0x1d6   :  { %v1605_v40 = vmul.f32 %v1583_v58, %v7474_v3  ;;  %v1612_v2 = vmul.f32 %v1579_v16, %v7475_v28  ;;  %v1613_v61 = vmul.f32 %v1583_v58, %v7476_v53  ;;  %v1620_v0 = vmul.f32 %v1579_v16, %v7477_v54  ;;  %v7484_v3 = vld [vmem:[#allocation81_spill] sm:$0xff]  ;;  %v7486_v53 = vld [vmem:[#allocation91_spill] sm:$0xff]  ;;  %v7487_v54 = vld [vmem:[#allocation18_spill] sm:$0xff] }
 0x1d7   :  { %v1550_v37 = vrot.slane %v1546_v5, 6  ;;  %v1621_v20 = vmul.f32 %v1583_v58, %v7478_v35  ;;  %v1628_v33 = vmul.f32 %v1579_v16, %v7479_v48  ;;  %v1629_v12 = vmul.f32 %v1583_v58, %v7480_v25  ;;  %v7482_v5 = vld [vmem:[#allocation76_spill] sm:$0xff]  ;;  %v7485_v28 = vld [vmem:[#allocation85_spill] sm:$0xff]  ;;  %v7488_v35 = vld [vmem:[#allocation90_spill] sm:$0xff] }
 0x1d8   :  { %v1636_v9 = vmul.f32 %v1579_v16, %v7481_v27  ;;  %v1637_v49 = vmul.f32 %v1583_v58, %v7482_v5  ;;  %v1644_v60 = vmul.f32 %v1579_v16, %v7483_v32  ;;  %v1645_v31 = vmul.f32 %v1583_v58, %v7484_v3  ;;  %v7489_v48 = vld [vmem:[#allocation15_spill] sm:$0xff] }
 0x1d9   :  { %v1558_v23 = vsub.f32 %v4312_v46, %v1550_v37  ;;  %v1652_v57 = vmul.f32 %v1579_v16, %v7485_v28  ;;  %v1653_v42 = vmul.f32 %v1583_v58, %v7486_v53  ;;  %v1660_v38 = vmul.f32 %v1579_v16, %v7487_v54  ;;  %v7490_v37 = vld [vmem:[#allocation89_spill] sm:$0xff] }
 0x1da   :  { %v1661_v39 = vmul.f32 %v1583_v58, %v7488_v35  ;;  %v1668_v46 = vmul.f32 %v1579_v16, %v7489_v48  ;;  %v1669_v25 = vmul.f32 %v1583_v58, %v7490_v37  ;;  %v1676_v27 = vmul.f32 %v1579_v16, %v7491_v50 }
 0x1db   :  { %v1677_v5 = vmul.f32 %v1583_v58, %v7492_v21  ;;  %v1684_v32 = vmul.f32 %v1579_v16, %v7493_v63  ;;  %v1685_v3 = vmul.f32 %v1583_v58, %v7494_v34  ;;  %v1692_v28 = vmul.f32 %v1579_v16, %v7495_v41 }
 0x1dc   :  { %v1693_v53 = vmul.f32 %v1583_v58, %v7496_v55  ;;  %v1700_v54 = vmul.f32 %v1579_v16, %v7497_v14  ;;  %v1743_v35 = vrot.slane %v1558_v23, %v7301_v43  ;;  %v1701_v48 = vmul.f32 %v1583_v58, %v7498_v22 }
 0x1dd   :  { %v1747_v37 = vrot.slane %v1558_v23, %v7499_v18  ;;  %v1435_v50 = vsub.f32 %v1419_v30, %v1427_v24  ;;  %v1708_v21 = vmul.f32 %v1579_v16, %v7500_v19  ;;  %v1709_v63 = vmul.f32 %v1583_v58, %v7501_v8 }
 0x1de   :  { %v1716_v34 = vmul.f32 %v1579_v16, %v5962_v36  ;;  %v1783_v41 = vrot.slane %v1743_v35, %v7301_v43  ;;  %v1717_v55 = vmul.f32 %v1583_v58, %v6071_v17  ;;  %v1442_v47 = vmax.f32 %v1434_v13, 0.0 }
 0x1df   :  { %v1787_v14 = vrot.slane %v1747_v37, %v7301_v43  ;;  %v1443_v6 = vmax.f32 %v1435_v50, 0.0 }
 0x1e0   :  { %v6266_v59 = vadd.f32 %v1783_v41, %v1596_v56  ;;  %v6268_v22 = vadd.f32 %v1783_v41, %v1604_v1  ;;  %v6270_v11 = vadd.f32 %v1783_v41, %v1612_v2  ;;  %v6272_v15 = vadd.f32 %v1783_v41, %v1620_v0 }
 0x1e1   :  { %v6274_v19 = vadd.f32 %v1787_v14, %v1597_v52  ;;  %v6276_v8 = vadd.f32 %v1787_v14, %v1605_v40  ;;  %v6278_v36 = vadd.f32 %v1787_v14, %v1613_v61  ;;  %v6280_v16 = vadd.f32 %v1787_v14, %v1621_v20 }
 0x1e2   :  { %v6282_v17 = vadd.f32 %v1783_v41, %v1628_v33  ;;  %v6284_v13 = vadd.f32 %v1787_v14, %v1629_v12  ;;  %v6286_v58 = vadd.f32 %v1783_v41, %v1636_v9  ;;  %v6288_v56 = vadd.f32 %v1787_v14, %v1637_v49 }
 0x1e3   :  { %v6290_v30 = vadd.f32 %v1783_v41, %v1644_v60  ;;  %v6292_v24 = vadd.f32 %v1787_v14, %v1645_v31  ;;  %v6294_v52 = vadd.f32 %v1783_v41, %v1652_v57  ;;  %v6296_v1 = vadd.f32 %v1787_v14, %v1653_v42 }
 0x1e4   :  { %v6298_v40 = vadd.f32 %v1783_v41, %v1660_v38  ;;  %v6300_v20 = vadd.f32 %v1787_v14, %v1661_v39  ;;  %v6302_v33 = vadd.f32 %v1783_v41, %v1668_v46  ;;  %v6304_v12 = vadd.f32 %v1787_v14, %v1669_v25 }
 0x1e5   :  { %7502 = vst [vmem:[#allocation53_spill] sm:$0xff] %v6294_v52  ;;  %v6306_v9 = vadd.f32 %v1783_v41, %v1676_v27  ;;  %v6308_v49 = vadd.f32 %v1787_v14, %v1677_v5  ;;  %v6310_v60 = vadd.f32 %v1783_v41, %v1684_v32  ;;  %v6312_v31 = vadd.f32 %v1787_v14, %v1685_v3 }
 0x1e6   :  { %7503 = vst [vmem:[#allocation56_spill] sm:$0xff] %v6298_v40  ;;  %7504 = vst [vmem:[#allocation57_spill] sm:$0xff] %v6300_v20  ;;  %v6314_v57 = vadd.f32 %v1783_v41, %v1692_v28  ;;  %v6316_v42 = vadd.f32 %v1787_v14, %v1693_v53  ;;  %v6318_v38 = vadd.f32 %v1783_v41, %v1700_v54  ;;  %v1450_v46 = vadd.f32 1e-05, %v1442_v47  ;;  %v4313_v28 = vld [vmem:[%s7063_s2 + $0x18] sm:$0x77] }
 0x1e7   :  { %7505 = vst [vmem:[#allocation59_spill] sm:$0xff] %v6302_v33  ;;  %7506 = vst [vmem:[#allocation61_spill] sm:$0xff] %v6304_v12  ;;  %v6320_v39 = vadd.f32 %v1787_v14, %v1701_v48  ;;  %v6322_v2 = vadd.f32 %v1783_v41, %v1708_v21  ;;  %v6324_v61 = vadd.f32 %v1787_v14, %v1709_v63  ;;  %v1451_v25 = vadd.f32 1e-05, %v1443_v6  ;;  %v7519_v63 = vld [vmem:[#allocation88_spill] sm:$0xff]  ;;  %v7543_v33 = vld [vmem:[#allocation133_spill] sm:$0xff] }
 0x1e8   :  { %7507 = vst [vmem:[#allocation63_spill] sm:$0xff] %v6306_v9  ;;  %7508 = vst [vmem:[#allocation65_spill] sm:$0xff] %v6308_v49  ;;  %v6326_v0 = vadd.f32 %v1783_v41, %v1716_v34  ;;  %v6328_v23 = vadd.f32 %v1787_v14, %v1717_v55  ;;  %4306 = vrsqrt.f32 %v1450_v46  ;;  %v7520_v41 = vld [vmem:[#allocation84_spill] sm:$0xff]  ;;  %v7521_v14 = vld [vmem:[#allocation74_spill] sm:$0xff] }
 0x1e9   :  { %7509 = vst [vmem:[#allocation67_spill] sm:$0xff] %v6310_v60  ;;  %7510 = vst [vmem:[#allocation69_spill] sm:$0xff] %v6312_v31  ;;  %4308 = vrsqrt.f32 %v1451_v25  ;;  %v7522_v25 = vld [vmem:[#allocation17_spill] sm:$0xff]  ;;  %v7540_v9 = vld [vmem:[#allocation130_spill] sm:$0xff] }
 0x1ea   :  { %7511 = vst [vmem:[#allocation71_spill] sm:$0xff] %v6314_v57  ;;  %7512 = vst [vmem:[#allocation73_spill] sm:$0xff] %v6316_v42  ;;  %v7536_v57 = vld [vmem:[#allocation28_spill] sm:$0xff]  ;;  %v7539_v60 = vld [vmem:[#allocation129_spill] sm:$0xff] }
 0x1eb   :  { %7513 = vst [vmem:[#allocation76_spill] sm:$0xff] %v6318_v38  ;;  %7514 = vst [vmem:[#allocation80_spill] sm:$0xff] %v6320_v39  ;;  %v7535_v38 = vld [vmem:[#allocation24_spill] sm:$0xff]  ;;  %v7537_v39 = vld [vmem:[#allocation127_spill] sm:$0xff] }
 0x1ec   :  { %7515 = vst [vmem:[#allocation81_spill] sm:$0xff] %v6322_v2  ;;  %7516 = vst [vmem:[#allocation85_spill] sm:$0xff] %v6324_v61  ;;  %v7534_v61 = vld [vmem:[#allocation123_spill] sm:$0xff]  ;;  %v7538_v42 = vld [vmem:[#allocation128_spill] sm:$0xff] }
 0x1ed   :  { %7517 = vst [vmem:[#allocation91_spill] sm:$0xff] %v6326_v0  ;;  %7518 = vst [vmem:[#allocation18_spill] sm:$0xff] %v6328_v23  ;;  %v7541_v31 = vld [vmem:[#allocation131_spill] sm:$0xff]  ;;  %v7542_v49 = vld [vmem:[#allocation132_spill] sm:$0xff] }
 0x1ee   :  { %v7544_v40 = vld [vmem:[#allocation134_spill] sm:$0xff]  ;;  %v7545_v20 = vld [vmem:[#allocation135_spill] sm:$0xff] }
 0x1f5   :  { %v4307_v27 = vpop.eup %4306 }
 0x1f6   :  { %v4309_v5 = vpop.eup %4308 }
 0x1f7   :  { %v1471_v32 = vcombine.low %v4307_v27, %v4309_v5  ;;  %v7523_v5 = vld [vmem:[#allocation83_spill] sm:$0xff] }
 0x1f9   :  { %v1475_v3 = vrot.slane %v1471_v32, 7 }
 0x1fb   :  { %v1483_v53 = vmul.f32 %v4313_v28, %v1475_v3 }
 0x1fd   :  { %v1515_v54 = vrot.slane %v1483_v53, %v7469_v51  ;;  %v1519_v35 = vrot.slane %v1483_v53, %v7470_v4 }
 0x1ff   :  { %v1534_v48 = vmul.f32 %v1515_v54, %v6218_v7  ;;  %v1535_v47 = vmul.f32 %v1519_v35, %v6220_v44  ;;  %v1587_v6 = vrot.slane %v1515_v54, %v7469_v51  ;;  %v1591_v37 = vrot.slane %v1519_v35, %v7469_v51  ;;  %v7524_v7 = vld [vmem:[#allocation92_spill] sm:$0xff]  ;;  %v7525_v44 = vld [vmem:[#allocation19_spill] sm:$0xff]  ;;  %v7526_v54 = vld [vmem:[#allocation110_spill] sm:$0xff] }
 0x200   :  { %v7527_v35 = vld [vmem:[#allocation112_spill] sm:$0xff] }
 0x201   :  { %v1547_v50 = vcombine.low %v1534_v48, %v1535_v47  ;;  %v1598_v34 = vmul.f32 %v1587_v6, %v7519_v63  ;;  %v1599_v55 = vmul.f32 %v1591_v37, %v7520_v41  ;;  %v1606_v46 = vmul.f32 %v1587_v6, %v7521_v14  ;;  %v7528_v47 = vld [vmem:[#allocation114_spill] sm:$0xff]  ;;  %v7529_v63 = vld [vmem:[#allocation116_spill] sm:$0xff]  ;;  %v7531_v14 = vld [vmem:[#allocation121_spill] sm:$0xff] }
 0x202   :  { %v1607_v27 = vmul.f32 %v1591_v37, %v7522_v25  ;;  %v1614_v32 = vmul.f32 %v1587_v6, %v7523_v5  ;;  %v1615_v53 = vmul.f32 %v1591_v37, %v7524_v7  ;;  %v1622_v4 = vmul.f32 %v1587_v6, %v7525_v44  ;;  %v7530_v41 = vld [vmem:[#allocation118_spill] sm:$0xff]  ;;  %v7532_v44 = vld [vmem:[#allocation124_spill] sm:$0xff] }
 0x203   :  { %v1551_v21 = vrot.slane %v1547_v50, 6  ;;  %v1623_v0 = vmul.f32 %v1591_v37, %v7526_v54  ;;  %v1630_v48 = vmul.f32 %v1587_v6, %v7527_v35  ;;  %v1631_v50 = vmul.f32 %v1591_v37, %v7528_v47  ;;  %v7533_v35 = vld [vmem:[#allocation120_spill] sm:$0xff] }
 0x204   :  { %v1638_v51 = vmul.f32 %v1587_v6, %v7529_v63  ;;  %v1639_v2 = vmul.f32 %v1591_v37, %v7530_v41  ;;  %v1646_v23 = vmul.f32 %v1587_v6, %v7531_v14  ;;  %v1647_v25 = vmul.f32 %v1591_v37, %v5955_v29 }
 0x205   :  { %v1559_v3 = vsub.f32 %v4313_v28, %v1551_v21  ;;  %v1654_v28 = vmul.f32 %v1587_v6, %v6069_v26  ;;  %v1655_v21 = vmul.f32 %v1591_v37, %v6073_v62  ;;  %v1662_v5 = vmul.f32 %v1587_v6, %v6096_v10 }
 0x206   :  { %v1663_v7 = vmul.f32 %v1591_v37, %v6099_v45  ;;  %v1670_v54 = vmul.f32 %v1587_v6, %v7532_v44  ;;  %v1671_v47 = vmul.f32 %v1591_v37, %v7533_v35  ;;  %v1678_v63 = vmul.f32 %v1587_v6, %v7534_v61 }
 0x207   :  { %v1679_v41 = vmul.f32 %v1591_v37, %v7535_v38  ;;  %v1686_v14 = vmul.f32 %v1587_v6, %v7536_v57  ;;  %v1751_v29 = vrot.slane %v1559_v3, %v7301_v43  ;;  %v1687_v26 = vmul.f32 %v1591_v37, %v7537_v39 }
 0x208   :  { %v1694_v62 = vmul.f32 %v1587_v6, %v7538_v42  ;;  %v1695_v10 = vmul.f32 %v1591_v37, %v7539_v60  ;;  %v1755_v45 = vrot.slane %v1559_v3, %v7499_v18  ;;  %v1702_v44 = vmul.f32 %v1587_v6, %v7540_v9 }
 0x209   :  { %v1703_v35 = vmul.f32 %v1591_v37, %v7541_v31  ;;  %v1710_v61 = vmul.f32 %v1587_v6, %v7542_v49  ;;  %v1791_v38 = vrot.slane %v1751_v29, %v7301_v43  ;;  %v1711_v57 = vmul.f32 %v1591_v37, %v7543_v33 }
 0x20a   :  { %v1718_v12 = vmul.f32 %v1587_v6, %v7544_v40  ;;  %v1719_v39 = vmul.f32 %v1591_v37, %v7545_v20  ;;  %v1795_v42 = vrot.slane %v1755_v45, %v7301_v43 }
 0x20b   :  { %v6375_v52 = vadd.f32 %v1791_v38, %v1598_v34  ;;  %v6377_v60 = vadd.f32 %v1791_v38, %v1606_v46  ;;  %v6379_v3 = vadd.f32 %v1791_v38, %v1614_v32  ;;  %v6381_v9 = vadd.f32 %v1791_v38, %v1622_v4 }
 0x20c   :  { %v6383_v31 = vadd.f32 %v1795_v42, %v1599_v55  ;;  %v6385_v49 = vadd.f32 %v1795_v42, %v1607_v27  ;;  %v6387_v29 = vadd.f32 %v1795_v42, %v1615_v53  ;;  %v6389_v33 = vadd.f32 %v1795_v42, %v1623_v0 }
 0x20d   :  { %v6391_v40 = vadd.f32 %v1791_v38, %v1630_v48  ;;  %v6393_v20 = vadd.f32 %v1795_v42, %v1631_v50  ;;  %v6395_v6 = vadd.f32 %v1791_v38, %v1638_v51  ;;  %v6397_v37 = vadd.f32 %v1795_v42, %v1639_v2 }
 0x20e   :  { %v6399_v34 = vadd.f32 %v1791_v38, %v1646_v23  ;;  %v6401_v4 = vadd.f32 %v1795_v42, %v1647_v25  ;;  %v6403_v55 = vadd.f32 %v1791_v38, %v1654_v28  ;;  %v6405_v46 = vadd.f32 %v1795_v42, %v1655_v21 }
 0x20f   :  { %v6407_v27 = vadd.f32 %v1791_v38, %v1662_v5  ;;  %v6409_v0 = vadd.f32 %v1795_v42, %v1663_v7  ;;  %v6411_v32 = vadd.f32 %v1791_v38, %v1670_v54  ;;  %v6413_v53 = vadd.f32 %v1795_v42, %v1671_v47 }
 0x210   :  { %v6415_v51 = vadd.f32 %v1791_v38, %v1678_v63  ;;  %v6417_v2 = vadd.f32 %v1795_v42, %v1679_v41  ;;  %v6419_v23 = vadd.f32 %v1791_v38, %v1686_v14  ;;  %v6421_v48 = vadd.f32 %v1795_v42, %v1687_v26 }
 0x211   :  { %v6423_v50 = vadd.f32 %v1791_v38, %v1694_v62  ;;  %v6425_v25 = vadd.f32 %v1795_v42, %v1695_v10  ;;  %v6427_v28 = vadd.f32 %v1791_v38, %v1702_v44  ;;  %v6429_v21 = vadd.f32 %v1795_v42, %v1703_v35 }
 0x212   :  { %v6431_v5 = vadd.f32 %v1791_v38, %v1710_v61  ;;  %v6433_v7 = vadd.f32 %v1795_v42, %v1711_v57  ;;  %v6435_v54 = vadd.f32 %v1791_v38, %v1718_v12  ;;  %v6437_v47 = vadd.f32 %v1795_v42, %v1719_v39 }
 0x213   :  { %7546 = vst [vmem:[#allocation90_spill] sm:$0xff] %v6423_v50  ;;  %7547 = vst [vmem:[#allocation15_spill] sm:$0xff] %v6427_v28 }
 0x214   :  { %7548 = vst [vmem:[#allocation89_spill] sm:$0xff] %v6431_v5  ;;  %7549 = vst [vmem:[#allocation79_spill] sm:$0xff] %v6433_v7 }
 0x215   :  { %7550 = vst [vmem:[#allocation87_spill] sm:$0xff] %v6435_v54  ;;  %7551 = vst [vmem:[#allocation16_spill] sm:$0xff] %v6437_v47 }
 0x216   :  { %4550 = dma.done.wait [#allocation3], 16384 }
 0x217   :  { %4551 = vsyncadd [#allocation3], 4294950912  ;;  %v7552_v63 = vld [vmem:[#allocation29_spill] sm:$0xff]  ;;  %v7553_v41 = vld [vmem:[#allocation31_spill] sm:$0xff] }
 0x218   :  { %v1930_v14 = vpack.c.bf16 %v7553_v41, %v7552_v63  ;;  %v7554_v26 = vld [vmem:[#allocation36_spill] sm:$0xff]  ;;  %v7555_v62 = vld [vmem:[#allocation38_spill] sm:$0xff]  ;;  %v7558_v18 = vld [vmem:[#allocation27_spill] sm:$0xff] }
 0x219   :  { %v1932_v10 = vpack.c.bf16 %v7555_v62, %v7554_v26  ;;  %v4314_v45 = vld [vmem:[#allocation2 + $0x74] ss:$8 sps:$4 sm:$0xff]   ;;  %v4318_v35 = vld [vmem:[#allocation2 + $0x70] ss:$8 sps:$4 sm:$0xff]   ;;  %v4320_v12 = vld [vmem:[#allocation2 + $0x64] ss:$8 sps:$4 sm:$0xff]  }
 0x21a   :  { %2812 = vmatprep.mubr.bf16.mxu0 %v1930_v14  ;;  %v4316_v44 = vld [vmem:[#allocation2 + $0x174] ss:$8 sps:$4 sm:$0xff]   ;;  %2780 = vmatprep.subr.bf16.mxu0 %v4314_v45  ;;  %v4319_v61 = vld [vmem:[#allocation2 + $0x170] ss:$8 sps:$4 sm:$0xff]   ;;  %v4322_v38 = vld [vmem:[#allocation2 + $0x164] ss:$8 sps:$4 sm:$0xff]  }
 0x21b   :  { %2925 = vmatprep.mubr.bf16.mxu1 %v1932_v10  ;;  %2893 = vmatprep.subr.bf16.mxu1 %v4316_v44  ;;  %v4324_v57 = vld [vmem:[#allocation2 + $0x60] ss:$8 sps:$4 sm:$0xff]   ;;  %v4326_v42 = vld [vmem:[#allocation2 + $0x54] ss:$8 sps:$4 sm:$0xff]   ;;  %v4330_v41 = vld [vmem:[#allocation2 + $0x50] ss:$8 sps:$4 sm:$0xff]  }
 0x21c   :  { %2781 = vmatpush1.bf16.msra.mxu0 %v4318_v35  ;;  %2894 = vmatpush1.bf16.msra.mxu1 %v4319_v61  ;;  %v4325_v39 = vld [vmem:[#allocation2 + $0x160] ss:$8 sps:$4 sm:$0xff]   ;;  %v4328_v63 = vld [vmem:[#allocation2 + $0x154] ss:$8 sps:$4 sm:$0xff]   ;;  %v4331_v26 = vld [vmem:[#allocation2 + $0x150] ss:$8 sps:$4 sm:$0xff]  }
 0x21d   :  { %2782 = vmatprep.subr.bf16.mxu0 %v4320_v12  ;;  %2895 = vmatprep.subr.bf16.mxu1 %v4322_v38  ;;  %v4332_v14 = vld [vmem:[#allocation2 + $0x44] ss:$8 sps:$4 sm:$0xff]   ;;  %v4336_v10 = vld [vmem:[#allocation2 + $0x40] ss:$8 sps:$4 sm:$0xff]   ;;  %v4338_v44 = vld [vmem:[#allocation2 + $0x34] ss:$8 sps:$4 sm:$0xff]  }
 0x21e   :  { %v4334_v62 = vld [vmem:[#allocation2 + $0x144] ss:$8 sps:$4 sm:$0xff]   ;;  %v4337_v45 = vld [vmem:[#allocation2 + $0x140] ss:$8 sps:$4 sm:$0xff]   ;;  %v4340_v35 = vld [vmem:[#allocation2 + $0x134] ss:$8 sps:$4 sm:$0xff]  }
 0x21f   :  { %v4342_v61 = vld [vmem:[#allocation2 + $0x30] ss:$8 sps:$4 sm:$0xff]   ;;  %v4344_v38 = vld [vmem:[#allocation2 + $0x24] ss:$8 sps:$4 sm:$0xff]  }
 0x220   :  { %2783 = vmatpush1.bf16.msra.mxu0 %v4324_v57  ;;  %2896 = vmatpush1.bf16.msra.mxu1 %v4325_v39  ;;  %v4343_v12 = vld [vmem:[#allocation2 + $0x130] ss:$8 sps:$4 sm:$0xff]   ;;  %v4346_v57 = vld [vmem:[#allocation2 + $0x124] ss:$8 sps:$4 sm:$0xff]   ;;  %v4348_v39 = vld [vmem:[#allocation2 + $0x20] ss:$8 sps:$4 sm:$0xff]  }
 0x221   :  { %2784 = vmatprep.subr.bf16.mxu0 %v4326_v42  ;;  %2897 = vmatprep.subr.bf16.mxu1 %v4328_v63  ;;  %v4349_v42 = vld [vmem:[#allocation2 + $0x120] ss:$8 sps:$4 sm:$0xff]   ;;  %v4350_v63 = vld [vmem:[#allocation2 + $0x14] ss:$8 sps:$4 sm:$0xff]   ;;  %v4422_v7 = vld [vmem:[#allocation2 + $0x250] ss:$8 sps:$4 sm:$0xff]  }
 0x222   :  { %v7559_v43 = vld [vmem:[#allocation30_spill] sm:$0xff] }
 0x223   :  { %v1931_v54 = vpack.c.bf16 %v7559_v43, %v7558_v18  ;;  %v4424_v43 = vld [vmem:[#allocation2 + $0x254] ss:$8 sps:$4 sm:$0xff]   ;;  %v4466_v50 = vld [vmem:[#allocation2 + $0x2e4] ss:$8 sps:$4 sm:$0xff]  }
 0x224   :  { %2785 = vmatpush1.bf16.msra.mxu0 %v4330_v41  ;;  %2898 = vmatpush1.bf16.msra.mxu1 %v4331_v26  ;;  %v4352_v41 = vld [vmem:[#allocation2 + $0x114] ss:$8 sps:$4 sm:$0xff]   ;;  %v4354_v26 = vld [vmem:[#allocation2 + $0x10] ss:$8 sps:$4 sm:$0xff]  }
 0x225   :  { %2786 = vmatprep.subr.bf16.mxu0 %v4332_v14  ;;  %2899 = vmatprep.subr.bf16.mxu1 %v4334_v62  ;;  %v4355_v14 = vld [vmem:[#allocation2 + $0x110] ss:$8 sps:$4 sm:$0xff]   ;;  %v4356_v62 = vld [vmem:[#allocation2 + $0x4] ss:$8 sps:$4 sm:$0xff]   ;;  %v4427_v18 = vld [vmem:[#allocation2 + $0x354] ss:$8 sps:$4 sm:$0xff]  }
 0x228   :  { %2787 = vmatpush1.bf16.msra.mxu0 %v4336_v10  ;;  %2900 = vmatpush1.bf16.msra.mxu1 %v4337_v45  ;;  %v4358_v10 = vld [vmem:[#allocation2 + $0x104] ss:$8 sps:$4 sm:$0xff]   ;;  %v4360_v45 = vld [vmem:[#allocation2] ss:$8 sps:$4 sm:$0xff]  }
 0x229   :  { %2788 = vmatprep.subr.bf16.mxu0 %v4338_v44  ;;  %2901 = vmatprep.subr.bf16.mxu1 %v4340_v35  ;;  %v4361_v44 = vld [vmem:[#allocation2 + $0x100] ss:$8 sps:$4 sm:$0xff]   ;;  %v4362_v35 = vld [vmem:[#allocation2 + $0xf4] ss:$8 sps:$4 sm:$0xff]  }
 0x22c   :  { %2789 = vmatpush1.bf16.msra.mxu0 %v4342_v61  ;;  %2902 = vmatpush1.bf16.msra.mxu1 %v4343_v12  ;;  %v4364_v61 = vld [vmem:[#allocation2 + $0x1f4] ss:$8 sps:$4 sm:$0xff]   ;;  %v4366_v12 = vld [vmem:[#allocation2 + $0xf0] ss:$8 sps:$4 sm:$0xff]  }
 0x22d   :  { %2790 = vmatprep.subr.bf16.mxu0 %v4344_v38  ;;  %2903 = vmatprep.subr.bf16.mxu1 %v4346_v57  ;;  %v4367_v38 = vld [vmem:[#allocation2 + $0x1f0] ss:$8 sps:$4 sm:$0xff]   ;;  %v4368_v57 = vld [vmem:[#allocation2 + $0xe4] ss:$8 sps:$4 sm:$0xff]  }
 0x230   :  { %2791 = vmatpush1.bf16.msra.mxu0 %v4348_v39  ;;  %2904 = vmatpush1.bf16.msra.mxu1 %v4349_v42  ;;  %v4370_v39 = vld [vmem:[#allocation2 + $0x1e4] ss:$8 sps:$4 sm:$0xff]   ;;  %v4372_v42 = vld [vmem:[#allocation2 + $0xe0] ss:$8 sps:$4 sm:$0xff]  }
 0x231   :  { %2792 = vmatprep.subr.bf16.mxu0 %v4350_v63  ;;  %2905 = vmatprep.subr.bf16.mxu1 %v4352_v41  ;;  %v4373_v63 = vld [vmem:[#allocation2 + $0x1e0] ss:$8 sps:$4 sm:$0xff]   ;;  %v4374_v41 = vld [vmem:[#allocation2 + $0xd4] ss:$8 sps:$4 sm:$0xff]  }
 0x234   :  { %2793 = vmatpush1.bf16.msra.mxu0 %v4354_v26  ;;  %2906 = vmatpush1.bf16.msra.mxu1 %v4355_v14  ;;  %v4376_v26 = vld [vmem:[#allocation2 + $0x1d4] ss:$8 sps:$4 sm:$0xff]   ;;  %v4378_v14 = vld [vmem:[#allocation2 + $0xd0] ss:$8 sps:$4 sm:$0xff]  }
 0x235   :  { %2794 = vmatprep.subr.bf16.mxu0 %v4356_v62  ;;  %2907 = vmatprep.subr.bf16.mxu1 %v4358_v10  ;;  %v4379_v62 = vld [vmem:[#allocation2 + $0x1d0] ss:$8 sps:$4 sm:$0xff]   ;;  %v4380_v10 = vld [vmem:[#allocation2 + $0xc4] ss:$8 sps:$4 sm:$0xff]  }
 0x238   :  { %2795 = vmatpush1.bf16.msra.mxu0 %v4360_v45  ;;  %2908 = vmatpush1.bf16.msra.mxu1 %v4361_v44  ;;  %v4382_v45 = vld [vmem:[#allocation2 + $0x1c4] ss:$8 sps:$4 sm:$0xff]   ;;  %v4384_v44 = vld [vmem:[#allocation2 + $0xc0] ss:$8 sps:$4 sm:$0xff]  }
 0x239   :  { %2796 = vmatprep.subr.bf16.mxu0 %v4362_v35  ;;  %2909 = vmatprep.subr.bf16.mxu1 %v4364_v61  ;;  %v4385_v35 = vld [vmem:[#allocation2 + $0x1c0] ss:$8 sps:$4 sm:$0xff]   ;;  %v4386_v61 = vld [vmem:[#allocation2 + $0xb4] ss:$8 sps:$4 sm:$0xff]  }
 0x23c   :  { %2797 = vmatpush2.bf16.msra.mxu0 %v4366_v12  ;;  %2910 = vmatpush2.bf16.msra.mxu1 %v4367_v38  ;;  %v4388_v12 = vld [vmem:[#allocation2 + $0x1b4] ss:$8 sps:$4 sm:$0xff]   ;;  %v4390_v38 = vld [vmem:[#allocation2 + $0xb0] ss:$8 sps:$4 sm:$0xff]  }
 0x23d   :  { %2798 = vmatprep.subr.bf16.mxu0 %v4368_v57  ;;  %2911 = vmatprep.subr.bf16.mxu1 %v4370_v39  ;;  %v4391_v57 = vld [vmem:[#allocation2 + $0x1b0] ss:$8 sps:$4 sm:$0xff]   ;;  %v4392_v39 = vld [vmem:[#allocation2 + $0xa4] ss:$8 sps:$4 sm:$0xff]  }
 0x240   :  { %2799 = vmatpush2.bf16.msra.mxu0 %v4372_v42  ;;  %2912 = vmatpush2.bf16.msra.mxu1 %v4373_v63  ;;  %v4394_v42 = vld [vmem:[#allocation2 + $0x1a4] ss:$8 sps:$4 sm:$0xff]   ;;  %v4396_v63 = vld [vmem:[#allocation2 + $0xa0] ss:$8 sps:$4 sm:$0xff]  }
 0x241   :  { %2800 = vmatprep.subr.bf16.mxu0 %v4374_v41  ;;  %2913 = vmatprep.subr.bf16.mxu1 %v4376_v26  ;;  %v4397_v41 = vld [vmem:[#allocation2 + $0x1a0] ss:$8 sps:$4 sm:$0xff]   ;;  %v4398_v26 = vld [vmem:[#allocation2 + $0x94] ss:$8 sps:$4 sm:$0xff]  }
 0x244   :  { %2801 = vmatpush2.bf16.msra.mxu0 %v4378_v14  ;;  %2914 = vmatpush2.bf16.msra.mxu1 %v4379_v62  ;;  %v4400_v14 = vld [vmem:[#allocation2 + $0x194] ss:$8 sps:$4 sm:$0xff]   ;;  %v4402_v62 = vld [vmem:[#allocation2 + $0x90] ss:$8 sps:$4 sm:$0xff]  }
 0x245   :  { %2802 = vmatprep.subr.bf16.mxu0 %v4380_v10  ;;  %2915 = vmatprep.subr.bf16.mxu1 %v4382_v45  ;;  %v4403_v10 = vld [vmem:[#allocation2 + $0x190] ss:$8 sps:$4 sm:$0xff]   ;;  %v4404_v45 = vld [vmem:[#allocation2 + $0x84] ss:$8 sps:$4 sm:$0xff]  }
 0x248   :  { %2803 = vmatpush2.bf16.msra.mxu0 %v4384_v44  ;;  %2916 = vmatpush2.bf16.msra.mxu1 %v4385_v35  ;;  %v4406_v44 = vld [vmem:[#allocation2 + $0x184] ss:$8 sps:$4 sm:$0xff]   ;;  %v4408_v35 = vld [vmem:[#allocation2 + $0x80] ss:$8 sps:$4 sm:$0xff]  }
 0x249   :  { %2804 = vmatprep.subr.bf16.mxu0 %v4386_v61  ;;  %2917 = vmatprep.subr.bf16.mxu1 %v4388_v12  ;;  %v4409_v61 = vld [vmem:[#allocation2 + $0x180] ss:$8 sps:$4 sm:$0xff]   ;;  %v4412_v12 = vld [vmem:[#allocation2 + $0x274] ss:$8 sps:$4 sm:$0xff]  }
 0x24c   :  { %2805 = vmatpush2.bf16.msra.mxu0 %v4390_v38  ;;  %2918 = vmatpush2.bf16.msra.mxu1 %v4391_v57  ;;  %v4415_v38 = vld [vmem:[#allocation2 + $0x374] ss:$8 sps:$4 sm:$0xff]  }
 0x24d   :  { %2806 = vmatprep.subr.bf16.mxu0 %v4392_v39  ;;  %2919 = vmatprep.subr.bf16.mxu1 %v4394_v42  ;;  %v7556_v57 = vld [vmem:[#allocation20_spill] sm:$0xff]  ;;  %v7557_v39 = vld [vmem:[#allocation22_spill] sm:$0xff] }
 0x24e   :  { %v1929_v42 = vpack.c.bf16 %v7557_v39, %v7556_v57  ;;  %v4416_v57 = vld [vmem:[#allocation2 + $0x260] ss:$8 sps:$4 sm:$0xff]  }
 0x24f   :  { %v4419_v39 = vld [vmem:[#allocation2 + $0x360] ss:$8 sps:$4 sm:$0xff]  }
 0x250   :  { %2807 = vmatpush2.bf16.msra.mxu0 %v4396_v63  ;;  %2920 = vmatpush2.bf16.msra.mxu1 %v4397_v41  ;;  %v4410_v63 = vld [vmem:[#allocation2 + $0x270] ss:$8 sps:$4 sm:$0xff]  }
 0x251   :  { %2808 = vmatprep.subr.bf16.mxu0 %v4398_v26  ;;  %2921 = vmatprep.subr.bf16.mxu1 %v4400_v14  ;;  %v4413_v41 = vld [vmem:[#allocation2 + $0x370] ss:$8 sps:$4 sm:$0xff]   ;;  %v4418_v26 = vld [vmem:[#allocation2 + $0x264] ss:$8 sps:$4 sm:$0xff]  }
 0x252   :  { %v4421_v14 = vld [vmem:[#allocation2 + $0x364] ss:$8 sps:$4 sm:$0xff]  }
 0x254   :  { %2809 = vmatpush2.bf16.msra.mxu0 %v4402_v62  ;;  %2922 = vmatpush2.bf16.msra.mxu1 %v4403_v10  ;;  %v7560_v62 = vld [vmem:[#allocation33_spill] sm:$0xff]  ;;  %v7561_v10 = vld [vmem:[#allocation35_spill] sm:$0xff] }
 0x255   :  { %2810 = vmatprep.subr.bf16.mxu0 %v4404_v45  ;;  %2923 = vmatprep.subr.bf16.mxu1 %v4406_v44  ;;  %v1938_v5 = vpack.c.bf16 %v7561_v10, %v7560_v62  ;;  %v7562_v45 = vld [vmem:[#allocation40_spill] sm:$0xff]  ;;  %v7563_v44 = vld [vmem:[#allocation42_spill] sm:$0xff] }
 0x256   :  { %v1940_v47 = vpack.c.bf16 %v7563_v44, %v7562_v45  ;;  %v7567_v62 = vld [vmem:[#allocation34_spill] sm:$0xff]  ;;  %v4425_v45 = vld [vmem:[#allocation2 + $0x350] ss:$8 sps:$4 sm:$0xff]  }
 0x257   :  { %v4428_v44 = vld [vmem:[#allocation2 + $0x240] ss:$8 sps:$4 sm:$0xff]  }
 0x258   :  { %2811 = vmatpush2.bf16.msra.mxu0 %v4408_v35  ;;  %2924 = vmatpush2.bf16.msra.mxu1 %v4409_v61  ;;  %v7564_v35 = vld [vmem:[#allocation25_spill] sm:$0xff]  ;;  %v7565_v61 = vld [vmem:[#allocation26_spill] sm:$0xff] }
 0x259   :  { %3006 = vmatprep.subr.bf16.mxu0 %v4412_v12  ;;  %3119 = vmatprep.subr.bf16.mxu1 %v4415_v38  ;;  %v1937_v12 = vpack.c.bf16 %v7565_v61, %v7564_v35  ;;  %v7566_v38 = vld [vmem:[#allocation32_spill] sm:$0xff]  ;;  %v4431_v35 = vld [vmem:[#allocation2 + $0x340] ss:$8 sps:$4 sm:$0xff]  }
 0x25a   :  { %v1939_v10 = vpack.c.bf16 %v7567_v62, %v7566_v38  ;;  %v4436_v61 = vld [vmem:[#allocation2 + $0x234] ss:$8 sps:$4 sm:$0xff]  }
 0x25b   :  { %2813 = vmatmul.mubr.bf16.vlgmr.msra.gmra.mxu0 %v1929_v42  ;;  %2926 = vmatmul.mubr.bf16.vlgmr.msra.gmra.mxu1 %v1931_v54  ;;  %v4430_v54 = vld [vmem:[#allocation2 + $0x244] ss:$8 sps:$4 sm:$0xff]   ;;  %v7574_v38 = vld [vmem:[#allocation44_spill] sm:$0xff] }
 0x25c   :  { %3007 = vmatpush1.bf16.msra.mxu0 %v4410_v63  ;;  %3120 = vmatpush1.bf16.msra.mxu1 %v4413_v41  ;;  %v4433_v42 = vld [vmem:[#allocation2 + $0x344] ss:$8 sps:$4 sm:$0xff]   ;;  %v7568_v63 = vld [vmem:[#allocation39_spill] sm:$0xff]  ;;  %v7575_v62 = vld [vmem:[#allocation48_spill] sm:$0xff] }
 0x25d   :  { %3008 = vmatprep.subr.bf16.mxu0 %v4418_v26  ;;  %3121 = vmatprep.subr.bf16.mxu1 %v4421_v14  ;;  %v7569_v41 = vld [vmem:[#allocation43_spill] sm:$0xff]  ;;  %v7570_v14 = vld [vmem:[#allocation45_spill] sm:$0xff] }
 0x25e   :  { %2822 = vmatprep.mubr.bf16.mxu0 %v1938_v5  ;;  %2935 = vmatprep.mubr.bf16.mxu1 %v1940_v47  ;;  %v1946_v26 = vpack.c.bf16 %v7569_v41, %v7568_v63  ;;  %v7571_v5 = vld [vmem:[#allocation49_spill] sm:$0xff]  ;;  %v1947_v63 = vpack.c.bf16 %v7575_v62, %v7574_v38  ;;  %v4434_v41 = vld [vmem:[#allocation2 + $0x230] ss:$8 sps:$4 sm:$0xff]   ;;  %v7581_v38 = vld [vmem:[#allocation46_spill] sm:$0xff] }
 0x25f   :  { %v1948_v47 = vpack.c.bf16 %v7571_v5, %v7570_v14  ;;  %v4437_v14 = vld [vmem:[#allocation2 + $0x330] ss:$8 sps:$4 sm:$0xff]  }
 0x260   :  { %3009 = vmatpush1.bf16.msra.mxu0 %v4416_v57  ;;  %3122 = vmatpush1.bf16.msra.mxu1 %v4419_v39  ;;  %v4439_v57 = vld [vmem:[#allocation2 + $0x334] ss:$8 sps:$4 sm:$0xff]   ;;  %v7572_v39 = vld [vmem:[#allocation37_spill] sm:$0xff] }
 0x261   :  { %3010 = vmatprep.subr.bf16.mxu0 %v4424_v43  ;;  %3123 = vmatprep.subr.bf16.mxu1 %v4427_v18  ;;  %v7573_v43 = vld [vmem:[#allocation41_spill] sm:$0xff] }
 0x262   :  { %v1945_v18 = vpack.c.bf16 %v7573_v43, %v7572_v39  ;;  %v4443_v39 = vld [vmem:[#allocation2 + $0x320] ss:$8 sps:$4 sm:$0xff]  }
 0x263   :  { %2823 = vmatmul.mubr.bf16.gmra.mxu0 %v1937_v12  ;;  %2936 = vmatmul.mubr.bf16.gmra.mxu1 %v1939_v10  ;;  %v4442_v12 = vld [vmem:[#allocation2 + $0x224] ss:$8 sps:$4 sm:$0xff]   ;;  %v7576_v10 = vld [vmem:[#allocation23_spill] sm:$0xff] }
 0x264   :  { %3011 = vmatpush1.bf16.msra.mxu0 %v4422_v7  ;;  %3124 = vmatpush1.bf16.msra.mxu1 %v4425_v45  ;;  %v4445_v7 = vld [vmem:[#allocation2 + $0x324] ss:$8 sps:$4 sm:$0xff]   ;;  %v7577_v45 = vld [vmem:[#allocation47_spill] sm:$0xff] }
 0x265   :  { %3012 = vmatprep.subr.bf16.mxu0 %v4430_v54  ;;  %3125 = vmatprep.subr.bf16.mxu1 %v4433_v42  ;;  %v1954_v54 = vpack.c.bf16 %v7577_v45, %v7576_v10  ;;  %v7578_v42 = vld [vmem:[#allocation51_spill] sm:$0xff]  ;;  %v7580_v43 = vld [vmem:[#allocation21_spill] sm:$0xff]  ;;  %v7582_v10 = vld [vmem:[#allocation50_spill] sm:$0xff] }
 0x266   :  { %2832 = vmatprep.mubr.bf16.mxu0 %v1946_v26  ;;  %2945 = vmatprep.mubr.bf16.mxu1 %v1948_v47  ;;  %v7579_v26 = vld [vmem:[#allocation54_spill] sm:$0xff]  ;;  %v1953_v62 = vpack.c.bf16 %v7581_v38, %v7580_v43  ;;  %v7583_v45 = vld [vmem:[#allocation52_spill] sm:$0xff] }
 0x267   :  { %v1956_v5 = vpack.c.bf16 %v7579_v26, %v7578_v42  ;;  %v4440_v47 = vld [vmem:[#allocation2 + $0x220] ss:$8 sps:$4 sm:$0xff]   ;;  %v1955_v42 = vpack.c.bf16 %v7583_v45, %v7582_v10  ;;  %v7586_v26 = vld [vmem:[#allocation64_spill] sm:$0xff]  ;;  %v7590_v45 = vld [vmem:[#allocation55_spill] sm:$0xff] }
 0x268   :  { %3013 = vmatpush1.bf16.msra.mxu0 %v4428_v44  ;;  %3126 = vmatpush1.bf16.msra.mxu1 %v4431_v35  ;;  %v4448_v44 = vld [vmem:[#allocation2 + $0x214] ss:$8 sps:$4 sm:$0xff]  }
 0x269   :  { %3014 = vmatprep.subr.bf16.mxu0 %v4436_v61  ;;  %3127 = vmatprep.subr.bf16.mxu1 %v4439_v57  ;;  %v4451_v35 = vld [vmem:[#allocation2 + $0x314] ss:$8 sps:$4 sm:$0xff]   ;;  %v4446_v61 = vld [vmem:[#allocation2 + $0x210] ss:$8 sps:$4 sm:$0xff]  }
 0x26a   :  { %v4449_v57 = vld [vmem:[#allocation2 + $0x310] ss:$8 sps:$4 sm:$0xff]   ;;  %v4460_v43 = vld [vmem:[#allocation2 + $0x2f4] ss:$8 sps:$4 sm:$0xff]  }
 0x26b   :  { %2833 = vmatmul.mubr.bf16.gmra.mxu0 %v1945_v18  ;;  %2946 = vmatmul.mubr.bf16.gmra.mxu1 %v1947_v63  ;;  %v4454_v18 = vld [vmem:[#allocation2 + $0x204] ss:$8 sps:$4 sm:$0xff]   ;;  %v4463_v38 = vld [vmem:[#allocation2 + $0x3f4] ss:$8 sps:$4 sm:$0xff]  }
 0x26c   :  { %3015 = vmatpush1.bf16.msra.mxu0 %v4434_v41  ;;  %3128 = vmatpush1.bf16.msra.mxu1 %v4437_v14  ;;  %v4457_v63 = vld [vmem:[#allocation2 + $0x304] ss:$8 sps:$4 sm:$0xff]   ;;  %v4452_v41 = vld [vmem:[#allocation2 + $0x200] ss:$8 sps:$4 sm:$0xff]  }
 0x26d   :  { %3016 = vmatprep.subr.bf16.mxu0 %v4442_v12  ;;  %3129 = vmatprep.subr.bf16.mxu1 %v4445_v7  ;;  %v4455_v14 = vld [vmem:[#allocation2 + $0x300] ss:$8 sps:$4 sm:$0xff]   ;;  %v7585_v7 = vld [vmem:[#allocation96_spill] sm:$0xff] }
 0x26e   :  { %2842 = vmatprep.mubr.bf16.mxu0 %v1954_v54  ;;  %2955 = vmatprep.mubr.bf16.mxu1 %v1956_v5  ;;  %v7584_v12 = vld [vmem:[#allocation94_spill] sm:$0xff]  ;;  %v7587_v5 = vld [vmem:[#allocation68_spill] sm:$0xff] }
 0x26f   :  { %v1962_v54 = vpack.c.bf16 %v7585_v7, %v7584_v12  ;;  %v1964_v28 = vpack.c.bf16 %v7587_v5, %v7586_v26  ;;  %v7591_v12 = vld [vmem:[#allocation66_spill] sm:$0xff]  ;;  %v4472_v5 = vld [vmem:[#allocation2 + $0x2d4] ss:$8 sps:$4 sm:$0xff]  }
 0x270   :  { %3017 = vmatpush1.bf16.msra.mxu0 %v4440_v47  ;;  %3130 = vmatpush1.bf16.msra.mxu1 %v4443_v39  ;;  %v4458_v47 = vld [vmem:[#allocation2 + $0x2f0] ss:$8 sps:$4 sm:$0xff]   ;;  %v1963_v7 = vpack.c.bf16 %v7591_v12, %v7590_v45  ;;  %v4469_v26 = vld [vmem:[#allocation2 + $0x3e4] ss:$8 sps:$4 sm:$0xff]  }
 0x271   :  { %3018 = vmatprep.subr.bf16.mxu0 %v4448_v44  ;;  %3131 = vmatprep.subr.bf16.mxu1 %v4451_v35  ;;  %v4461_v39 = vld [vmem:[#allocation2 + $0x3f0] ss:$8 sps:$4 sm:$0xff]   ;;  %v7588_v44 = vld [vmem:[#allocation93_spill] sm:$0xff] }
 0x272   :  { %v7589_v35 = vld [vmem:[#allocation95_spill] sm:$0xff] }
 0x273   :  { %2843 = vmatmul.mubr.bf16.gmra.mxu0 %v1953_v62  ;;  %2956 = vmatmul.mubr.bf16.gmra.mxu1 %v1955_v42  ;;  %v1961_v10 = vpack.c.bf16 %v7589_v35, %v7588_v44  ;;  %v7594_v42 = vld [vmem:[#allocation72_spill] sm:$0xff]  ;;  %v7599_v35 = vld [vmem:[#allocation75_spill] sm:$0xff] }
 0x274   :  { %3019 = vmatpush1.bf16.msra.mxu0 %v4446_v61  ;;  %3132 = vmatpush1.bf16.msra.mxu1 %v4449_v57  ;;  %v7592_v61 = vld [vmem:[#allocation98_spill] sm:$0xff]  ;;  %v7593_v57 = vld [vmem:[#allocation100_spill] sm:$0xff] }
 0x275   :  { %3020 = vmatprep.subr.bf16.mxu0 %v4454_v18  ;;  %3133 = vmatprep.subr.bf16.mxu1 %v4457_v63  ;;  %v1970_v62 = vpack.c.bf16 %v7593_v57, %v7592_v61  ;;  %v7595_v18 = vld [vmem:[#allocation77_spill] sm:$0xff]  ;;  %v4475_v44 = vld [vmem:[#allocation2 + $0x3d4] ss:$8 sps:$4 sm:$0xff]   ;;  %v4473_v12 = vld [vmem:[#allocation2 + $0x3d0] ss:$8 sps:$4 sm:$0xff]  }
 0x276   :  { %2852 = vmatprep.mubr.bf16.mxu0 %v1962_v54  ;;  %2965 = vmatprep.mubr.bf16.mxu1 %v1964_v28  ;;  %v1972_v28 = vpack.c.bf16 %v7595_v18, %v7594_v42  ;;  %v4464_v63 = vld [vmem:[#allocation2 + $0x2e0] ss:$8 sps:$4 sm:$0xff]  }
 0x277   :  { %v4467_v54 = vld [vmem:[#allocation2 + $0x3e0] ss:$8 sps:$4 sm:$0xff]  }
 0x278   :  { %3021 = vmatpush1.bf16.msra.mxu0 %v4452_v41  ;;  %3134 = vmatpush1.bf16.msra.mxu1 %v4455_v14  ;;  %v7596_v41 = vld [vmem:[#allocation97_spill] sm:$0xff]  ;;  %v7597_v14 = vld [vmem:[#allocation99_spill] sm:$0xff]  ;;  %v7602_v61 = vld [vmem:[#allocation82_spill] sm:$0xff] }
 0x279   :  { %3022 = vmatprep.subr.bf16.mxu0 %v4460_v43  ;;  %3135 = vmatprep.subr.bf16.mxu1 %v4463_v38  ;;  %v1969_v43 = vpack.c.bf16 %v7597_v14, %v7596_v41  ;;  %v7598_v38 = vld [vmem:[#allocation70_spill] sm:$0xff] }
 0x27a   :  { %v1971_v45 = vpack.c.bf16 %v7599_v35, %v7598_v38  ;;  %v7603_v57 = vld [vmem:[#allocation58_spill] sm:$0xff]  ;;  %v4485_v35 = vld [vmem:[#allocation2 + $0x3b0] ss:$8 sps:$4 sm:$0xff]  }
 0x27b   :  { %2853 = vmatmul.mubr.bf16.gmra.mxu0 %v1961_v10  ;;  %2966 = vmatmul.mubr.bf16.gmra.mxu1 %v1963_v7  ;;  %v4470_v10 = vld [vmem:[#allocation2 + $0x2d0] ss:$8 sps:$4 sm:$0xff]   ;;  %v4476_v42 = vld [vmem:[#allocation2 + $0x2c0] ss:$8 sps:$4 sm:$0xff]  }
 0x27c   :  { %3023 = vmatpush2.bf16.msra.mxu0 %v4458_v47  ;;  %3136 = vmatpush2.bf16.msra.mxu1 %v4461_v39  ;;  %v4478_v47 = vld [vmem:[#allocation2 + $0x2c4] ss:$8 sps:$4 sm:$0xff]   ;;  %v7601_v7 = vld [vmem:[#allocation104_spill] sm:$0xff]  ;;  %v4479_v18 = vld [vmem:[#allocation2 + $0x3c0] ss:$8 sps:$4 sm:$0xff]  }
 0x27d   :  { %3024 = vmatprep.subr.bf16.mxu0 %v4466_v50  ;;  %3137 = vmatprep.subr.bf16.mxu1 %v4469_v26  ;;  %v4481_v39 = vld [vmem:[#allocation2 + $0x3c4] ss:$8 sps:$4 sm:$0xff]  }
 0x27e   :  { %2862 = vmatprep.mubr.bf16.mxu0 %v1970_v62  ;;  %2975 = vmatprep.mubr.bf16.mxu1 %v1972_v28  ;;  %v7600_v50 = vld [vmem:[#allocation102_spill] sm:$0xff]  ;;  %v1980_v62 = vpack.c.bf16 %v7603_v57, %v7602_v61  ;;  %v4484_v28 = vld [vmem:[#allocation2 + $0x2b4] ss:$8 sps:$4 sm:$0xff]  }
 0x27f   :  { %v1978_v26 = vpack.c.bf16 %v7601_v7, %v7600_v50  ;;  %v7606_v41 = vld [vmem:[#allocation78_spill] sm:$0xff] }
 0x280   :  { %3025 = vmatpush2.bf16.msra.mxu0 %v4464_v63  ;;  %3138 = vmatpush2.bf16.msra.mxu1 %v4467_v54  ;;  %v4487_v63 = vld [vmem:[#allocation2 + $0x3b4] ss:$8 sps:$4 sm:$0xff]   ;;  %v7604_v54 = vld [vmem:[#allocation101_spill] sm:$0xff]  ;;  %v7607_v14 = vld [vmem:[#allocation86_spill] sm:$0xff] }
 0x281   :  { %3026 = vmatprep.subr.bf16.mxu0 %v4472_v5  ;;  %3139 = vmatprep.subr.bf16.mxu1 %v4475_v44  ;;  %v7605_v5 = vld [vmem:[#allocation103_spill] sm:$0xff]  ;;  %v1979_v38 = vpack.c.bf16 %v7607_v14, %v7606_v41  ;;  %v7610_v50 = vld [vmem:[#allocation62_spill] sm:$0xff] }
 0x282   :  { %v1977_v44 = vpack.c.bf16 %v7605_v5, %v7604_v54  ;;  %v7611_v7 = vld [vmem:[#allocation126_spill] sm:$0xff]  ;;  %v7614_v54 = vld [vmem:[#allocation60_spill] sm:$0xff]  ;;  %v7615_v5 = vld [vmem:[#allocation125_spill] sm:$0xff] }
 0x283   :  { %2863 = vmatmul.mubr.bf16.gmra.mxu0 %v1969_v43  ;;  %2976 = vmatmul.mubr.bf16.gmra.mxu1 %v1971_v45  ;;  %v4482_v43 = vld [vmem:[#allocation2 + $0x2b0] ss:$8 sps:$4 sm:$0xff]   ;;  %v4490_v45 = vld [vmem:[#allocation2 + $0x2a4] ss:$8 sps:$4 sm:$0xff]   ;;  %v4488_v61 = vld [vmem:[#allocation2 + $0x2a0] ss:$8 sps:$4 sm:$0xff]   ;;  %v1987_v41 = vpack.c.bf16 %v7615_v5, %v7614_v54 }
 0x284   :  { %3027 = vmatpush2.bf16.msra.mxu0 %v4470_v10  ;;  %3140 = vmatpush2.bf16.msra.mxu1 %v4473_v12  ;;  %v4493_v10 = vld [vmem:[#allocation2 + $0x3a4] ss:$8 sps:$4 sm:$0xff]   ;;  %v4491_v57 = vld [vmem:[#allocation2 + $0x3a0] ss:$8 sps:$4 sm:$0xff]   ;;  %v4497_v14 = vld [vmem:[#allocation2 + $0x390] ss:$8 sps:$4 sm:$0xff]  }
 0x285   :  { %3028 = vmatprep.subr.bf16.mxu0 %v4478_v47  ;;  %3141 = vmatprep.subr.bf16.mxu1 %v4481_v39  ;;  %v7608_v12 = vld [vmem:[#allocation106_spill] sm:$0xff]  ;;  %v7609_v47 = vld [vmem:[#allocation108_spill] sm:$0xff]  ;;  %v6570_v54 = vld [vmem:[%s7065_s4] sm:$0x77] }
 0x286   :  { %2872 = vmatprep.mubr.bf16.mxu0 %v1978_v26  ;;  %2985 = vmatprep.mubr.bf16.mxu1 %v1980_v62  ;;  %v1986_v39 = vpack.c.bf16 %v7609_v47, %v7608_v12  ;;  %v1988_v26 = vpack.c.bf16 %v7611_v7, %v7610_v50  ;;  %v4496_v62 = vld [vmem:[#allocation2 + $0x294] ss:$8 sps:$4 sm:$0xff]   ;;  %v4503_v12 = vld [vmem:[#allocation2 + $0x380] ss:$8 sps:$4 sm:$0xff]   ;;  %v1933_v47 = vpack.c.bf16 %v6268_v22, %v6266_v59 }
 0x287   :  { %v1943_v59 = vpack.c.bf16 %v6381_v9, %v6379_v3  ;;  %v1950_v22 = vpack.c.bf16 %v6288_v56, %v6284_v13  ;;  %v7616_v13 = vld [vmem:[#allocation53_spill] sm:$0xff]  ;;  %v1968_v9 = vpack.c.bf16 %v6413_v53, %v6409_v0  ;;  %v7628_v53 = vld [vmem:[#allocation76_spill] sm:$0xff]  ;;  %v7630_v50 = vld [vmem:[#allocation15_spill] sm:$0xff]  ;;  %7639 = vst [vmem:[#allocation109_spill] sm:$0xff] %v6570_v54 }
 0x288   :  { %3029 = vmatpush2.bf16.msra.mxu0 %v4476_v42  ;;  %3142 = vmatpush2.bf16.msra.mxu1 %v4479_v18  ;;  %v4499_v42 = vld [vmem:[#allocation2 + $0x394] ss:$8 sps:$4 sm:$0xff]   ;;  %v7612_v18 = vld [vmem:[#allocation105_spill] sm:$0xff]  ;;  %v1957_v56 = vpack.c.bf16 %v7616_v13, %v6290_v30 }
 0x289   :  { %3030 = vmatprep.subr.bf16.mxu0 %v4484_v28  ;;  %3143 = vmatprep.subr.bf16.mxu1 %v4487_v63  ;;  %v7613_v28 = vld [vmem:[#allocation107_spill] sm:$0xff]  ;;  %v7621_v30 = vld [vmem:[#allocation65_spill] sm:$0xff] }
 0x28a   :  { %v1985_v63 = vpack.c.bf16 %v7613_v28, %v7612_v18  ;;  %v7637_v18 = vld [vmem:[#allocation89_spill] sm:$0xff]  ;;  %v7638_v28 = vld [vmem:[#allocation87_spill] sm:$0xff] }
 0x28b   :  { %2873 = vmatmul.mubr.bf16.gmra.mxu0 %v1977_v44  ;;  %2986 = vmatmul.mubr.bf16.gmra.mxu1 %v1979_v38  ;;  %v4494_v44 = vld [vmem:[#allocation2 + $0x290] ss:$8 sps:$4 sm:$0xff]   ;;  %v4502_v38 = vld [vmem:[#allocation2 + $0x284] ss:$8 sps:$4 sm:$0xff]  }
 0x28c   :  { %3031 = vmatpush2.bf16.msra.mxu0 %v4482_v43  ;;  %3144 = vmatpush2.bf16.msra.mxu1 %v4485_v35  ;;  %v4505_v43 = vld [vmem:[#allocation2 + $0x384] ss:$8 sps:$4 sm:$0xff]   ;;  %v1934_v35 = vpack.c.bf16 %v6276_v8, %v6274_v19  ;;  %v1942_v19 = vpack.c.bf16 %v6280_v16, %v6278_v36  ;;  %v1944_v8 = vpack.c.bf16 %v6389_v33, %v6387_v29 }
 0x28d   :  { %3032 = vmatprep.subr.bf16.mxu0 %v4490_v45  ;;  %3145 = vmatprep.subr.bf16.mxu1 %v4493_v10  ;;  %v1936_v45 = vpack.c.bf16 %v6385_v49, %v6383_v31  ;;  %v4500_v10 = vld [vmem:[#allocation2 + $0x280] ss:$8 sps:$4 sm:$0xff]   ;;  %v1941_v31 = vpack.c.bf16 %v6272_v15, %v6270_v11  ;;  %v1949_v36 = vpack.c.bf16 %v6286_v58, %v6282_v17 }
 0x28e   :  { %2882 = vmatprep.mubr.bf16.mxu0 %v1986_v39  ;;  %2995 = vmatprep.mubr.bf16.mxu1 %v1988_v26  ;;  %v1935_v39 = vpack.c.bf16 %v6377_v60, %v6375_v52  ;;  %v1952_v52 = vpack.c.bf16 %v6397_v37, %v6393_v20  ;;  %v1951_v16 = vpack.c.bf16 %v6395_v6, %v6391_v40  ;;  %v7617_v17 = vld [vmem:[#allocation57_spill] sm:$0xff]  ;;  %v7623_v6 = vld [vmem:[#allocation63_spill] sm:$0xff] }
 0x28f   :  { %v1958_v11 = vpack.c.bf16 %v6296_v1, %v6292_v24  ;;  %v1960_v15 = vpack.c.bf16 %v6405_v46, %v6401_v4  ;;  %v1959_v60 = vpack.c.bf16 %v6403_v55, %v6399_v34  ;;  %v7618_v58 = vld [vmem:[#allocation61_spill] sm:$0xff]  ;;  %v7619_v24 = vld [vmem:[#allocation56_spill] sm:$0xff]  ;;  %v7620_v1 = vld [vmem:[#allocation59_spill] sm:$0xff]  ;;  %v1967_v29 = vpack.c.bf16 %v6411_v32, %v6407_v27 }
 0x290   :  { %3033 = vmatpush2.bf16.msra.mxu0 %v4488_v61  ;;  %3146 = vmatpush2.bf16.msra.mxu1 %v4491_v57  ;;  %v1966_v3 = vpack.c.bf16 %v7618_v58, %v7617_v17  ;;  %v1965_v49 = vpack.c.bf16 %v7620_v1, %v7619_v24  ;;  %v7622_v33 = vld [vmem:[#allocation69_spill] sm:$0xff]  ;;  %v1976_v20 = vpack.c.bf16 %v6421_v48, %v6417_v2  ;;  %v7624_v37 = vld [vmem:[#allocation67_spill] sm:$0xff]  ;;  %v7626_v46 = vld [vmem:[#allocation80_spill] sm:$0xff] }
 0x291   :  { %3034 = vmatprep.subr.bf16.mxu0 %v4496_v62  ;;  %3147 = vmatprep.subr.bf16.mxu1 %v4499_v42  ;;  %v1974_v40 = vpack.c.bf16 %v7622_v33, %v7621_v30  ;;  %v1973_v34 = vpack.c.bf16 %v7624_v37, %v7623_v6  ;;  %v1975_v4 = vpack.c.bf16 %v6419_v23, %v6415_v51  ;;  %v7625_v55 = vld [vmem:[#allocation73_spill] sm:$0xff]  ;;  %v7627_v32 = vld [vmem:[#allocation71_spill] sm:$0xff]  ;;  %v7629_v48 = vld [vmem:[#allocation90_spill] sm:$0xff] }
 0x292   :  { %v1982_v0 = vpack.c.bf16 %v7626_v46, %v7625_v55  ;;  %v1984_v27 = vpack.c.bf16 %v6429_v21, %v6425_v25  ;;  %v1981_v2 = vpack.c.bf16 %v7628_v53, %v7627_v32  ;;  %v1983_v7 = vpack.c.bf16 %v7630_v50, %v7629_v48  ;;  %v7631_v26 = vld [vmem:[#allocation85_spill] sm:$0xff]  ;;  %v7632_v61 = vld [vmem:[#allocation18_spill] sm:$0xff]  ;;  %v7633_v51 = vld [vmem:[#allocation79_spill] sm:$0xff] }
 0x293   :  { %2883 = vmatmul.mubr.bf16.gmra.mxu0 %v1985_v63  ;;  %2996 = vmatmul.mubr.bf16.gmra.mxu1 %v1987_v41  ;;  %v1990_v57 = vpack.c.bf16 %v7632_v61, %v7631_v26  ;;  %v7634_v23 = vld [vmem:[#allocation16_spill] sm:$0xff]  ;;  %v7635_v25 = vld [vmem:[#allocation81_spill] sm:$0xff]  ;;  %v7636_v21 = vld [vmem:[#allocation91_spill] sm:$0xff]  ;;  %v1991_v63 = vpack.c.bf16 %v7638_v28, %v7637_v18 }
 0x294   :  { %3035 = vmatpush2.bf16.msra.mxu0 %v4494_v44  ;;  %3148 = vmatpush2.bf16.msra.mxu1 %v4497_v14  ;;  %v1992_v62 = vpack.c.bf16 %v7634_v23, %v7633_v51  ;;  %v1989_v42 = vpack.c.bf16 %v7636_v21, %v7635_v25  ;;  %v7640_v5 = vld [vmem:[#allocation9_spill] sm:$0xff]  ;;  %v7641_v44 = vld [vmem:[#allocation10_spill] sm:$0xff] }
 0x295   :  { %3036 = vmatprep.subr.bf16.mxu0 %v4502_v38  ;;  %3149 = vmatprep.subr.bf16.mxu1 %v4505_v43  ;;  %v2125_v41 = vrot.slane %v6570_v54, %v7640_v5  ;;  %v2129_v14 = vrot.slane %v6570_v54, %v7641_v44 }
 0x296   :  { %3038 = vmatprep.mubr.bf16.mxu0 %v1934_v35  ;;  %3151 = vmatprep.mubr.bf16.mxu1 %v1936_v45 }
 0x297   :  { %v6577_v38 = vrot.slane %v2125_v41, %v7640_v5  ;;  %v6580_v43 = vrot.slane %v2129_v14, %v7640_v5 }
 0x298   :  { %3037 = vmatpush2.bf16.msra.mxu0 %v4500_v10  ;;  %3150 = vmatpush2.bf16.msra.mxu1 %v4503_v12 }
 0x29b   :  { %3039 = vmatmul.mubr.bf16.vlgmr.msra.gmra.mxu0 %v1933_v47  ;;  %3152 = vmatmul.mubr.bf16.vlgmr.msra.gmra.mxu1 %v1935_v39 }
 0x29c   :  { %3048 = vmatprep.mubr.bf16.mxu0 %v1942_v19  ;;  %3161 = vmatprep.mubr.bf16.mxu1 %v1944_v8 }
 0x2a3   :  { %3049 = vmatmul.mubr.bf16.gmra.mxu0 %v1941_v31  ;;  %3162 = vmatmul.mubr.bf16.gmra.mxu1 %v1943_v59 }
 0x2a4   :  { %3058 = vmatprep.mubr.bf16.mxu0 %v1950_v22  ;;  %3171 = vmatprep.mubr.bf16.mxu1 %v1952_v52 }
 0x2ab   :  { %3059 = vmatmul.mubr.bf16.gmra.mxu0 %v1949_v36  ;;  %3172 = vmatmul.mubr.bf16.gmra.mxu1 %v1951_v16 }
 0x2ac   :  { %3068 = vmatprep.mubr.bf16.mxu0 %v1958_v11  ;;  %3181 = vmatprep.mubr.bf16.mxu1 %v1960_v15 }
 0x2b3   :  { %3069 = vmatmul.mubr.bf16.gmra.mxu0 %v1957_v56  ;;  %3182 = vmatmul.mubr.bf16.gmra.mxu1 %v1959_v60 }
 0x2b4   :  { %3078 = vmatprep.mubr.bf16.mxu0 %v1966_v3  ;;  %3191 = vmatprep.mubr.bf16.mxu1 %v1968_v9 }
 0x2bb   :  { %3079 = vmatmul.mubr.bf16.gmra.mxu0 %v1965_v49  ;;  %3192 = vmatmul.mubr.bf16.gmra.mxu1 %v1967_v29 }
 0x2bc   :  { %3088 = vmatprep.mubr.bf16.mxu0 %v1974_v40  ;;  %3201 = vmatprep.mubr.bf16.mxu1 %v1976_v20 }
 0x2c3   :  { %3089 = vmatmul.mubr.bf16.gmra.mxu0 %v1973_v34  ;;  %3202 = vmatmul.mubr.bf16.gmra.mxu1 %v1975_v4 }
 0x2c4   :  { %3098 = vmatprep.mubr.bf16.mxu0 %v1982_v0  ;;  %3211 = vmatprep.mubr.bf16.mxu1 %v1984_v27 }
 0x2cb   :  { %3099 = vmatmul.mubr.bf16.gmra.mxu0 %v1981_v2  ;;  %3212 = vmatmul.mubr.bf16.gmra.mxu1 %v1983_v7 }
 0x2cc   :  { %3108 = vmatprep.mubr.bf16.mxu0 %v1990_v57  ;;  %3221 = vmatprep.mubr.bf16.mxu1 %v1992_v62 }
 0x2d3   :  { %3109 = vmatmul.mubr.bf16.gmra.mxu0 %v1989_v42  ;;  %3222 = vmatmul.mubr.bf16.gmra.mxu1 %v1991_v63 }
 0x31b   :  { %v2814_v35 = vpop.f32.mrf.mxu0  ;;  %v2927_v45 = vpop.f32.mrf.mxu1 }
 0x31c   :  { %v2815_v10 = vadd.f32 %v2814_v35, %v6577_v38 }
 0x31d   :  { %v2816_v12 = vpop.f32.mrf.mxu0  ;;  %v2929_v47 = vpop.f32.mrf.mxu1 }
 0x31e   :  { %v6583_v39 = vadd.f32 %v2927_v45, %v2815_v10  ;;  %v2817_v19 = vadd.f32 %v2816_v12, %v6580_v43 }
 0x31f   :  { %v2818_v8 = vpop.f32.mrf.mxu0  ;;  %v2931_v31 = vpop.f32.mrf.mxu1 }
 0x320   :  { %v6586_v59 = vadd.f32 %v2929_v47, %v2817_v19  ;;  %v2819_v22 = vadd.f32 %v2818_v8, %v6577_v38 }
 0x321   :  { %v2820_v52 = vpop.f32.mrf.mxu0  ;;  %v2933_v36 = vpop.f32.mrf.mxu1 }
 0x322   :  { %v6589_v16 = vadd.f32 %v2931_v31, %v2819_v22  ;;  %v2821_v11 = vadd.f32 %v2820_v52, %v6580_v43 }
 0x323   :  { %v2824_v15 = vpop.f32.mrf.mxu0  ;;  %v2937_v13 = vpop.f32.mrf.mxu1 }
 0x324   :  { %v6592_v56 = vadd.f32 %v2933_v36, %v2821_v11  ;;  %v2825_v60 = vadd.f32 %v2824_v15, %v6577_v38  ;;  %v4506_v11 = vld [vmem:[%s7066_s5 + $0x78] sm:$0xff]  }
 0x325   :  { %v2826_v17 = vpop.f32.mrf.mxu0  ;;  %v2939_v58 = vpop.f32.mrf.mxu1  ;;  %4184 = vmatprep.subr.bf16.mxu0 %v4506_v11  ;;  %v4515_v11 = vld [vmem:[%s7066_s5 + $0x18] sm:$0xff]  }
 0x326   :  { %v6595_v3 = vadd.f32 %v2937_v13, %v2825_v60  ;;  %v2827_v9 = vadd.f32 %v2826_v17, %v6580_v43  ;;  %v4507_v60 = vld [vmem:[%s7066_s5 + $0x38] sm:$0xff]  }
 0x327   :  { %v2828_v24 = vpop.f32.mrf.mxu0  ;;  %v2941_v1 = vpop.f32.mrf.mxu1  ;;  %4185 = vmatpush3.bf16.msra.mxu0 %v4507_v60 }
 0x328   :  { %v6598_v49 = vadd.f32 %v2939_v58, %v2827_v9  ;;  %v2829_v29 = vadd.f32 %v2828_v24, %v6577_v38 }
 0x329   :  { %v2830_v30 = vpop.f32.mrf.mxu0  ;;  %v2943_v33 = vpop.f32.mrf.mxu1 }
 0x32a   :  { %v6601_v40 = vadd.f32 %v2941_v1, %v2829_v29  ;;  %v2831_v20 = vadd.f32 %v2830_v30, %v6580_v43  ;;  %v4508_v30 = vld [vmem:[%s7066_s5 + $0x70] sm:$0xff]  }
 0x32b   :  { %v2834_v6 = vpop.f32.mrf.mxu0  ;;  %v2947_v37 = vpop.f32.mrf.mxu1  ;;  %4186 = vmatprep.subr.bf16.mxu0 %v4508_v30 }
 0x32c   :  { %v6604_v34 = vadd.f32 %v2943_v33, %v2831_v20  ;;  %v2835_v4 = vadd.f32 %v2834_v6, %v6577_v38  ;;  %v4509_v6 = vld [vmem:[%s7066_s5 + $0x30] sm:$0xff]  }
 0x32d   :  { %v2836_v55 = vpop.f32.mrf.mxu0  ;;  %v2949_v46 = vpop.f32.mrf.mxu1  ;;  %4187 = vmatpush3.bf16.msra.mxu0 %v4509_v6 }
 0x32e   :  { %v6607_v0 = vadd.f32 %v2947_v37, %v2835_v4  ;;  %v2837_v27 = vadd.f32 %v2836_v55, %v6580_v43 }
 0x32f   :  { %v2838_v32 = vpop.f32.mrf.mxu0  ;;  %v2951_v53 = vpop.f32.mrf.mxu1 }
 0x330   :  { %v6610_v2 = vadd.f32 %v2949_v46, %v2837_v27  ;;  %v2839_v48 = vadd.f32 %v2838_v32, %v6577_v38 }
 0x331   :  { %v2840_v50 = vpop.f32.mrf.mxu0  ;;  %v2953_v7 = vpop.f32.mrf.mxu1 }
 0x332   :  { %v6613_v26 = vadd.f32 %v2951_v53, %v2839_v48  ;;  %v2841_v61 = vadd.f32 %v2840_v50, %v6580_v43  ;;  %v4510_v53 = vld [vmem:[%s7066_s5 + $0x68] sm:$0xff]  }
 0x333   :  { %v2844_v57 = vpop.f32.mrf.mxu0  ;;  %v2957_v51 = vpop.f32.mrf.mxu1  ;;  %4188 = vmatprep.subr.bf16.mxu0 %v4510_v53  ;;  %v4518_v53 = vld [vmem:[%s7066_s5 + $0x48] sm:$0xff]  }
 0x334   :  { %v6616_v23 = vadd.f32 %v2953_v7, %v2841_v61  ;;  %v2845_v62 = vadd.f32 %v2844_v57, %v6577_v38  ;;  %v4511_v7 = vld [vmem:[%s7066_s5 + $0x28] sm:$0xff]  }
 0x335   :  { %v2846_v25 = vpop.f32.mrf.mxu0  ;;  %v2959_v21 = vpop.f32.mrf.mxu1  ;;  %4189 = vmatpush3.bf16.msra.mxu0 %v4511_v7  ;;  %v4519_v7 = vld [vmem:[%s7066_s5 + $0x8] sm:$0xff]  }
 0x336   :  { %v6619_v42 = vadd.f32 %v2957_v51, %v2845_v62  ;;  %v2847_v18 = vadd.f32 %v2846_v25, %v6580_v43 }
 0x337   :  { %v2848_v28 = vpop.f32.mrf.mxu0  ;;  %v2961_v63 = vpop.f32.mrf.mxu1 }
 0x338   :  { %v6622_v41 = vadd.f32 %v2959_v21, %v2847_v18  ;;  %v2849_v44 = vadd.f32 %v2848_v28, %v6577_v38  ;;  %v4512_v18 = vld [vmem:[%s7066_s5 + $0x60] sm:$0xff]  }
 0x339   :  { %v2850_v14 = vpop.f32.mrf.mxu0  ;;  %v2963_v35 = vpop.f32.mrf.mxu1  ;;  %4190 = vmatprep.subr.bf16.mxu0 %v4512_v18 }
 0x33a   :  { %v6625_v45 = vadd.f32 %v2961_v63, %v2849_v44  ;;  %v2851_v10 = vadd.f32 %v2850_v14, %v6580_v43  ;;  %v4513_v44 = vld [vmem:[%s7066_s5 + $0x20] sm:$0xff]  }
 0x33b   :  { %v2854_v12 = vpop.f32.mrf.mxu0  ;;  %v2967_v47 = vpop.f32.mrf.mxu1  ;;  %4191 = vmatpush3.bf16.msra.mxu0 %v4513_v44 }
 0x33c   :  { %v6628_v19 = vadd.f32 %v2963_v35, %v2851_v10  ;;  %v2855_v8 = vadd.f32 %v2854_v12, %v6577_v38 }
 0x33d   :  { %v2856_v31 = vpop.f32.mrf.mxu0  ;;  %v2969_v22 = vpop.f32.mrf.mxu1 }
 0x33e   :  { %v6631_v52 = vadd.f32 %v2967_v47, %v2855_v8  ;;  %v2857_v36 = vadd.f32 %v2856_v31, %v6580_v43  ;;  %v4514_v31 = vld [vmem:[%s7066_s5 + $0x58] sm:$0xff]  }
 0x33f   :  { %v2858_v15 = vpop.f32.mrf.mxu0  ;;  %v2971_v13 = vpop.f32.mrf.mxu1  ;;  %4192 = vmatprep.subr.bf16.mxu0 %v4514_v31 }
 0x340   :  { %v6640_v17 = vadd.f32 %v2969_v22, %v2857_v36  ;;  %v2859_v58 = vadd.f32 %v2858_v15, %v6577_v38  ;;  %4193 = vmatpush3.bf16.msra.mxu0 %v4515_v11 }
 0x341   :  { %v2860_v9 = vpop.f32.mrf.mxu0  ;;  %v2973_v24 = vpop.f32.mrf.mxu1 }
 0x342   :  { %v6643_v1 = vadd.f32 %v2971_v13, %v2859_v58  ;;  %v2861_v29 = vadd.f32 %v2860_v9, %v6580_v43 }
 0x343   :  { %v2864_v33 = vpop.f32.mrf.mxu0  ;;  %v2977_v20 = vpop.f32.mrf.mxu1 }
 0x344   :  { %v6652_v37 = vadd.f32 %v2973_v24, %v2861_v29  ;;  %v2865_v4 = vadd.f32 %v2864_v33, %v6577_v38  ;;  %v4516_v29 = vld [vmem:[%s7066_s5 + $0x50] sm:$0xff]  }
 0x345   :  { %v2866_v55 = vpop.f32.mrf.mxu0  ;;  %v2979_v46 = vpop.f32.mrf.mxu1  ;;  %4194 = vmatprep.subr.bf16.mxu0 %v4516_v29 }
 0x346   :  { %v6655_v27 = vadd.f32 %v2977_v20, %v2865_v4  ;;  %v2867_v32 = vadd.f32 %v2866_v55, %v6580_v43  ;;  %v4517_v20 = vld [vmem:[%s7066_s5 + $0x10] sm:$0xff]  }
 0x347   :  { %v2868_v48 = vpop.f32.mrf.mxu0  ;;  %v2981_v50 = vpop.f32.mrf.mxu1  ;;  %4195 = vmatpush3.bf16.msra.mxu0 %v4517_v20 }
 0x348   :  { %v6664_v61 = vadd.f32 %v2979_v46, %v2867_v32  ;;  %v2869_v57 = vadd.f32 %v2868_v48, %v6577_v38  ;;  %4196 = vmatprep.subr.bf16.mxu0 %v4518_v53 }
 0x349   :  { %v2870_v51 = vpop.f32.mrf.mxu0  ;;  %v2983_v62 = vpop.f32.mrf.mxu1 }
 0x34a   :  { %v6667_v25 = vadd.f32 %v2981_v50, %v2869_v57  ;;  %v2871_v21 = vadd.f32 %v2870_v51, %v6580_v43 }
 0x34b   :  { %v2874_v28 = vpop.f32.mrf.mxu0  ;;  %v2987_v63 = vpop.f32.mrf.mxu1  ;;  %4197 = vmatpush3.bf16.msra.mxu0 %v4519_v7 }
 0x34c   :  { %v6676_v14 = vadd.f32 %v2983_v62, %v2871_v21  ;;  %v2875_v35 = vadd.f32 %v2874_v28, %v6577_v38  ;;  %v4520_v62 = vld [vmem:[%s7066_s5 + $0x40] sm:$0xff]  }
 0x34d   :  { %v2876_v10 = vpop.f32.mrf.mxu0  ;;  %v2989_v12 = vpop.f32.mrf.mxu1  ;;  %v4521_v21 = vld [vmem:[%s7066_s5] sm:$0xff]   ;;  %4198 = vmatprep.subr.bf16.mxu0 %v4520_v62 }
 0x34e   :  { %v6679_v47 = vadd.f32 %v2987_v63, %v2875_v35  ;;  %v2877_v8 = vadd.f32 %v2876_v10, %v6580_v43 }
 0x34f   :  { %v2878_v22 = vpop.f32.mrf.mxu0  ;;  %v2991_v36 = vpop.f32.mrf.mxu1  ;;  %4199 = vmatpush3.bf16.msra.mxu0 %v4521_v21 }
 0x350   :  { %7642 = vst [vmem:[#allocation111_spill] sm:$0xff] %v6679_v47  ;;  %v6688_v15 = vadd.f32 %v2989_v12, %v2877_v8  ;;  %v2879_v13 = vadd.f32 %v2878_v22, %v6577_v38 }
 0x351   :  { %v2880_v60 = vpop.f32.mrf.mxu0  ;;  %v2993_v58 = vpop.f32.mrf.mxu1 }
 0x352   :  { %7643 = vst [vmem:[#allocation113_spill] sm:$0xff] %v6688_v15  ;;  %v6691_v9 = vadd.f32 %v2991_v36, %v2879_v13  ;;  %v2881_v24 = vadd.f32 %v2880_v60, %v6580_v43 }
 0x353   :  { %v2884_v30 = vpop.f32.mrf.mxu0  ;;  %v2997_v33 = vpop.f32.mrf.mxu1 }
 0x354   :  { %7644 = vst [vmem:[#allocation115_spill] sm:$0xff] %v6691_v9  ;;  %v6700_v6 = vadd.f32 %v2993_v58, %v2881_v24  ;;  %v2885_v4 = vadd.f32 %v2884_v30, %v6577_v38 }
 0x355   :  { %v2886_v55 = vpop.f32.mrf.mxu0  ;;  %v6703_v46 = vpop.f32.mrf.mxu1 }
 0x356   :  { %7645 = vst [vmem:[#allocation117_spill] sm:$0xff] %v6700_v6  ;;  %v6705_v32 = vadd.f32 %v2997_v33, %v2885_v4 }
 0x357   :  { %v2888_v48 = vpop.f32.mrf.mxu0  ;;  %v6710_v50 = vpop.f32.mrf.mxu1 }
 0x358   :  { %7646 = vst [vmem:[#allocation119_spill] sm:$0xff] %v6705_v32 }
 0x359   :  { %v2890_v57 = vpop.f32.mrf.mxu0  ;;  %v6715_v51 = vpop.f32.mrf.mxu1 }
 0x35b   :  { %v3040_v18 = vpop.f32.mrf.mxu0  ;;  %v3153_v28 = vpop.f32.mrf.mxu1 }
 0x35c   :  { %v3041_v20 = vadd.f32 %v3040_v18, %v6583_v39 }
 0x35d   :  { %v3042_v63 = vpop.f32.mrf.mxu0  ;;  %v3155_v44 = vpop.f32.mrf.mxu1 }
 0x35e   :  { %v3043_v7 = vadd.f32 %v3042_v63, %v6586_v59  ;;  %v3154_v9 = vadd.f32 %v3153_v28, %v3041_v20  ;;  %v2889_v63 = vadd.f32 %v2888_v48, %v6577_v38 }
 0x35f   :  { %v3044_v35 = vpop.f32.mrf.mxu0  ;;  %v3157_v10 = vpop.f32.mrf.mxu1 }
 0x360   :  { %v3045_v29 = vadd.f32 %v3044_v35, %v6589_v16  ;;  %v3156_v35 = vadd.f32 %v3155_v44, %v3043_v7  ;;  %v6737_v44 = vmax.f32 %v3154_v9, 0.0  ;;  %v6752_v9 = vadd.f32 %v6710_v50, %v2889_v63 }
 0x361   :  { %v3046_v12 = vpop.f32.mrf.mxu0  ;;  %v3159_v8 = vpop.f32.mrf.mxu1 }
 0x362   :  { %v3047_v4 = vadd.f32 %v3046_v12, %v6592_v56  ;;  %v3158_v5 = vadd.f32 %v3157_v10, %v3045_v29  ;;  %v2887_v56 = vadd.f32 %v2886_v55, %v6580_v43  ;;  %v6743_v55 = vmax.f32 %v3156_v35, 0.0 }
 0x363   :  { %v3050_v31 = vpop.f32.mrf.mxu0  ;;  %v3163_v22 = vpop.f32.mrf.mxu1 }
 0x364   :  { %v3051_v53 = vadd.f32 %v3050_v31, %v6595_v3  ;;  %v3160_v15 = vadd.f32 %v3159_v8, %v3047_v4  ;;  %v6731_v3 = vmax.f32 %v3158_v5, 0.0  ;;  %v2891_v8 = vadd.f32 %v2890_v57, %v6580_v43 }
 0x365   :  { %v3052_v36 = vpop.f32.mrf.mxu0  ;;  %v3165_v11 = vpop.f32.mrf.mxu1 }
 0x366   :  { %v3053_v54 = vadd.f32 %v3052_v36, %v6598_v49  ;;  %v3164_v16 = vadd.f32 %v3163_v22, %v3051_v53 }
 0x367   :  { %v3054_v13 = vpop.f32.mrf.mxu0  ;;  %v3167_v60 = vpop.f32.mrf.mxu1 }
 0x368   :  { %v3055_v47 = vadd.f32 %v3054_v13, %v6601_v40  ;;  %v3166_v10 = vadd.f32 %v3165_v11, %v3053_v54  ;;  %v6739_v40 = vmax.f32 %v3160_v15, 0.0  ;;  %v6741_v31 = vmax.f32 %v3164_v16, 0.0 }
 0x369   :  { %v3056_v58 = vpop.f32.mrf.mxu0  ;;  %v3169_v24 = vpop.f32.mrf.mxu1  ;;  %v6747_v54 = vadd.f32 %v6703_v46, %v2887_v56  ;;  %v3308_v46 = vmul.f32 %v6737_v44, %v6737_v44  ;;  %v3309_v13 = vmul.f32 %v6743_v55, %v6743_v55 }
 0x36a   :  { %v3057_v59 = vadd.f32 %v3056_v58, %v6604_v34  ;;  %v3168_v5 = vadd.f32 %v3167_v60, %v3055_v47  ;;  %v6754_v15 = vmax.f32 %v3166_v10, 0.0  ;;  %v3311_v11 = vmul.f32 %v6739_v40, %v6739_v40 }
 0x36b   :  { %v3060_v30 = vpop.f32.mrf.mxu0  ;;  %v3173_v33 = vpop.f32.mrf.mxu1  ;;  %v3312_v50 = vmul.f32 %v6741_v31, %v6741_v31 }
 0x36c   :  { %v3061_v49 = vadd.f32 %v3060_v30, %v6607_v0  ;;  %v3310_v0 = vmul.f32 %v6731_v3, %v6731_v3  ;;  %v3170_v43 = vadd.f32 %v3169_v24, %v3057_v59  ;;  %v6768_v60 = vmax.f32 %v3168_v5, 0.0 }
 0x36d   :  { %v3062_v62 = vpop.f32.mrf.mxu0  ;;  %v3175_v21 = vpop.f32.mrf.mxu1  ;;  %v3264_v24 = vadd.f32 %v6731_v3, %v6737_v44  ;;  %v3313_v20 = vmul.f32 %v6754_v15, %v6754_v15  ;;  %v3361_v16 = vadd.f32 %v3311_v11, %v3309_v13 }
 0x36e   :  { %v3063_v34 = vadd.f32 %v3062_v62, %v6610_v2  ;;  %v3174_v48 = vadd.f32 %v3173_v33, %v3061_v49  ;;  %v6758_v2 = vadd.f32 %v6715_v51, %v2891_v8  ;;  %v3340_v29 = vadd.f32 %v3310_v0, %v3308_v46 }
 0x36f   :  { %v3064_v32 = vpop.f32.mrf.mxu0  ;;  %v3177_v6 = vpop.f32.mrf.mxu1  ;;  %v6773_v30 = vmax.f32 %v3170_v43, 0.0  ;;  %v3265_v35 = vadd.f32 %v3264_v24, %v6741_v31  ;;  %v3362_v5 = vadd.f32 %v3361_v16, %v3313_v20 }
 0x370   :  { %v3065_v57 = vadd.f32 %v3064_v32, %v6613_v26  ;;  %v3176_v26 = vadd.f32 %v3175_v21, %v3063_v34  ;;  %v6778_v4 = vmax.f32 %v3174_v48, 0.0  ;;  %v3285_v21 = vadd.f32 %v6739_v40, %v6743_v55 }
 0x371   :  { %v3066_v39 = vpop.f32.mrf.mxu0  ;;  %v3179_v18 = vpop.f32.mrf.mxu1  ;;  %v3315_v49 = vmul.f32 %v6773_v30, %v6773_v30 }
 0x372   :  { %v3067_v32 = vadd.f32 %v3066_v39, %v6616_v23  ;;  %v3178_v53 = vadd.f32 %v3177_v6, %v3065_v57  ;;  %v3341_v39 = vadd.f32 %v3340_v29, %v3312_v50  ;;  %v6786_v56 = vmax.f32 %v3176_v26, 0.0 }
 0x373   :  { %v3070_v12 = vpop.f32.mrf.mxu0  ;;  %v3183_v28 = vpop.f32.mrf.mxu1  ;;  %v3316_v34 = vmul.f32 %v6778_v4, %v6778_v4 }
 0x374   :  { %v3071_v33 = vadd.f32 %v3070_v12, %v6619_v42  ;;  %v3314_v42 = vmul.f32 %v6768_v60, %v6768_v60  ;;  %v3180_v59 = vadd.f32 %v3179_v18, %v3067_v32 }
 0x375   :  { %v3072_v22 = vpop.f32.mrf.mxu0  ;;  %v3185_v38 = vpop.f32.mrf.mxu1 }
 0x376   :  { %v3073_v7 = vadd.f32 %v3072_v22, %v6622_v41  ;;  %v3286_v41 = vadd.f32 %v3285_v21, %v6754_v15  ;;  %v3184_v12 = vadd.f32 %v3183_v28, %v3071_v33  ;;  %v6795_v22 = vmax.f32 %v3178_v53, 0.0 }
 0x377   :  { %v3074_v47 = vpop.f32.mrf.mxu0  ;;  %v3187_v36 = vpop.f32.mrf.mxu1  ;;  %v3342_v28 = vadd.f32 %v3341_v39, %v3314_v42  ;;  %v6803_v46 = vmax.f32 %v3180_v59, 0.0 }
 0x378   :  { %v3075_v63 = vadd.f32 %v3074_v47, %v6625_v45  ;;  %v3186_v0 = vadd.f32 %v3185_v38, %v3073_v7  ;;  %v3266_v45 = vadd.f32 %v3265_v35, %v6768_v60  ;;  %v3287_v48 = vadd.f32 %v3286_v41, %v6773_v30 }
 0x379   :  { %v3076_v58 = vpop.f32.mrf.mxu0  ;;  %v3189_v51 = vpop.f32.mrf.mxu1  ;;  %v3363_v38 = vadd.f32 %v3362_v5, %v3315_v49  ;;  %v6805_v26 = vmax.f32 %v3184_v12, 0.0 }
 0x37a   :  { %v3077_v8 = vadd.f32 %v3076_v58, %v6628_v19  ;;  %v3317_v19 = vmul.f32 %v6786_v56, %v6786_v56  ;;  %v3188_v11 = vadd.f32 %v3187_v36, %v3075_v63  ;;  %v3267_v24 = vadd.f32 %v3266_v45, %v6778_v4 }
 0x37b   :  { %v3080_v62 = vpop.f32.mrf.mxu0  ;;  %v3193_v23 = vpop.f32.mrf.mxu1  ;;  %v6811_v29 = vmax.f32 %v3186_v0, 0.0  ;;  %v3288_v36 = vadd.f32 %v3287_v48, %v6786_v56  ;;  %v3320_v59 = vmul.f32 %v6805_v26, %v6805_v26 }
 0x37c   :  { %v3081_v57 = vadd.f32 %v3080_v62, %v6631_v52  ;;  %v3190_v32 = vadd.f32 %v3189_v51, %v3077_v8  ;;  %v3343_v52 = vadd.f32 %v3342_v28, %v3316_v34  ;;  %v3364_v21 = vadd.f32 %v3363_v38, %v3317_v19 }
 0x37d   :  { %v3082_v6 = vpop.f32.mrf.mxu0  ;;  %v3195_v10 = vpop.f32.mrf.mxu1  ;;  %v6817_v51 = vmax.f32 %v3188_v11, 0.0  ;;  %v3268_v42 = vadd.f32 %v3267_v24, %v6795_v22 }
 0x37e   :  { %v3083_v47 = vadd.f32 %v3082_v6, %v6640_v17  ;;  %v3318_v17 = vmul.f32 %v6795_v22, %v6795_v22  ;;  %v3194_v53 = vadd.f32 %v3193_v23, %v3081_v57  ;;  %v6823_v63 = vmax.f32 %v3190_v32, 0.0 }
 0x37f   :  { %v3084_v18 = vpop.f32.mrf.mxu0  ;;  %v3197_v43 = vpop.f32.mrf.mxu1 }
 0x380   :  { %v3085_v58 = vadd.f32 %v3084_v18, %v6643_v1  ;;  %v3196_v7 = vadd.f32 %v3195_v10, %v3083_v47  ;;  %v3319_v1 = vmul.f32 %v6803_v46, %v6803_v46  ;;  %v3344_v6 = vadd.f32 %v3343_v52, %v3318_v17  ;;  %v7647_v17 = vld [vmem:[#allocation111_spill] sm:$0xff] }
 0x381   :  { %v3086_v50 = vpop.f32.mrf.mxu0  ;;  %v3199_v13 = vpop.f32.mrf.mxu1  ;;  %v3321_v10 = vmul.f32 %v6811_v29, %v6811_v29  ;;  %v6829_v12 = vmax.f32 %v3194_v53, 0.0  ;;  %v3269_v18 = vadd.f32 %v3268_v42, %v6805_v26 }
 0x382   :  { %v3087_v62 = vadd.f32 %v3086_v50, %v6652_v37  ;;  %v3198_v23 = vadd.f32 %v3197_v43, %v3085_v58  ;;  %v3289_v37 = vadd.f32 %v3288_v36, %v6803_v46  ;;  %v6831_v8 = vmax.f32 %v3196_v7, 0.0 }
 0x383   :  { %v3090_v33 = vpop.f32.mrf.mxu0  ;;  %v3203_v20 = vpop.f32.mrf.mxu1  ;;  %v3365_v0 = vadd.f32 %v3364_v21, %v3319_v1  ;;  %v3322_v43 = vmul.f32 %v6817_v51, %v6817_v51  ;;  %v3345_v47 = vadd.f32 %v3344_v6, %v3320_v59  ;;  %v3324_v58 = vmul.f32 %v6829_v12, %v6829_v12 }
 0x384   :  { %v3091_v16 = vadd.f32 %v3090_v33, %v6655_v27  ;;  %v3200_v5 = vadd.f32 %v3199_v13, %v3087_v62  ;;  %v6839_v28 = vmax.f32 %v3198_v23, 0.0  ;;  %v3290_v11 = vadd.f32 %v3289_v37, %v6811_v29  ;;  %v7648_v23 = vld [vmem:[#allocation113_spill] sm:$0xff] }
 0x385   :  { %v3092_v35 = vpop.f32.mrf.mxu0  ;;  %v3205_v39 = vpop.f32.mrf.mxu1  ;;  %v3325_v24 = vmul.f32 %v6831_v8, %v6831_v8 }
 0x386   :  { %v3093_v41 = vadd.f32 %v3092_v35, %v6664_v61  ;;  %v3204_v45 = vadd.f32 %v3203_v20, %v3091_v16  ;;  %v3323_v61 = vmul.f32 %v6823_v63, %v6823_v63  ;;  %v6847_v52 = vmax.f32 %v3200_v5, 0.0 }
 0x387   :  { %v3094_v49 = vpop.f32.mrf.mxu0  ;;  %v3207_v27 = vpop.f32.mrf.mxu1  ;;  %v3270_v20 = vadd.f32 %v3269_v18, %v6817_v51  ;;  %v3291_v21 = vadd.f32 %v3290_v11, %v6823_v63  ;;  %v3326_v16 = vmul.f32 %v6839_v28, %v6839_v28  ;;  %v7650_v11 = vld [vmem:[#allocation117_spill] sm:$0xff] }
 0x388   :  { %v3095_v34 = vadd.f32 %v3094_v49, %v6667_v25  ;;  %v3366_v25 = vadd.f32 %v3365_v0, %v3321_v10  ;;  %v3206_v50 = vadd.f32 %v3205_v39, %v3093_v41  ;;  %v6851_v36 = vmax.f32 %v3204_v45, 0.0 }
 0x389   :  { %v3096_v48 = vpop.f32.mrf.mxu0  ;;  %v3209_v57 = vpop.f32.mrf.mxu1  ;;  %v3271_v39 = vadd.f32 %v3270_v20, %v6829_v12  ;;  %v3292_v49 = vadd.f32 %v3291_v21, %v6831_v8  ;;  %v3327_v5 = vmul.f32 %v6847_v52, %v6847_v52 }
 0x38a   :  { %v3097_v19 = vadd.f32 %v3096_v48, %v6676_v14  ;;  %v3208_v13 = vadd.f32 %v3207_v27, %v3095_v34  ;;  %v3346_v14 = vadd.f32 %v3345_v47, %v3322_v43  ;;  %v3367_v1 = vadd.f32 %v3366_v25, %v3323_v61  ;;  %v7649_v43 = vld [vmem:[#allocation115_spill] sm:$0xff] }
 0x38b   :  { %v3100_v38 = vpop.f32.mrf.mxu0  ;;  %v3213_v32 = vpop.f32.mrf.mxu1  ;;  %v6857_v42 = vmax.f32 %v3206_v50, 0.0  ;;  %v3328_v34 = vmul.f32 %v6851_v36, %v6851_v36  ;;  %v3272_v47 = vadd.f32 %v3271_v39, %v6839_v28  ;;  %v3293_v50 = vadd.f32 %v3292_v49, %v6847_v52 }
 0x38c   :  { %v3101_v33 = vadd.f32 %v3100_v38, %v7647_v17  ;;  %v3210_v53 = vadd.f32 %v3209_v57, %v3097_v19  ;;  %v6859_v59 = vmax.f32 %v3208_v13, 0.0  ;;  %v3347_v41 = vadd.f32 %v3346_v14, %v3324_v58  ;;  %v7651_v14 = vld [vmem:[#allocation119_spill] sm:$0xff] }
 0x38d   :  { %v3102_v7 = vpop.f32.mrf.mxu0  ;;  %v3215_v62 = vpop.f32.mrf.mxu1  ;;  %v3368_v27 = vadd.f32 %v3367_v1, %v3325_v24  ;;  %v3329_v13 = vmul.f32 %v6857_v42, %v6857_v42 }
 0x38e   :  { %v3214_v35 = vadd.f32 %v3213_v32, %v3101_v33  ;;  %v3103_v6 = vadd.f32 %v3102_v7, %v7648_v23  ;;  %v6867_v0 = vmax.f32 %v3210_v53, 0.0  ;;  %v3348_v61 = vadd.f32 %v3347_v41, %v3326_v16 }
 0x38f   :  { %v3104_v37 = vpop.f32.mrf.mxu0  ;;  %v3217_v10 = vpop.f32.mrf.mxu1  ;;  %v3330_v38 = vmul.f32 %v6859_v59, %v6859_v59  ;;  %v3369_v17 = vadd.f32 %v3368_v27, %v3327_v5  ;;  %v3273_v7 = vadd.f32 %v3272_v47, %v6851_v36 }
 0x390   :  { %v3216_v18 = vadd.f32 %v3215_v62, %v3103_v6  ;;  %v3105_v45 = vadd.f32 %v3104_v37, %v7649_v43  ;;  %v6871_v19 = vmax.f32 %v3214_v35, 0.0  ;;  %v3349_v62 = vadd.f32 %v3348_v61, %v3328_v34 }
 0x391   :  { %v3106_v48 = vpop.f32.mrf.mxu0  ;;  %v3219_v57 = vpop.f32.mrf.mxu1  ;;  %v3331_v21 = vmul.f32 %v6867_v0, %v6867_v0  ;;  %v3370_v41 = vadd.f32 %v3369_v17, %v3329_v13  ;;  %v3274_v49 = vadd.f32 %v3273_v7, %v6859_v59 }
 0x392   :  { %v3107_v25 = vadd.f32 %v3106_v48, %v7650_v11  ;;  %v3218_v32 = vadd.f32 %v3217_v10, %v3105_v45  ;;  %v6879_v33 = vmax.f32 %v3216_v18, 0.0  ;;  %v3332_v39 = vmul.f32 %v6871_v19, %v6871_v19 }
 0x393   :  { %v3110_v58 = vpop.f32.mrf.mxu0  ;;  %v3223_v24 = vpop.f32.mrf.mxu1  ;;  %v3294_v10 = vadd.f32 %v3293_v50, %v6857_v42  ;;  %v3350_v27 = vadd.f32 %v3349_v62, %v3330_v38  ;;  %v3371_v61 = vadd.f32 %v3370_v41, %v3331_v21  ;;  %v3275_v11 = vadd.f32 %v3274_v49, %v6871_v19 }
 0x394   :  { %v3220_v20 = vadd.f32 %v3219_v57, %v3107_v25  ;;  %v3111_v53 = vadd.f32 %v3110_v58, %v7651_v14  ;;  %v6885_v1 = vmax.f32 %v3218_v32, 0.0  ;;  %v3333_v34 = vmul.f32 %v6879_v33, %v6879_v33  ;;  %v4523_v57 = vld [vmem:[%s7067_s6 + $0x10] sm:$0xff]  }
 0x395   :  { %v3112_v16 = vpop.f32.mrf.mxu0  ;;  %v3225_v35 = vpop.f32.mrf.mxu1  ;;  %v3295_v47 = vadd.f32 %v3294_v10, %v6867_v0  ;;  %v3351_v13 = vadd.f32 %v3350_v27, %v3332_v39 }
 0x396   :  { %v6889_v23 = vmax.f32 %v3220_v20, 0.0  ;;  %v3224_v6 = vadd.f32 %v3223_v24, %v3111_v53  ;;  %v3113_v37 = vadd.f32 %v3112_v16, %v6747_v54  ;;  %v3334_v18 = vmul.f32 %v6885_v1, %v6885_v1  ;;  %v4522_v54 = vld [vmem:[%s7067_s6 + $0x18] sm:$0xff]  }
 0x397   :  { %v3114_v5 = vpop.f32.mrf.mxu0  ;;  %v3227_v48 = vpop.f32.mrf.mxu1  ;;  %4260 = vmatprep.subr.bf16.mxu1 %v4522_v54  ;;  %v3296_v24 = vadd.f32 %v3295_v47, %v6879_v33  ;;  %v3276_v17 = vadd.f32 %v3275_v11, %v6885_v1 }
 0x398   :  { %v6898_v43 = vmax.f32 %v3224_v6, 0.0  ;;  %v3226_v45 = vadd.f32 %v3225_v35, %v3113_v37  ;;  %v3115_v25 = vadd.f32 %v3114_v5, %v6752_v9  ;;  %v3335_v38 = vmul.f32 %v6889_v23, %v6889_v23  ;;  %4261 = vmatpush3.bf16.msra.mxu1 %v4522_v54 }
 0x399   :  { %v3116_v50 = vpop.f32.mrf.mxu0  ;;  %v3372_v9 = vadd.f32 %v3371_v61, %v3333_v34  ;;  %v3352_v53 = vadd.f32 %v3351_v13, %v3334_v18  ;;  %v3229_v62 = vpop.f32.mrf.mxu1  ;;  %4262 = vmatprep.subr.bf16.mxu1 %v4523_v57  ;;  %v3297_v21 = vadd.f32 %v3296_v24, %v6889_v23 }
 0x39a   :  { %v3336_v32 = vmul.f32 %v6898_v43, %v6898_v43  ;;  %v6913_v58 = vmax.f32 %v3226_v45, 0.0  ;;  %v3228_v20 = vadd.f32 %v3227_v48, %v3115_v25  ;;  %v3117_v14 = vadd.f32 %v3116_v50, %v6758_v2 }
 0x39b   :  { %v3277_v16 = vadd.f32 %v3276_v17, %v6898_v43  ;;  %v3373_v6 = vadd.f32 %v3372_v9, %v3335_v38 }
 0x39c   :  { %v3337_v7 = vmul.f32 %v6913_v58, %v6913_v58  ;;  %v6922_v35 = vmax.f32 %v3228_v20, 0.0  ;;  %v3230_v39 = vadd.f32 %v3229_v62, %v3117_v14  ;;  %v3353_v37 = vadd.f32 %v3352_v53, %v3336_v32  ;;  %4263 = vmatpush3.bf16.msra.mxu1 %v4523_v57 }
 0x39d   :  { %v3298_v10 = vadd.f32 %v3297_v21, %v6913_v58 }
 0x39e   :  { %v3278_v2 = vadd.f32 %v3277_v16, %v6922_v35  ;;  %v3338_v41 = vmul.f32 %v6922_v35, %v6922_v35  ;;  %v3263_v49 = vmax.f32 %v3230_v39, 0.0  ;;  %v3374_v27 = vadd.f32 %v3373_v6, %v3337_v7 }
 0x3a0   :  { %v3279_v5 = vrot.slane %v3278_v2, 4  ;;  %v3354_v34 = vadd.f32 %v3353_v37, %v3338_v41  ;;  %v3299_v18 = vadd.f32 %v3298_v10, %v3263_v49  ;;  %v3339_v45 = vmul.f32 %v3263_v49, %v3263_v49 }
 0x3a2   :  { %v3280_v48 = vadd.f32 %v3279_v5, %v3278_v2  ;;  %v3355_v54 = vrot.slane %v3354_v34, 4  ;;  %v3300_v47 = vrot.slane %v3299_v18, 4  ;;  %v3375_v61 = vadd.f32 %v3374_v27, %v3339_v45 }
 0x3a4   :  { %v3281_v11 = vrot.slane %v3280_v48, 2  ;;  %v3356_v25 = vadd.f32 %v3355_v54, %v3354_v34  ;;  %v3301_v50 = vadd.f32 %v3300_v47, %v3299_v18  ;;  %v3376_v13 = vrot.slane %v3375_v61, 4 }
 0x3a6   :  { %v3282_v38 = vadd.f32 %v3281_v11, %v3280_v48  ;;  %v3357_v32 = vrot.slane %v3356_v25, 2  ;;  %v3302_v24 = vrot.slane %v3301_v50, 2  ;;  %v3377_v17 = vadd.f32 %v3376_v13, %v3375_v61 }
 0x3a8   :  { %v3283_v20 = vrot.slane %v3282_v38, 1  ;;  %v3358_v14 = vadd.f32 %v3357_v32, %v3356_v25  ;;  %v3303_v57 = vadd.f32 %v3302_v24, %v3301_v50  ;;  %v3378_v9 = vrot.slane %v3377_v17, 2  ;;  %v7653_v24 = vld [vmem:[#allocation11_spill] sm:$0xff] }
 0x3aa   :  { %v3284_v53 = vadd.f32 %v3283_v20, %v3282_v38  ;;  %v3359_v7 = vrot.slane %v3358_v14, 1  ;;  %v3304_v62 = vrot.slane %v3303_v57, 1  ;;  %v3379_v21 = vadd.f32 %v3378_v9, %v3377_v17  ;;  %v7652_v38 = vld [vmem:[#allocation109_spill] sm:$0xff]  ;;  %v7654_v20 = vld [vmem:[#allocation12_spill] sm:$0xff] }
 0x3ac   :  { %v3306_v16 = vmul.f32 0.0078125, %v3284_v53  ;;  %v3360_v39 = vadd.f32 %v3359_v7, %v3358_v14  ;;  %v3305_v6 = vadd.f32 %v3304_v62, %v3303_v57  ;;  %v3380_v37 = vrot.slane %v3379_v21, 1 }
 0x3ae   :  { %v3382_v10 = vmul.f32 0.0078125, %v3360_v39  ;;  %v3384_v2 = vmul.f32 %v3306_v16, %v3306_v16  ;;  %v3307_v41 = vmul.f32 0.0078125, %v3305_v6  ;;  %v3381_v27 = vadd.f32 %v3380_v37, %v3379_v21 }
 0x3b0   :  { %v3386_v5 = vsub.f32 %v3382_v10, %v3384_v2  ;;  %v3383_v34 = vmul.f32 0.0078125, %v3381_v27  ;;  %v3385_v18 = vmul.f32 %v3307_v41, %v3307_v41 }
 0x3b2   :  { %v3388_v45 = vmax.f32 %v3386_v5, 0.0  ;;  %v3387_v48 = vsub.f32 %v3383_v34, %v3385_v18  ;;  %v7655_v18 = vld [vmem:[#allocation13_spill] sm:$0xff] }
 0x3b4   :  { %v3390_v54 = vadd.f32 1e-05, %v3388_v45  ;;  %v3389_v47 = vmax.f32 %v3387_v48, 0.0  ;;  %v7656_v45 = vld [vmem:[#allocation14_spill] sm:$0xff] }
 0x3b6   :  { %v3391_v61 = vadd.f32 1e-05, %v3389_v47  ;;  %4526 = vrsqrt.f32 %v3390_v54 }
 0x3b8   :  { %4528 = vrsqrt.f32 %v3391_v61 }
 0x3c3   :  { %v4527_v11 = vpop.eup %4526 }
 0x3c5   :  { %v4529_v25 = vpop.eup %4528 }
 0x3c6   :  { %v3396_v50 = vcombine.low %v4527_v11, %v4529_v25 }
 0x3c8   :  { %v3397_v13 = vrot.slane %v3396_v50, 7 }
 0x3ca   :  { %v3399_v32 = vmul.f32 %v3397_v13, %v7652_v38 }
 0x3cc   :  { %v3404_v17 = vrot.slane %v3399_v32, %v7653_v24  ;;  %v3408_v14 = vrot.slane %v3399_v32, %v7654_v20 }
 0x3ce   :  { %v3411_v57 = vmul.f32 %v3404_v17, %v3306_v16  ;;  %v3412_v9 = vmul.f32 %v3408_v14, %v3307_v41  ;;  %v3422_v53 = vrot.slane %v3404_v17, %v7653_v24  ;;  %v3426_v7 = vrot.slane %v3408_v14, %v7653_v24 }
 0x3d0   :  { %v3415_v62 = vcombine.low %v3411_v57, %v3412_v9  ;;  %v6933_v21 = vmul.f32 %v3426_v7, %v3263_v49  ;;  %v3428_v39 = vmul.f32 %v3426_v7, %v6743_v55  ;;  %v3430_v6 = vmul.f32 %v3426_v7, %v6739_v40 }
 0x3d1   :  { %v3427_v37 = vmul.f32 %v3422_v53, %v6737_v44  ;;  %v3429_v10 = vmul.f32 %v3422_v53, %v6731_v3  ;;  %v3432_v2 = vmul.f32 %v3426_v7, %v6754_v15  ;;  %v3434_v16 = vmul.f32 %v3426_v7, %v6773_v30 }
 0x3d2   :  { %v3416_v27 = vrot.slane %v3415_v62, 6  ;;  %v3431_v41 = vmul.f32 %v3422_v53, %v6741_v31  ;;  %v3433_v5 = vmul.f32 %v3422_v53, %v6768_v60  ;;  %v3436_v49 = vmul.f32 %v3426_v7, %v6786_v56 }
 0x3d3   :  { %v3438_v34 = vmul.f32 %v3426_v7, %v6803_v46  ;;  %v3435_v55 = vmul.f32 %v3422_v53, %v6778_v4  ;;  %v3437_v40 = vmul.f32 %v3422_v53, %v6795_v22  ;;  %v3440_v3 = vmul.f32 %v3426_v7, %v6811_v29 }
 0x3d4   :  { %v3418_v44 = vsub.f32 %v7652_v38, %v3416_v27  ;;  %v3442_v15 = vmul.f32 %v3426_v7, %v6823_v63  ;;  %v3439_v30 = vmul.f32 %v3422_v53, %v6805_v26  ;;  %v3441_v31 = vmul.f32 %v3422_v53, %v6817_v51 }
 0x3d5   :  { %v3444_v60 = vmul.f32 %v3426_v7, %v6831_v8  ;;  %v3446_v56 = vmul.f32 %v3426_v7, %v6847_v52  ;;  %v3443_v46 = vmul.f32 %v3422_v53, %v6829_v12  ;;  %v3445_v48 = vmul.f32 %v3422_v53, %v6839_v28 }
 0x3d6   :  { %v3463_v4 = vrot.slane %v3418_v44, %v7655_v18  ;;  %v3467_v22 = vrot.slane %v3418_v44, %v7656_v45  ;;  %v3448_v29 = vmul.f32 %v3426_v7, %v6857_v42  ;;  %v3450_v63 = vmul.f32 %v3426_v7, %v6867_v0 }
 0x3d7   :  { %v3447_v26 = vmul.f32 %v3422_v53, %v6851_v36  ;;  %v3449_v51 = vmul.f32 %v3422_v53, %v6859_v59  ;;  %v3454_v8 = vmul.f32 %v3426_v7, %v6889_v23  ;;  %v3452_v54 = vmul.f32 %v3426_v7, %v6879_v33 }
 0x3d8   :  { %v3473_v52 = vrot.slane %v3463_v4, %v7655_v18  ;;  %v3477_v12 = vrot.slane %v3467_v22, %v7655_v18  ;;  %v3451_v47 = vmul.f32 %v3422_v53, %v6871_v19  ;;  %v3453_v28 = vmul.f32 %v3422_v53, %v6885_v1 }
 0x3d9   :  { %v3456_v42 = vmul.f32 %v3426_v7, %v6913_v58  ;;  %v3455_v0 = vmul.f32 %v3422_v53, %v6898_v43  ;;  %v3457_v36 = vmul.f32 %v3422_v53, %v6922_v35 }
 0x3da   :  { %v3479_v61 = vadd.f32 %v3477_v12, %v3428_v39  ;;  %v3481_v59 = vadd.f32 %v3477_v12, %v3430_v6  ;;  %v3478_v11 = vadd.f32 %v3473_v52, %v3427_v37  ;;  %v3480_v23 = vadd.f32 %v3473_v52, %v3429_v10 }
 0x3db   :  { %v3483_v25 = vadd.f32 %v3477_v12, %v3432_v2  ;;  %v3485_v50 = vadd.f32 %v3477_v12, %v3434_v16  ;;  %v3482_v13 = vadd.f32 %v3473_v52, %v3431_v41  ;;  %v3484_v38 = vadd.f32 %v3473_v52, %v3433_v5 }
 0x3dc   :  { %v3512_v32 = vpack.c.bf16 %v3481_v59, %v3479_v61  ;;  %v3511_v33 = vpack.c.bf16 %v3480_v23, %v3478_v11  ;;  %v3487_v17 = vadd.f32 %v3477_v12, %v3436_v49  ;;  %v3489_v19 = vadd.f32 %v3477_v12, %v3438_v34 }
 0x3dd   :  { %v3514_v20 = vpack.c.bf16 %v3485_v50, %v3483_v25  ;;  %v3513_v1 = vpack.c.bf16 %v3484_v38, %v3482_v13  ;;  %v3486_v14 = vadd.f32 %v3473_v52, %v3435_v55  ;;  %v3488_v58 = vadd.f32 %v3473_v52, %v3437_v40 }
 0x3de   :  { %3691 = vmatprep.mubr.bf16.mxu0 %v3512_v32  ;;  %v3516_v43 = vpack.c.bf16 %v3489_v19, %v3487_v17  ;;  %v3491_v57 = vadd.f32 %v3477_v12, %v3440_v3  ;;  %v3493_v35 = vadd.f32 %v3477_v12, %v3442_v15  ;;  %v3490_v9 = vadd.f32 %v3473_v52, %v3439_v30 }
 0x3df   :  { %3692 = vmatmul.mubr.bf16.vlgmr.msra.gmra.mxu0 %v3511_v33  ;;  %v3515_v53 = vpack.c.bf16 %v3488_v58, %v3486_v14  ;;  %v3492_v7 = vadd.f32 %v3473_v52, %v3441_v31  ;;  %v3495_v62 = vadd.f32 %v3477_v12, %v3444_v60  ;;  %v3497_v39 = vadd.f32 %v3477_v12, %v3446_v56 }
 0x3e0   :  { %3699 = vmatprep.mubr.bf16.mxu0 %v3514_v20  ;;  %v3518_v6 = vpack.c.bf16 %v3493_v35, %v3491_v57  ;;  %v3494_v37 = vadd.f32 %v3473_v52, %v3443_v46  ;;  %v3496_v10 = vadd.f32 %v3473_v52, %v3445_v48  ;;  %v3499_v2 = vadd.f32 %v3477_v12, %v3448_v29  ;;  %v4525_v48 = vld [vmem:[%s7067_s6] sm:$0xff]  }
 0x3e1   :  { %v3517_v27 = vpack.c.bf16 %v3492_v7, %v3490_v9  ;;  %v3520_v16 = vpack.c.bf16 %v3497_v39, %v3495_v62  ;;  %v3501_v41 = vadd.f32 %v3477_v12, %v3450_v63  ;;  %v3498_v5 = vadd.f32 %v3473_v52, %v3447_v26  ;;  %v6981_v63 = vld [vmem:[%s7068_s7] sm:$0x3] }
 0x3e2   :  { %v3519_v49 = vpack.c.bf16 %v3496_v10, %v3494_v37  ;;  %v3500_v34 = vadd.f32 %v3473_v52, %v3449_v51  ;;  %v3503_v55 = vadd.f32 %v3477_v12, %v3452_v54  ;;  %v3505_v40 = vadd.f32 %v3477_v12, %v3454_v8  ;;  %v7657_v51 = vld [vmem:[#allocation9_spill] sm:$0xff] }
 0x3e3   :  { %v3522_v44 = vpack.c.bf16 %v3501_v41, %v3499_v2  ;;  %v3502_v3 = vadd.f32 %v3473_v52, %v3451_v47  ;;  %v3504_v15 = vadd.f32 %v3473_v52, %v3453_v28  ;;  %v3507_v30 = vadd.f32 %v3477_v12, %v3456_v42 }
 0x3e4   :  { %v3521_v31 = vpack.c.bf16 %v3500_v34, %v3498_v5  ;;  %v3524_v60 = vpack.c.bf16 %v3505_v40, %v3503_v55  ;;  %v3509_v56 = vadd.f32 %v3477_v12, %v6933_v21  ;;  %v3506_v18 = vadd.f32 %v3473_v52, %v3455_v0  ;;  %v4524_v21 = vld [vmem:[%s7067_s6 + $0x8] sm:$0xff]  }
 0x3e5   :  { %v3523_v46 = vpack.c.bf16 %v3504_v15, %v3502_v3  ;;  %v3508_v4 = vadd.f32 %v3473_v52, %v3457_v36  ;;  %4264 = vmatprep.subr.bf16.mxu1 %v4524_v21  ;;  %v6985_v8 = vrot.slane %v6981_v63, %v7657_v51 }
 0x3e6   :  { %v3526_v45 = vpack.c.bf16 %v3509_v56, %v3507_v30  ;;  %4265 = vmatpush3.bf16.msra.mxu1 %v4524_v21 }
 0x3e7   :  { %3700 = vmatmul.mubr.bf16.gmra.mxu0 %v3513_v1  ;;  %v3525_v22 = vpack.c.bf16 %v3508_v4, %v3506_v18  ;;  %4266 = vmatprep.subr.bf16.mxu1 %v4525_v48 }
 0x3e8   :  { %3707 = vmatprep.mubr.bf16.mxu0 %v3516_v43 }
 0x3ea   :  { %4267 = vmatpush3.bf16.msra.mxu1 %v4525_v48 }
 0x3ef   :  { %3708 = vmatmul.mubr.bf16.gmra.mxu0 %v3515_v53 }
 0x3f0   :  { %3715 = vmatprep.mubr.bf16.mxu0 %v3518_v6 }
 0x3f7   :  { %3716 = vmatmul.mubr.bf16.gmra.mxu0 %v3517_v27 }
 0x3f8   :  { %3723 = vmatprep.mubr.bf16.mxu0 %v3520_v16 }
 0x3ff   :  { %3724 = vmatmul.mubr.bf16.gmra.mxu0 %v3519_v49 }
 0x400   :  { %3731 = vmatprep.mubr.bf16.mxu0 %v3522_v44 }
 0x407   :  { %3732 = vmatmul.mubr.bf16.gmra.mxu0 %v3521_v31 }
 0x408   :  { %3739 = vmatprep.mubr.bf16.mxu0 %v3524_v60 }
 0x40f   :  { %3740 = vmatmul.mubr.bf16.gmra.mxu0 %v3523_v46 }
 0x410   :  { %3747 = vmatprep.mubr.bf16.mxu0 %v3526_v45 }
 0x417   :  { %3748 = vmatmul.mubr.bf16.gmra.mxu0 %v3525_v22 }
 0x49f   :  { %v4200_v29 = vpop.f32.mrf.mxu0 }
 0x4a1   :  { %v4201_v26 = vpop.f32.mrf.mxu0 }
 0x4a2   :  { %v4202_v52 = vadd.f32 %v4201_v26, %v4200_v29 }
 0x4a3   :  { %v4203_v12 = vpop.f32.mrf.mxu0 }
 0x4a4   :  { %v3694_v47 = vadd.f32 %v4202_v52, %v6985_v8 }
 0x4a5   :  { %v4204_v54 = vpop.f32.mrf.mxu0 }
 0x4a6   :  { %v4205_v28 = vadd.f32 %v4204_v54, %v4203_v12  ;;  %v3756_v61 = vmax.f32 %v3694_v47, 0.0 }
 0x4a7   :  { %v4206_v42 = vpop.f32.mrf.mxu0 }
 0x4a8   :  { %v3697_v0 = vadd.f32 %v4205_v28, %v6985_v8 }
 0x4a9   :  { %v4207_v36 = vpop.f32.mrf.mxu0 }
 0x4aa   :  { %v3757_v59 = vmax.f32 %v3697_v0, 0.0  ;;  %v4208_v11 = vadd.f32 %v4207_v36, %v4206_v42 }
 0x4ab   :  { %v4209_v23 = vpop.f32.mrf.mxu0 }
 0x4ac   :  { %v3772_v25 = vpack.c.bf16 %v3757_v59, %v3756_v61  ;;  %v3702_v13 = vadd.f32 %v4208_v11, %v6985_v8 }
 0x4ad   :  { %v4210_v50 = vpop.f32.mrf.mxu0 }
 0x4ae   :  { %v4211_v38 = vadd.f32 %v4210_v50, %v4209_v23  ;;  %4268 = vmatprep.mubr.msk.bf16.mxu1 %vm335_vm0, %v3772_v25  ;;  %v3758_v19 = vmax.f32 %v3702_v13, 0.0 }
 0x4af   :  { %v4212_v32 = vpop.f32.mrf.mxu0 }
 0x4b0   :  { %v3705_v33 = vadd.f32 %v4211_v38, %v6985_v8 }
 0x4b1   :  { %v4213_v17 = vpop.f32.mrf.mxu0 }
 0x4b2   :  { %v3759_v20 = vmax.f32 %v3705_v33, 0.0  ;;  %v4214_v1 = vadd.f32 %v4213_v17, %v4212_v32 }
 0x4b3   :  { %v4215_v14 = vpop.f32.mrf.mxu0 }
 0x4b4   :  { %v3773_v58 = vpack.c.bf16 %v3759_v20, %v3758_v19  ;;  %v3710_v57 = vadd.f32 %v4214_v1, %v6985_v8 }
 0x4b5   :  { %v4216_v43 = vpop.f32.mrf.mxu0 }
 0x4b6   :  { %v4217_v35 = vadd.f32 %v4216_v43, %v4215_v14  ;;  %4269 = vmatmul.mubr.msk.bf16.vlgmr.msra.gmra.mxu1 %vm335_vm0, %v3773_v58  ;;  %v3760_v62 = vmax.f32 %v3710_v57, 0.0  ;;  %v3791_v57 = vrot.slane %v6981_v63, %v7653_v24 }
 0x4b7   :  { %v4218_v9 = vpop.f32.mrf.mxu0 }
 0x4b8   :  { %v3713_v53 = vadd.f32 %v4217_v35, %v6985_v8 }
 0x4b9   :  { %v4219_v7 = vpop.f32.mrf.mxu0 }
 0x4ba   :  { %v3761_v39 = vmax.f32 %v3713_v53, 0.0  ;;  %v4220_v6 = vadd.f32 %v4219_v7, %v4218_v9 }
 0x4bb   :  { %v4221_v37 = vpop.f32.mrf.mxu0 }
 0x4bc   :  { %v3774_v10 = vpack.c.bf16 %v3761_v39, %v3760_v62  ;;  %v3718_v27 = vadd.f32 %v4220_v6, %v6985_v8 }
 0x4bd   :  { %v4222_v2 = vpop.f32.mrf.mxu0 }
 0x4be   :  { %v4223_v16 = vadd.f32 %v4222_v2, %v4221_v37  ;;  %4272 = vmatprep.mubr.msk.bf16.mxu1 %vm335_vm0, %v3774_v10  ;;  %v3762_v34 = vmax.f32 %v3718_v27, 0.0 }
 0x4bf   :  { %v4224_v41 = vpop.f32.mrf.mxu0 }
 0x4c0   :  { %v3721_v5 = vadd.f32 %v4223_v16, %v6985_v8 }
 0x4c1   :  { %v4225_v49 = vpop.f32.mrf.mxu0 }
 0x4c2   :  { %v3763_v55 = vmax.f32 %v3721_v5, 0.0  ;;  %v4226_v40 = vadd.f32 %v4225_v49, %v4224_v41 }
 0x4c3   :  { %v4227_v44 = vpop.f32.mrf.mxu0 }
 0x4c4   :  { %v3775_v3 = vpack.c.bf16 %v3763_v55, %v3762_v34  ;;  %v3726_v30 = vadd.f32 %v4226_v40, %v6985_v8 }
 0x4c5   :  { %v4228_v15 = vpop.f32.mrf.mxu0 }
 0x4c6   :  { %v4229_v31 = vadd.f32 %v4228_v15, %v4227_v44  ;;  %4273 = vmatmul.mubr.msk.bf16.gmra.mxu1 %vm335_vm0, %v3775_v3  ;;  %v3764_v46 = vmax.f32 %v3726_v30, 0.0 }
 0x4c7   :  { %v4230_v60 = vpop.f32.mrf.mxu0 }
 0x4c8   :  { %v3729_v56 = vadd.f32 %v4229_v31, %v6985_v8 }
 0x4c9   :  { %v4231_v18 = vpop.f32.mrf.mxu0 }
 0x4ca   :  { %v3765_v4 = vmax.f32 %v3729_v56, 0.0  ;;  %v4232_v45 = vadd.f32 %v4231_v18, %v4230_v60 }
 0x4cb   :  { %v4233_v22 = vpop.f32.mrf.mxu0 }
 0x4cc   :  { %v3776_v21 = vpack.c.bf16 %v3765_v4, %v3764_v46  ;;  %v3734_v29 = vadd.f32 %v4232_v45, %v6985_v8 }
 0x4cd   :  { %v4234_v48 = vpop.f32.mrf.mxu0 }
 0x4ce   :  { %v4235_v26 = vadd.f32 %v4234_v48, %v4233_v22  ;;  %4276 = vmatprep.mubr.msk.bf16.mxu1 %vm335_vm0, %v3776_v21  ;;  %v3766_v54 = vmax.f32 %v3734_v29, 0.0 }
 0x4cf   :  { %v4236_v51 = vpop.f32.mrf.mxu0 }
 0x4d0   :  { %v3737_v52 = vadd.f32 %v4235_v26, %v6985_v8 }
 0x4d1   :  { %v4237_v12 = vpop.f32.mrf.mxu0 }
 0x4d2   :  { %v3767_v47 = vmax.f32 %v3737_v52, 0.0  ;;  %v4238_v28 = vadd.f32 %v4237_v12, %v4236_v51 }
 0x4d3   :  { %v4239_v42 = vpop.f32.mrf.mxu0 }
 0x4d4   :  { %v3777_v0 = vpack.c.bf16 %v3767_v47, %v3766_v54  ;;  %v3742_v61 = vadd.f32 %v4238_v28, %v6985_v8 }
 0x4d5   :  { %v4240_v36 = vpop.f32.mrf.mxu0 }
 0x4d6   :  { %v4241_v59 = vadd.f32 %v4240_v36, %v4239_v42  ;;  %4277 = vmatmul.mubr.msk.bf16.gmra.mxu1 %vm335_vm0, %v3777_v0  ;;  %v3768_v50 = vmax.f32 %v3742_v61, 0.0 }
 0x4d7   :  { %v4242_v11 = vpop.f32.mrf.mxu0 }
 0x4d8   :  { %v3745_v23 = vadd.f32 %v4241_v59, %v6985_v8 }
 0x4d9   :  { %v4243_v25 = vpop.f32.mrf.mxu0 }
 0x4da   :  { %v3769_v13 = vmax.f32 %v3745_v23, 0.0  ;;  %v4244_v38 = vadd.f32 %v4243_v25, %v4242_v11 }
 0x4db   :  { %v4245_v32 = vpop.f32.mrf.mxu0 }
 0x4dc   :  { %v3778_v33 = vpack.c.bf16 %v3769_v13, %v3768_v50  ;;  %v3750_v19 = vadd.f32 %v4244_v38, %v6985_v8 }
 0x4dd   :  { %v4246_v17 = vpop.f32.mrf.mxu0 }
 0x4de   :  { %v4247_v20 = vadd.f32 %v4246_v17, %v4245_v32  ;;  %4280 = vmatprep.mubr.msk.bf16.mxu1 %vm335_vm0, %v3778_v33  ;;  %v3770_v14 = vmax.f32 %v3750_v19, 0.0 }
 0x4e0   :  { %v3753_v1 = vadd.f32 %v4247_v20, %v6985_v8 }
 0x4e2   :  { %v3771_v58 = vmax.f32 %v3753_v1, 0.0 }
 0x4e4   :  { %v3779_v43 = vpack.c.bf16 %v3771_v58, %v3770_v14 }
 0x4e6   :  { %4281 = vmatmul.mubr.msk.bf16.gmra.mxu1 %vm335_vm0, %v3779_v43 }
 0x576   :  { %v4270_v35 = vpop.f32.mrf.mxu1 }
 0x577   :  { %v3883_v9 = vadd.f32 %v4270_v35, %v3791_v57 }
 0x578   :  { %v3874_v53 = vpop.f32.mrf.mxu1 }
 0x579   :  { %3939 = vst [vmem:[%s7069_s8 + $0x10] sm:$0xff] %v3883_v9  ;;  %v3875_v7 = vadd.f32 %v3874_v53, %v3791_v57 }
 0x57a   :  { %v4271_v62 = vpop.f32.mrf.mxu1 }
 0x57b   :  { %3937 = vst [vmem:[%s7069_s8] sm:$0xff] %v3875_v7  ;;  %v3886_v8 = vadd.f32 %v4271_v62, %v3791_v57 }
 0x57c   :  { %v3877_v39 = vpop.f32.mrf.mxu1 }
 0x57d   :  { %3940 = vst [vmem:[%s7069_s8 + $0x18] sm:$0xff] %v3886_v8  ;;  %v3878_v24 = vadd.f32 %v3877_v39, %v3791_v57 }
 0x57f   :  { %3938 = vst [vmem:[%s7069_s8 + $0x8] sm:$0xff] %v3878_v24 }
 0x586   :  { %v4274_v63 = vpop.f32.mrf.mxu1 }
 0x587   :  { %v3899_v6 = vadd.f32 %v4274_v63, %v3791_v57 }
 0x588   :  { %v3890_v37 = vpop.f32.mrf.mxu1 }
 0x589   :  { %3943 = vst [vmem:[%s7069_s8 + $0x30] sm:$0xff] %v3899_v6  ;;  %v3891_v10 = vadd.f32 %v3890_v37, %v3791_v57 }
 0x58a   :  { %v4275_v2 = vpop.f32.mrf.mxu1 }
 0x58b   :  { %3941 = vst [vmem:[%s7069_s8 + $0x20] sm:$0xff] %v3891_v10  ;;  %v3902_v27 = vadd.f32 %v4275_v2, %v3791_v57 }
 0x58c   :  { %v3893_v16 = vpop.f32.mrf.mxu1 }
 0x58d   :  { %3944 = vst [vmem:[%s7069_s8 + $0x38] sm:$0xff] %v3902_v27  ;;  %v3894_v41 = vadd.f32 %v3893_v16, %v3791_v57 }
 0x58f   :  { %3942 = vst [vmem:[%s7069_s8 + $0x28] sm:$0xff] %v3894_v41 }
 0x596   :  { %v4278_v5 = vpop.f32.mrf.mxu1 }
 0x597   :  { %v3915_v49 = vadd.f32 %v4278_v5, %v3791_v57 }
 0x598   :  { %v3906_v34 = vpop.f32.mrf.mxu1 }
 0x599   :  { %3947 = vst [vmem:[%s7069_s8 + $0x50] sm:$0xff] %v3915_v49  ;;  %v3907_v55 = vadd.f32 %v3906_v34, %v3791_v57 }
 0x59a   :  { %v4279_v40 = vpop.f32.mrf.mxu1 }
 0x59b   :  { %3945 = vst [vmem:[%s7069_s8 + $0x40] sm:$0xff] %v3907_v55  ;;  %v3918_v44 = vadd.f32 %v4279_v40, %v3791_v57 }
 0x59c   :  { %v3909_v3 = vpop.f32.mrf.mxu1 }
 0x59d   :  { %3948 = vst [vmem:[%s7069_s8 + $0x58] sm:$0xff] %v3918_v44  ;;  %v3910_v15 = vadd.f32 %v3909_v3, %v3791_v57 }
 0x59f   :  { %3946 = vst [vmem:[%s7069_s8 + $0x48] sm:$0xff] %v3910_v15 }
 0x5a6   :  { %v4282_v30 = vpop.f32.mrf.mxu1 }
 0x5a7   :  { %v3931_v31 = vadd.f32 %v4282_v30, %v3791_v57 }
 0x5a8   :  { %v3922_v60 = vpop.f32.mrf.mxu1 }
 0x5a9   :  { %3951 = vst [vmem:[%s7069_s8 + $0x70] sm:$0xff] %v3931_v31  ;;  %v3923_v56 = vadd.f32 %v3922_v60, %v3791_v57 }
 0x5aa   :  { %v4283_v18 = vpop.f32.mrf.mxu1 }
 0x5ab   :  { %3949 = vst [vmem:[%s7069_s8 + $0x60] sm:$0xff] %v3923_v56  ;;  %v3934_v46 = vadd.f32 %v4283_v18, %v3791_v57 }
 0x5ac   :  { %v3925_v4 = vpop.f32.mrf.mxu1 }
 0x5ad   :  { %3952 = vst [vmem:[%s7069_s8 + $0x78] sm:$0xff] %v3934_v46  ;;  %v3926_v45 = vadd.f32 %v3925_v4, %v3791_v57 }
 0x5af   :  { %3950 = vst [vmem:[%s7069_s8 + $0x68] sm:$0xff] %v3926_v45 }
 0x5b0   :  { %3957 = vsyncmov [#allocation3] }
 0x5b3   :  { %s3958_s21 = vpop.sfrf %3957 }
 0x5b4   :  { %p4183_p5 = scmp.ne.s32.totalorder %s3958_s21, 0 }
 0x5b6   :  { %3962 = shalt.err (%p4183_p5)  }

</bundles_post_ra>
